<compile_context>
chip_gen: v5e
topology: v5e:2x2
jax: 0.10.0
libtpu: 0.0.40
codegen_flags: <defaults>
</compile_context>

<pallas_src>
import jax
import jax.numpy as jnp
from jax.experimental import pallas as pl
from jax.experimental.pallas import tpu as pltpu

# ----------------------------- config ---------------------------------------
B = 2            # batch
T = 16           # sequence length (frames)
F_IN = 32        # raw input feature dim
DIM = 64         # encoder_units
DEPTH = 2        # encoder_layers
HEADS = 4
DIM_HEAD = 32
FF_MULT = 4
FF_DIM = DIM * FF_MULT            # 256
CONV_EXP = 2
CONV_K = 15                       # odd kernel -> same padding
CONV_INNER = DIM * CONV_EXP       # 128
ATTN_INNER = HEADS * DIM_HEAD     # 128
SKIP = 1.0
LN_EPS = 1e-5
BN_EPS = 1e-5
ROPE_BASE = 10000.0
BT = B * T

PAD_L = CONV_K // 2               # 7
CONV_OFF = 8                      # 8-aligned start of the valid rows in pad scratch
CONV_BUF = CONV_OFF + T + (CONV_K - 1 - PAD_L) + 1   # 32 rows, covers all taps

VEC_W = 384                       # padded width of the packed per-layer vector slab
VEC_ORDER = ("ff1_b1", "ff1_b2", "qkv_b", "conv_b1", "bn_scale", "bn_bias",
             "conv_b2", "ff2_b1", "ff2_b2", "post_g", "post_b")
VEC_WIDTHS = {"ff1_b1": FF_DIM, "ff1_b2": DIM, "qkv_b": 3 * ATTN_INNER,
              "conv_b1": 2 * CONV_INNER, "bn_scale": CONV_INNER,
              "bn_bias": CONV_INNER, "conv_b2": DIM,
              "ff2_b1": FF_DIM, "ff2_b2": DIM, "post_g": DIM, "post_b": DIM}


# ------------------------------ fused kernel ----------------------------------
def encoder_kernel(x_ref, emb_w_ref, emb_b_ref, vec_ref,
                   ff1_w1_ref, ff1_w2_ref, wqkv_ref, wout_ref,
                   conv_w1_ref, conv_wdw_ref, conv_w2_ref,
                   ff2_w1_ref, ff2_w2_ref,
                   cosf_ref, sinf_ref, rotp_ref, mask_ref,
                   o_ref, x_scr, pad_scr):
    f32 = jnp.float32
    bf16 = jnp.bfloat16
    l = pl.program_id(0)

    def V(name):                                   # packed per-layer vector slab
        r = VEC_ORDER.index(name)
        return vec_ref[r:r + 1, :VEC_WIDTHS[name]]  # (1, width)

    def ln0(x):                                    # LayerNorm, affine folded away
        mu = jnp.mean(x, axis=-1, keepdims=True)
        var = jnp.mean((x - mu) ** 2, axis=-1, keepdims=True)
        return (x - mu) * jax.lax.rsqrt(var + LN_EPS)

    def ff(x, w1_ref, b1, w2_ref, b2):             # PreNorm + FeedForward (Swish)
        xn = ln0(x).astype(bf16)
        h = jnp.dot(xn, w1_ref[...], preferred_element_type=f32) + b1
        h = h * jax.nn.sigmoid(h)
        return jnp.dot(h.astype(bf16), w2_ref[...], preferred_element_type=f32) + b2

    # ------------- step 0: embedding + zero the conv padding scratch -----------
    @pl.when(l == 0)
    def _():
        pad_scr[...] = jnp.zeros_like(pad_scr)
        xe = jnp.dot(x_ref[...].astype(bf16), emb_w_ref[...],
                     preferred_element_type=f32) + emb_b_ref[...]
        x_scr[...] = xe

    x = x_scr[...]                                 # (BT, DIM) f32 carried state

    # ---------------- ff1: Scale(0.5, PreNorm(FeedForward)) + residual ---------
    # (0.5 * skip folded into ff1_w2 / ff1_b2 at pack time)
    x = x + ff(x, ff1_w1_ref, V("ff1_b1"), ff1_w2_ref, V("ff1_b2"))

    # ---------------- attention: PreNorm(Attention, rope) + residual -----------
    xn = ln0(x).astype(bf16)
    qkv = jnp.dot(xn, wqkv_ref[...], preferred_element_type=f32) + V("qkv_b")
    q = qkv[:, 0:ATTN_INNER]
    k = qkv[:, ATTN_INNER:2 * ATTN_INNER]
    v = qkv[:, 2 * ATTN_INNER:3 * ATTN_INNER]

    cosf = cosf_ref[...]                           # (BT, ATTN_INNER) pre-tiled
    sinf = sinf_ref[...]
    rotp = rotp_ref[...]                           # signed permutation (bf16)
    qh = q * cosf + jnp.dot(q.astype(bf16), rotp, preferred_element_type=f32) * sinf
    kh = k * cosf + jnp.dot(k.astype(bf16), rotp, preferred_element_type=f32) * sinf

    mask = mask_ref[...]                           # (BT, BT) block-diag batch mask
    scale = DIM_HEAD ** -0.5
    attn_acc = jnp.zeros((BT, DIM), f32)
    for h in range(HEADS):
        c0 = h * DIM_HEAD
        qh_h = qh[:, c0:c0 + DIM_HEAD].astype(bf16)
        kh_h = kh[:, c0:c0 + DIM_HEAD].astype(bf16)
        s = jax.lax.dot_general(qh_h, kh_h, (((1,), (1,)), ((), ())),
                                preferred_element_type=f32) * scale + mask
        s = s - jnp.max(s, axis=-1, keepdims=True)
        p = jnp.exp(s)
        p = p * pl.reciprocal(jnp.sum(p, axis=-1, keepdims=True), approx=True)
        pv = jnp.dot(p.astype(bf16), v[:, c0:c0 + DIM_HEAD].astype(bf16),
                     preferred_element_type=f32)               # (BT, dh)
        attn_acc = attn_acc + jnp.dot(pv.astype(bf16),
                                      wout_ref[c0:c0 + DIM_HEAD, :],
                                      preferred_element_type=f32)
    x = x + attn_acc                               # skip folded into wout

    # ---------------- conv module + residual -----------------------------------
    xn = ln0(x).astype(bf16)
    hcv = jnp.dot(xn, conv_w1_ref[...], preferred_element_type=f32) + V("conv_b1")
    u = hcv[:, :CONV_INNER] * jax.nn.sigmoid(hcv[:, CONV_INNER:])  # GLU (BT, CI)

    # depthwise time conv: padded VMEM scratch + K statically shifted VPU FMAs
    pad_scr[:, CONV_OFF:CONV_OFF + T, :] = u.reshape(B, T, CONV_INNER)
    acc = jnp.zeros((B, T, CONV_INNER), f32)
    for kk in range(CONV_K):
        start = CONV_OFF + kk - PAD_L              # static, >= 1
        acc = acc + pad_scr[:, start:start + T, :] * conv_wdw_ref[kk:kk + 1, :]

    # folded BatchNorm (eval) + depthwise bias, then Swish
    z = acc.reshape(BT, CONV_INNER) * V("bn_scale") + V("bn_bias")
    z = z * jax.nn.sigmoid(z)
    x = x + jnp.dot(z.astype(bf16), conv_w2_ref[...],
                    preferred_element_type=f32) + V("conv_b2")

    # ---------------- ff2 -------------------------------------------------------
    x = x + ff(x, ff2_w1_ref, V("ff2_b1"), ff2_w2_ref, V("ff2_b2"))

    # ---------------- post norm -------------------------------------------------
    x = ln0(x) * V("post_g") + V("post_b")

    x_scr[...] = x

    @pl.when(l == pl.num_programs(0) - 1)
    def _():
        o_ref[...] = x


# --------------------------- pallas_call wrapper ------------------------------
def _inv_spec(a):                                  # layer-invariant 2-D array
    return pl.BlockSpec(a.shape, lambda l: (0, 0))


def _per_layer_spec(a):                            # stacked-over-layers array
    nd = a.ndim
    return pl.BlockSpec((None,) + a.shape[1:],
                        lambda l, nd=nd: (l,) + (0,) * (nd - 1))


def encoder_forward(x_inp, packed):
    (emb_w, emb_b, vec, ff1_w1, ff1_w2, wqkv, wout,
     conv_w1, conv_wdw, conv_w2, ff2_w1, ff2_w2,
     cosf, sinf, rotp, mask) = packed
    x2 = x_inp.reshape(BT, F_IN)

    in_specs = [_inv_spec(x2), _inv_spec(emb_w), _inv_spec(emb_b),
                _per_layer_spec(vec),
                _per_layer_spec(ff1_w1), _per_layer_spec(ff1_w2),
                _per_layer_spec(wqkv), _per_layer_spec(wout),
                _per_layer_spec(conv_w1), _per_layer_spec(conv_wdw),
                _per_layer_spec(conv_w2),
                _per_layer_spec(ff2_w1), _per_layer_spec(ff2_w2),
                _inv_spec(cosf), _inv_spec(sinf), _inv_spec(rotp), _inv_spec(mask)]

    out = pl.pallas_call(
        encoder_kernel,
        out_shape=jax.ShapeDtypeStruct((BT, DIM), jnp.float32),
        grid=(DEPTH,),
        in_specs=in_specs,
        out_specs=pl.BlockSpec((BT, DIM), lambda l: (0, 0)),
        scratch_shapes=[pltpu.VMEM((BT, DIM), jnp.float32),
                        pltpu.VMEM((B, CONV_BUF, CONV_INNER), jnp.float32)],
        compiler_params=pltpu.CompilerParams(dimension_semantics=("arbitrary",)),
    )(x2, emb_w, emb_b, vec, ff1_w1, ff1_w2, wqkv, wout,
      conv_w1, conv_wdw, conv_w2, ff2_w1, ff2_w2, cosf, sinf, rotp, mask)
    return out.reshape(B, T, DIM)


# ----------------------------- parameters -------------------------------------
def rope_cache(seq_len):
    inv_freq = 1.0 / (ROPE_BASE ** (jnp.arange(0, DIM_HEAD, 2, dtype=jnp.float32)
                                    / DIM_HEAD))
    t = jnp.arange(seq_len, dtype=jnp.float32)
    freqs = jnp.outer(t, inv_freq)                                  # (T, dh/2)
    emb = jnp.concatenate([freqs, freqs], axis=-1)                  # (T, dh)
    return jnp.cos(emb), jnp.sin(emb)


def make_rope_rot_matrix():
    # z @ P == rotate_half(z) applied per head on the (rows, H*dh) slab
    half = DIM_HEAD // 2
    j = jnp.arange(ATTN_INNER)
    d = j % DIM_HEAD
    src = jnp.where(d < half, j + half, j - half)
    sign = jnp.where(d < half, -1.0, 1.0).astype(jnp.float32)
    return jnp.zeros((ATTN_INNER, ATTN_INNER), jnp.float32).at[src, j].set(sign)


def make_batch_mask():
    # additive mask blocking cross-batch attention when batch is folded into rows
    bids = jnp.repeat(jnp.arange(B), T)
    same = bids[:, None] == bids[None, :]
    return jnp.where(same, 0.0, -1e30).astype(jnp.float32)          # (BT, BT)


def init_params(key):
    keys = iter(jax.random.split(key, 64))

    def w(shape, scale=0.05):
        return jax.random.normal(next(keys), shape, jnp.float32) * scale

    def zeros(shape):
        return jnp.zeros(shape, jnp.float32)

    def ones(shape):
        return jnp.ones(shape, jnp.float32)

    params = {"embed_w": w((F_IN, DIM)), "embed_b": zeros((1, DIM)), "layers": []}
    for _ in range(DEPTH):
        layer = {
            "ff1_g": ones((1, DIM)), "ff1_b": zeros((1, DIM)),
            "ff1_w1": w((DIM, FF_DIM)), "ff1_b1": zeros((1, FF_DIM)),
            "ff1_w2": w((FF_DIM, DIM)), "ff1_b2": zeros((1, DIM)),
            "attn_g": ones((1, DIM)), "attn_b": zeros((1, DIM)),
            "attn_wqkv": w((DIM, 3 * ATTN_INNER)),
            "attn_wout": w((ATTN_INNER, DIM)),
            "conv_g": ones((1, DIM)), "conv_b": zeros((1, DIM)),
            "conv_w1": w((DIM, 2 * CONV_INNER)), "conv_b1": zeros((1, 2 * CONV_INNER)),
            "conv_wdw": w((CONV_K, CONV_INNER)), "conv_bdw": zeros((1, CONV_INNER)),
            "bn_g": ones((1, CONV_INNER)), "bn_b": zeros((1, CONV_INNER)),
            "bn_m": zeros((1, CONV_INNER)), "bn_v": ones((1, CONV_INNER)),
            "conv_w2": w((CONV_INNER, DIM)), "conv_b2": zeros((1, DIM)),
            "ff2_g": ones((1, DIM)), "ff2_b": zeros((1, DIM)),
            "ff2_w1": w((DIM, FF_DIM)), "ff2_b1": zeros((1, FF_DIM)),
            "ff2_w2": w((FF_DIM, DIM)), "ff2_b2": zeros((1, DIM)),
            "post_g": ones((1, DIM)), "post_b": zeros((1, DIM)),
        }
        params["layers"].append(layer)
    return params


def pack_params(params):
    bf16 = jnp.bfloat16

    def pad_row(v):
        v = v.reshape(-1)
        return jnp.pad(v, (0, VEC_W - v.shape[0]))

    def fold_g(g, W):                               # LN gamma folded into rows of W
        return g.reshape(-1, 1) * W

    vec_layers, stacks = [], {k: [] for k in
                              ("ff1_w1", "ff1_w2", "wqkv", "wout", "conv_w1",
                               "conv_wdw", "conv_w2", "ff2_w1", "ff2_w2")}
    for lyr in params["layers"]:
        bn_scale = lyr["bn_g"] * jax.lax.rsqrt(lyr["bn_v"] + BN_EPS)
        bn_bias = lyr["bn_b"] + (lyr["conv_bdw"] - lyr["bn_m"]) * bn_scale
        vals = {
            "ff1_b1": lyr["ff1_b"] @ lyr["ff1_w1"] + lyr["ff1_b1"],
            "ff1_b2": (0.5 * SKIP) * lyr["ff1_b2"],
            "qkv_b": lyr["attn_b"] @ lyr["attn_wqkv"],
            "conv_b1": lyr["conv_b"] @ lyr["conv_w1"] + lyr["conv_b1"],
            "bn_scale": bn_scale, "bn_bias": bn_bias,
            "conv_b2": SKIP * lyr["conv_b2"],
            "ff2_b1": lyr["ff2_b"] @ lyr["ff2_w1"] + lyr["ff2_b1"],
            "ff2_b2": (0.5 * SKIP) * lyr["ff2_b2"],
            "post_g": lyr["post_g"], "post_b": lyr["post_b"],
        }
        vec_layers.append(jnp.stack([pad_row(vals[n]) for n in VEC_ORDER], axis=0))

        stacks["ff1_w1"].append(fold_g(lyr["ff1_g"][0], lyr["ff1_w1"]))
        stacks["ff1_w2"].append((0.5 * SKIP) * lyr["ff1_w2"])
        stacks["wqkv"].append(fold_g(lyr["attn_g"][0], lyr["attn_wqkv"]))
        stacks["wout"].append(SKIP * lyr["attn_wout"])
        stacks["conv_w1"].append(fold_g(lyr["conv_g"][0], lyr["conv_w1"]))
        stacks["conv_wdw"].append(lyr["conv_wdw"])          # stays f32 (VPU FMAs)
        stacks["conv_w2"].append(SKIP * lyr["conv_w2"])
        stacks["ff2_w1"].append(fold_g(lyr["ff2_g"][0], lyr["ff2_w1"]))
        stacks["ff2_w2"].append((0.5 * SKIP) * lyr["ff2_w2"])

    vec_slab = jnp.stack(vec_layers, axis=0)                # (DEPTH, rows, 384) f32

    def S(name, dtype=bf16):
        return jnp.stack(stacks[name], axis=0).astype(dtype)

    cos, sin = rope_cache(T)
    cosf = jnp.tile(cos, (B, HEADS))                        # (BT, ATTN_INNER)
    sinf = jnp.tile(sin, (B, HEADS))

    return (params["embed_w"].astype(bf16), params["embed_b"], vec_slab,
            S("ff1_w1"), S("ff1_w2"), S("wqkv"), S("wout"),
            S("conv_w1"), S("conv_wdw", jnp.float32), S("conv_w2"),
            S("ff2_w1"), S("ff2_w2"),
            cosf, sinf, make_rope_rot_matrix().astype(bf16), make_batch_mask())


# --------------------------------- main ----------------------------------------
if __name__ == "__main__":
    key = jax.random.PRNGKey(0)
    kx, kp = jax.random.split(key)
    x_inp = jax.random.normal(kx, (B, T, F_IN), jnp.float32)
    params = init_params(kp)
    packed = pack_params(params)

    fwd = jax.jit(encoder_forward)
    out = jax.block_until_ready(fwd(x_inp, packed))

    assert out.shape == (B, T, DIM), out.shape
    assert bool(jnp.all(jnp.isfinite(out)))
    print("KERNEL_OK")
</pallas_src>

<mosaic_0001>
module attributes {stable_mosaic.version = 11 : i64} {
  func.func @encoder_kernel(%arg0: i32, %arg1: memref<32x32xf32, #tpu.memory_space<vmem>>, %arg2: memref<32x64xbf16, #tpu.memory_space<vmem>>, %arg3: memref<1x64xf32, #tpu.memory_space<vmem>>, %arg4: memref<1x11x384xf32, #tpu.memory_space<vmem>>, %arg5: memref<1x64x256xbf16, #tpu.memory_space<vmem>>, %arg6: memref<1x256x64xbf16, #tpu.memory_space<vmem>>, %arg7: memref<1x64x384xbf16, #tpu.memory_space<vmem>>, %arg8: memref<1x128x64xbf16, #tpu.memory_space<vmem>>, %arg9: memref<1x64x256xbf16, #tpu.memory_space<vmem>>, %arg10: memref<1x15x128xf32, #tpu.memory_space<vmem>>, %arg11: memref<1x128x64xbf16, #tpu.memory_space<vmem>>, %arg12: memref<1x64x256xbf16, #tpu.memory_space<vmem>>, %arg13: memref<1x256x64xbf16, #tpu.memory_space<vmem>>, %arg14: memref<32x128xf32, #tpu.memory_space<vmem>>, %arg15: memref<32x128xf32, #tpu.memory_space<vmem>>, %arg16: memref<128x128xbf16, #tpu.memory_space<vmem>>, %arg17: memref<32x32xf32, #tpu.memory_space<vmem>>, %arg18: memref<32x64xf32, #tpu.memory_space<vmem>>, %arg19: memref<32x64xf32, #tpu.memory_space<vmem>>, %arg20: memref<2x32x128xf32, #tpu.memory_space<vmem>>) attributes {dimension_semantics = [#tpu.dimension_semantics<arbitrary>], iteration_bounds = array<i64: 2>, scalar_prefetch = 0 : i64, scratch_operands = 2 : i64, tpu.core_type = #tpu.core_type<tc>, window_params = [{pipeline_mode = #tpu.pipeline_mode<synchronous>, transform_indices = @transform_0, window_bounds = array<i64: 32, 32>}, {pipeline_mode = #tpu.pipeline_mode<synchronous>, transform_indices = @transform_1, window_bounds = array<i64: 32, 64>}, {pipeline_mode = #tpu.pipeline_mode<synchronous>, transform_indices = @transform_2, window_bounds = array<i64: 1, 64>}, {transform_indices = @transform_3, window_bounds = array<i64: 1, 11, 384>}, {transform_indices = @transform_4, window_bounds = array<i64: 1, 64, 256>}, {transform_indices = @transform_5, window_bounds = array<i64: 1, 256, 64>}, {transform_indices = @transform_6, window_bounds = array<i64: 1, 64, 384>}, {transform_indices = @transform_7, window_bounds = array<i64: 1, 128, 64>}, {transform_indices = @transform_8, window_bounds = array<i64: 1, 64, 256>}, {transform_indices = @transform_9, window_bounds = array<i64: 1, 15, 128>}, {transform_indices = @transform_10, window_bounds = array<i64: 1, 128, 64>}, {transform_indices = @transform_11, window_bounds = array<i64: 1, 64, 256>}, {transform_indices = @transform_12, window_bounds = array<i64: 1, 256, 64>}, {pipeline_mode = #tpu.pipeline_mode<synchronous>, transform_indices = @transform_13, window_bounds = array<i64: 32, 128>}, {pipeline_mode = #tpu.pipeline_mode<synchronous>, transform_indices = @transform_14, window_bounds = array<i64: 32, 128>}, {pipeline_mode = #tpu.pipeline_mode<synchronous>, transform_indices = @transform_15, window_bounds = array<i64: 128, 128>}, {pipeline_mode = #tpu.pipeline_mode<synchronous>, transform_indices = @transform_16, window_bounds = array<i64: 32, 32>}, {pipeline_mode = #tpu.pipeline_mode<synchronous>, transform_indices = @transform_17, window_bounds = array<i64: 32, 64>}]} {
    %c0_i32 = arith.constant 0 : i32
    %0 = arith.cmpi eq, %arg0, %c0_i32 : i32
    %1 = arith.extui %0 : i1 to i32
    %c0_i32_0 = arith.constant 0 : i32
    %2 = arith.cmpi ne, %1, %c0_i32_0 : i32
    scf.if %2 {
      %cst_217 = arith.constant 0.000000e+00 : f32
      %435 = vector.broadcast %cst_217 : f32 to vector<2x32x128xf32>
      %c0_218 = arith.constant 0 : index
      %c0_219 = arith.constant 0 : index
      %c0_220 = arith.constant 0 : index
      %436 = vector.load %arg20[%c0_218, %c0_219, %c0_220] : memref<2x32x128xf32, #tpu.memory_space<vmem>>, vector<2x32x128xf32>
      tpu.vector_store %arg20[%c0_218, %c0_219, %c0_220], %435 {strides = array<i32>} : memref<2x32x128xf32, #tpu.memory_space<vmem>>, vector<2x32x128xf32>,
      %c0_221 = arith.constant 0 : index
      %c0_222 = arith.constant 0 : index
      %437 = vector.load %arg1[%c0_221, %c0_222] : memref<32x32xf32, #tpu.memory_space<vmem>>, vector<32x32xf32>
      %438 = arith.truncf %437 : vector<32x32xf32> to vector<32x32xbf16>
      %c0_223 = arith.constant 0 : index
      %c0_224 = arith.constant 0 : index
      %439 = vector.load %arg2[%c0_223, %c0_224] : memref<32x64xbf16, #tpu.memory_space<vmem>>, vector<32x64xbf16>
      %cst_225 = arith.constant dense<0.000000e+00> : vector<32x64xf32>
      %440 = tpu.matmul %438, %439, %cst_225 {dimension_numbers = #tpu.dot_dimension_numbers<[1], [0], [0], [1], [0, 0, 1, 1], [], []>} : vector<32x32xbf16>, vector<32x64xbf16>, vector<32x64xf32> -> vector<32x64xf32>
      %c0_226 = arith.constant 0 : index
      %c0_227 = arith.constant 0 : index
      %441 = vector.load %arg3[%c0_226, %c0_227] : memref<1x64xf32, #tpu.memory_space<vmem>>, vector<1x64xf32>
      %442 = vector.broadcast %441 : vector<1x64xf32> to vector<32x64xf32>
      %443 = arith.addf %440, %442 : vector<32x64xf32>
      %c0_228 = arith.constant 0 : index
      %c0_229 = arith.constant 0 : index
      %444 = vector.load %arg19[%c0_228, %c0_229] : memref<32x64xf32, #tpu.memory_space<vmem>>, vector<32x64xf32>
      tpu.vector_store %arg19[%c0_228, %c0_229], %443 {strides = array<i32>} : memref<32x64xf32, #tpu.memory_space<vmem>>, vector<32x64xf32>,
    } else {
    }
    %c0 = arith.constant 0 : index
    %c0_1 = arith.constant 0 : index
    %3 = vector.load %arg19[%c0, %c0_1] : memref<32x64xf32, #tpu.memory_space<vmem>>, vector<32x64xf32>
    %c0_2 = arith.constant 0 : index
    %c0_3 = arith.constant 0 : index
    %c0_4 = arith.constant 0 : index
    %4 = vector.load %arg4[%c0_2, %c0_3, %c0_4] : memref<1x11x384xf32, #tpu.memory_space<vmem>>, vector<1x1x256xf32>
    %5 = vector.shape_cast %4 : vector<1x1x256xf32> to vector<1x256xf32>
    %c0_5 = arith.constant 0 : index
    %c1 = arith.constant 1 : index
    %c0_6 = arith.constant 0 : index
    %6 = vector.load %arg4[%c0_5, %c1, %c0_6] : memref<1x11x384xf32, #tpu.memory_space<vmem>>, vector<1x1x64xf32>
    %7 = vector.shape_cast %6 : vector<1x1x64xf32> to vector<1x64xf32>
    %cst = arith.constant dense<0.000000e+00> : vector<32xf32>
    %8 = vector.multi_reduction <add>, %3, %cst [1] : vector<32x64xf32> to vector<32xf32>
    %9 = vector.shape_cast %8 : vector<32xf32> to vector<32x1xf32>
    %cst_7 = arith.constant 6.400000e+01 : f32
    %10 = vector.broadcast %cst_7 : f32 to vector<32x1xf32>
    %11 = arith.divf %9, %10 : vector<32x1xf32>
    %12 = vector.broadcast %11 : vector<32x1xf32> to vector<32x64xf32>
    %13 = arith.subf %3, %12 : vector<32x64xf32>
    %14 = arith.mulf %13, %13 : vector<32x64xf32>
    %cst_8 = arith.constant dense<0.000000e+00> : vector<32xf32>
    %15 = vector.multi_reduction <add>, %14, %cst_8 [1] : vector<32x64xf32> to vector<32xf32>
    %16 = vector.shape_cast %15 : vector<32xf32> to vector<32x1xf32>
    %cst_9 = arith.constant 6.400000e+01 : f32
    %17 = vector.broadcast %cst_9 : f32 to vector<32x1xf32>
    %18 = arith.divf %16, %17 : vector<32x1xf32>
    %19 = vector.broadcast %11 : vector<32x1xf32> to vector<32x64xf32>
    %20 = arith.subf %3, %19 : vector<32x64xf32>
    %cst_10 = arith.constant 9.99999974E-6 : f32
    %21 = vector.broadcast %cst_10 : f32 to vector<32x1xf32>
    %22 = arith.addf %18, %21 : vector<32x1xf32>
    %23 = math.rsqrt %22 : vector<32x1xf32>
    %24 = vector.broadcast %23 : vector<32x1xf32> to vector<32x64xf32>
    %25 = arith.mulf %20, %24 : vector<32x64xf32>
    %26 = arith.truncf %25 : vector<32x64xf32> to vector<32x64xbf16>
    %c0_11 = arith.constant 0 : index
    %c0_12 = arith.constant 0 : index
    %c0_13 = arith.constant 0 : index
    %27 = vector.load %arg5[%c0_11, %c0_12, %c0_13] : memref<1x64x256xbf16, #tpu.memory_space<vmem>>, vector<1x64x256xbf16>
    %28 = vector.shape_cast %27 : vector<1x64x256xbf16> to vector<64x256xbf16>
    %cst_14 = arith.constant dense<0.000000e+00> : vector<32x256xf32>
    %29 = tpu.matmul %26, %28, %cst_14 {dimension_numbers = #tpu.dot_dimension_numbers<[1], [0], [0], [1], [0, 0, 1, 1], [], []>} : vector<32x64xbf16>, vector<64x256xbf16>, vector<32x256xf32> -> vector<32x256xf32>
    %30 = vector.broadcast %5 : vector<1x256xf32> to vector<32x256xf32>
    %31 = arith.addf %29, %30 : vector<32x256xf32>
    %32 = arith.negf %31 : vector<32x256xf32>
    %33 = math.exp %32 : vector<32x256xf32>
    %cst_15 = arith.constant 1.000000e+00 : f32
    %34 = vector.broadcast %cst_15 : f32 to vector<32x256xf32>
    %35 = arith.addf %34, %33 : vector<32x256xf32>
    %36 = arith.divf %34, %35 : vector<32x256xf32>
    %37 = arith.mulf %31, %36 : vector<32x256xf32>
    %38 = arith.truncf %37 : vector<32x256xf32> to vector<32x256xbf16>
    %c0_16 = arith.constant 0 : index
    %c0_17 = arith.constant 0 : index
    %c0_18 = arith.constant 0 : index
    %39 = vector.load %arg6[%c0_16, %c0_17, %c0_18] : memref<1x256x64xbf16, #tpu.memory_space<vmem>>, vector<1x256x64xbf16>
    %40 = vector.shape_cast %39 : vector<1x256x64xbf16> to vector<256x64xbf16>
    %cst_19 = arith.constant dense<0.000000e+00> : vector<32x64xf32>
    %41 = tpu.matmul %38, %40, %cst_19 {dimension_numbers = #tpu.dot_dimension_numbers<[1], [0], [0], [1], [0, 0, 1, 1], [], []>} : vector<32x256xbf16>, vector<256x64xbf16>, vector<32x64xf32> -> vector<32x64xf32>
    %42 = vector.broadcast %7 : vector<1x64xf32> to vector<32x64xf32>
    %43 = arith.addf %41, %42 : vector<32x64xf32>
    %44 = arith.addf %3, %43 : vector<32x64xf32>
    %cst_20 = arith.constant dense<0.000000e+00> : vector<32xf32>
    %45 = vector.multi_reduction <add>, %44, %cst_20 [1] : vector<32x64xf32> to vector<32xf32>
    %46 = vector.shape_cast %45 : vector<32xf32> to vector<32x1xf32>
    %cst_21 = arith.constant 6.400000e+01 : f32
    %47 = vector.broadcast %cst_21 : f32 to vector<32x1xf32>
    %48 = arith.divf %46, %47 : vector<32x1xf32>
    %49 = vector.broadcast %48 : vector<32x1xf32> to vector<32x64xf32>
    %50 = arith.subf %44, %49 : vector<32x64xf32>
    %51 = arith.mulf %50, %50 : vector<32x64xf32>
    %cst_22 = arith.constant dense<0.000000e+00> : vector<32xf32>
    %52 = vector.multi_reduction <add>, %51, %cst_22 [1] : vector<32x64xf32> to vector<32xf32>
    %53 = vector.shape_cast %52 : vector<32xf32> to vector<32x1xf32>
    %cst_23 = arith.constant 6.400000e+01 : f32
    %54 = vector.broadcast %cst_23 : f32 to vector<32x1xf32>
    %55 = arith.divf %53, %54 : vector<32x1xf32>
    %56 = vector.broadcast %48 : vector<32x1xf32> to vector<32x64xf32>
    %57 = arith.subf %44, %56 : vector<32x64xf32>
    %cst_24 = arith.constant 9.99999974E-6 : f32
    %58 = vector.broadcast %cst_24 : f32 to vector<32x1xf32>
    %59 = arith.addf %55, %58 : vector<32x1xf32>
    %60 = math.rsqrt %59 : vector<32x1xf32>
    %61 = vector.broadcast %60 : vector<32x1xf32> to vector<32x64xf32>
    %62 = arith.mulf %57, %61 : vector<32x64xf32>
    %63 = arith.truncf %62 : vector<32x64xf32> to vector<32x64xbf16>
    %c0_25 = arith.constant 0 : index
    %c0_26 = arith.constant 0 : index
    %c0_27 = arith.constant 0 : index
    %64 = vector.load %arg7[%c0_25, %c0_26, %c0_27] : memref<1x64x384xbf16, #tpu.memory_space<vmem>>, vector<1x64x384xbf16>
    %65 = vector.shape_cast %64 : vector<1x64x384xbf16> to vector<64x384xbf16>
    %cst_28 = arith.constant dense<0.000000e+00> : vector<32x384xf32>
    %66 = tpu.matmul %63, %65, %cst_28 {dimension_numbers = #tpu.dot_dimension_numbers<[1], [0], [0], [1], [0, 0, 1, 1], [], []>} : vector<32x64xbf16>, vector<64x384xbf16>, vector<32x384xf32> -> vector<32x384xf32>
    %c0_29 = arith.constant 0 : index
    %c2 = arith.constant 2 : index
    %c0_30 = arith.constant 0 : index
    %67 = vector.load %arg4[%c0_29, %c2, %c0_30] : memref<1x11x384xf32, #tpu.memory_space<vmem>>, vector<1x1x384xf32>
    %68 = vector.shape_cast %67 : vector<1x1x384xf32> to vector<1x384xf32>
    %69 = vector.broadcast %68 : vector<1x384xf32> to vector<32x384xf32>
    %70 = arith.addf %66, %69 : vector<32x384xf32>
    %71 = vector.extract_strided_slice %70 {offsets = [0, 0], sizes = [32, 128], strides = [1, 1]} : vector<32x384xf32> to vector<32x128xf32>
    %72 = vector.extract_strided_slice %70 {offsets = [0, 128], sizes = [32, 128], strides = [1, 1]} : vector<32x384xf32> to vector<32x128xf32>
    %73 = vector.extract_strided_slice %70 {offsets = [0, 256], sizes = [32, 128], strides = [1, 1]} : vector<32x384xf32> to vector<32x128xf32>
    %c0_31 = arith.constant 0 : index
    %c0_32 = arith.constant 0 : index
    %74 = vector.load %arg14[%c0_31, %c0_32] : memref<32x128xf32, #tpu.memory_space<vmem>>, vector<32x128xf32>
    %c0_33 = arith.constant 0 : index
    %c0_34 = arith.constant 0 : index
    %75 = vector.load %arg15[%c0_33, %c0_34] : memref<32x128xf32, #tpu.memory_space<vmem>>, vector<32x128xf32>
    %c0_35 = arith.constant 0 : index
    %c0_36 = arith.constant 0 : index
    %76 = vector.load %arg16[%c0_35, %c0_36] : memref<128x128xbf16, #tpu.memory_space<vmem>>, vector<128x128xbf16>
    %77 = arith.mulf %71, %74 : vector<32x128xf32>
    %78 = arith.truncf %71 : vector<32x128xf32> to vector<32x128xbf16>
    %cst_37 = arith.constant dense<0.000000e+00> : vector<32x128xf32>
    %79 = tpu.matmul %78, %76, %cst_37 {dimension_numbers = #tpu.dot_dimension_numbers<[1], [0], [0], [1], [0, 0, 1, 1], [], []>} : vector<32x128xbf16>, vector<128x128xbf16>, vector<32x128xf32> -> vector<32x128xf32>
    %80 = arith.mulf %79, %75 : vector<32x128xf32>
    %81 = arith.addf %77, %80 : vector<32x128xf32>
    %82 = arith.mulf %72, %74 : vector<32x128xf32>
    %83 = arith.truncf %72 : vector<32x128xf32> to vector<32x128xbf16>
    %cst_38 = arith.constant dense<0.000000e+00> : vector<32x128xf32>
    %84 = tpu.matmul %83, %76, %cst_38 {dimension_numbers = #tpu.dot_dimension_numbers<[1], [0], [0], [1], [0, 0, 1, 1], [], []>} : vector<32x128xbf16>, vector<128x128xbf16>, vector<32x128xf32> -> vector<32x128xf32>
    %85 = arith.mulf %84, %75 : vector<32x128xf32>
    %86 = arith.addf %82, %85 : vector<32x128xf32>
    %c0_39 = arith.constant 0 : index
    %c0_40 = arith.constant 0 : index
    %87 = vector.load %arg17[%c0_39, %c0_40] : memref<32x32xf32, #tpu.memory_space<vmem>>, vector<32x32xf32>
    %cst_41 = arith.constant 0.000000e+00 : f32
    %88 = vector.broadcast %cst_41 : f32 to vector<32x64xf32>
    %89 = vector.extract_strided_slice %81 {offsets = [0, 0], sizes = [32, 32], strides = [1, 1]} : vector<32x128xf32> to vector<32x32xf32>
    %90 = arith.truncf %89 : vector<32x32xf32> to vector<32x32xbf16>
    %91 = vector.extract_strided_slice %86 {offsets = [0, 0], sizes = [32, 32], strides = [1, 1]} : vector<32x128xf32> to vector<32x32xf32>
    %92 = arith.truncf %91 : vector<32x32xf32> to vector<32x32xbf16>
    %cst_42 = arith.constant dense<0.000000e+00> : vector<32x32xf32>
    %93 = tpu.matmul %90, %92, %cst_42 {dimension_numbers = #tpu.dot_dimension_numbers<[1], [1], [0], [0], [0, 0, 1, 0], [], []>} : vector<32x32xbf16>, vector<32x32xbf16>, vector<32x32xf32> -> vector<32x32xf32>
    %cst_43 = arith.constant 0.176776692 : f32
    %94 = vector.broadcast %cst_43 : f32 to vector<32x32xf32>
    %95 = arith.mulf %93, %94 : vector<32x32xf32>
    %96 = arith.addf %95, %87 : vector<32x32xf32>
    %cst_44 = arith.constant dense<0xFF800000> : vector<32xf32>
    %97 = vector.multi_reduction <maximumf>, %96, %cst_44 [1] : vector<32x32xf32> to vector<32xf32>
    %98 = vector.shape_cast %97 : vector<32xf32> to vector<32x1xf32>
    %99 = vector.broadcast %98 : vector<32x1xf32> to vector<32x32xf32>
    %100 = arith.subf %96, %99 : vector<32x32xf32>
    %101 = math.exp %100 : vector<32x32xf32>
    %cst_45 = arith.constant dense<0.000000e+00> : vector<32xf32>
    %102 = vector.multi_reduction <add>, %101, %cst_45 [1] : vector<32x32xf32> to vector<32xf32>
    %103 = vector.shape_cast %102 : vector<32xf32> to vector<32x1xf32>
    %104 = tpu.reciprocal %103 {approx = true} : vector<32x1xf32> -> vector<32x1xf32>
    %105 = vector.broadcast %104 : vector<32x1xf32> to vector<32x32xf32>
    %106 = arith.mulf %101, %105 : vector<32x32xf32>
    %107 = arith.truncf %106 : vector<32x32xf32> to vector<32x32xbf16>
    %108 = vector.extract_strided_slice %73 {offsets = [0, 0], sizes = [32, 32], strides = [1, 1]} : vector<32x128xf32> to vector<32x32xf32>
    %109 = arith.truncf %108 : vector<32x32xf32> to vector<32x32xbf16>
    %cst_46 = arith.constant dense<0.000000e+00> : vector<32x32xf32>
    %110 = tpu.matmul %107, %109, %cst_46 {dimension_numbers = #tpu.dot_dimension_numbers<[1], [0], [0], [1], [0, 0, 1, 1], [], []>} : vector<32x32xbf16>, vector<32x32xbf16>, vector<32x32xf32> -> vector<32x32xf32>
    %111 = arith.truncf %110 : vector<32x32xf32> to vector<32x32xbf16>
    %c0_47 = arith.constant 0 : index
    %c0_48 = arith.constant 0 : index
    %c0_49 = arith.constant 0 : index
    %112 = vector.load %arg8[%c0_47, %c0_48, %c0_49] : memref<1x128x64xbf16, #tpu.memory_space<vmem>>, vector<1x32x64xbf16>
    %113 = vector.shape_cast %112 : vector<1x32x64xbf16> to vector<32x64xbf16>
    %cst_50 = arith.constant dense<0.000000e+00> : vector<32x64xf32>
    %114 = tpu.matmul %111, %113, %cst_50 {dimension_numbers = #tpu.dot_dimension_numbers<[1], [0], [0], [1], [0, 0, 1, 1], [], []>} : vector<32x32xbf16>, vector<32x64xbf16>, vector<32x64xf32> -> vector<32x64xf32>
    %115 = arith.addf %88, %114 : vector<32x64xf32>
    %116 = vector.extract_strided_slice %81 {offsets = [0, 32], sizes = [32, 32], strides = [1, 1]} : vector<32x128xf32> to vector<32x32xf32>
    %117 = arith.truncf %116 : vector<32x32xf32> to vector<32x32xbf16>
    %118 = vector.extract_strided_slice %86 {offsets = [0, 32], sizes = [32, 32], strides = [1, 1]} : vector<32x128xf32> to vector<32x32xf32>
    %119 = arith.truncf %118 : vector<32x32xf32> to vector<32x32xbf16>
    %cst_51 = arith.constant dense<0.000000e+00> : vector<32x32xf32>
    %120 = tpu.matmul %117, %119, %cst_51 {dimension_numbers = #tpu.dot_dimension_numbers<[1], [1], [0], [0], [0, 0, 1, 0], [], []>} : vector<32x32xbf16>, vector<32x32xbf16>, vector<32x32xf32> -> vector<32x32xf32>
    %cst_52 = arith.constant 0.176776692 : f32
    %121 = vector.broadcast %cst_52 : f32 to vector<32x32xf32>
    %122 = arith.mulf %120, %121 : vector<32x32xf32>
    %123 = arith.addf %122, %87 : vector<32x32xf32>
    %cst_53 = arith.constant dense<0xFF800000> : vector<32xf32>
    %124 = vector.multi_reduction <maximumf>, %123, %cst_53 [1] : vector<32x32xf32> to vector<32xf32>
    %125 = vector.shape_cast %124 : vector<32xf32> to vector<32x1xf32>
    %126 = vector.broadcast %125 : vector<32x1xf32> to vector<32x32xf32>
    %127 = arith.subf %123, %126 : vector<32x32xf32>
    %128 = math.exp %127 : vector<32x32xf32>
    %cst_54 = arith.constant dense<0.000000e+00> : vector<32xf32>
    %129 = vector.multi_reduction <add>, %128, %cst_54 [1] : vector<32x32xf32> to vector<32xf32>
    %130 = vector.shape_cast %129 : vector<32xf32> to vector<32x1xf32>
    %131 = tpu.reciprocal %130 {approx = true} : vector<32x1xf32> -> vector<32x1xf32>
    %132 = vector.broadcast %131 : vector<32x1xf32> to vector<32x32xf32>
    %133 = arith.mulf %128, %132 : vector<32x32xf32>
    %134 = arith.truncf %133 : vector<32x32xf32> to vector<32x32xbf16>
    %135 = vector.extract_strided_slice %73 {offsets = [0, 32], sizes = [32, 32], strides = [1, 1]} : vector<32x128xf32> to vector<32x32xf32>
    %136 = arith.truncf %135 : vector<32x32xf32> to vector<32x32xbf16>
    %cst_55 = arith.constant dense<0.000000e+00> : vector<32x32xf32>
    %137 = tpu.matmul %134, %136, %cst_55 {dimension_numbers = #tpu.dot_dimension_numbers<[1], [0], [0], [1], [0, 0, 1, 1], [], []>} : vector<32x32xbf16>, vector<32x32xbf16>, vector<32x32xf32> -> vector<32x32xf32>
    %138 = arith.truncf %137 : vector<32x32xf32> to vector<32x32xbf16>
    %c0_56 = arith.constant 0 : index
    %c32 = arith.constant 32 : index
    %c0_57 = arith.constant 0 : index
    %139 = vector.load %arg8[%c0_56, %c32, %c0_57] : memref<1x128x64xbf16, #tpu.memory_space<vmem>>, vector<1x32x64xbf16>
    %140 = vector.shape_cast %139 : vector<1x32x64xbf16> to vector<32x64xbf16>
    %cst_58 = arith.constant dense<0.000000e+00> : vector<32x64xf32>
    %141 = tpu.matmul %138, %140, %cst_58 {dimension_numbers = #tpu.dot_dimension_numbers<[1], [0], [0], [1], [0, 0, 1, 1], [], []>} : vector<32x32xbf16>, vector<32x64xbf16>, vector<32x64xf32> -> vector<32x64xf32>
    %142 = arith.addf %115, %141 : vector<32x64xf32>
    %143 = vector.extract_strided_slice %81 {offsets = [0, 64], sizes = [32, 32], strides = [1, 1]} : vector<32x128xf32> to vector<32x32xf32>
    %144 = arith.truncf %143 : vector<32x32xf32> to vector<32x32xbf16>
    %145 = vector.extract_strided_slice %86 {offsets = [0, 64], sizes = [32, 32], strides = [1, 1]} : vector<32x128xf32> to vector<32x32xf32>
    %146 = arith.truncf %145 : vector<32x32xf32> to vector<32x32xbf16>
    %cst_59 = arith.constant dense<0.000000e+00> : vector<32x32xf32>
    %147 = tpu.matmul %144, %146, %cst_59 {dimension_numbers = #tpu.dot_dimension_numbers<[1], [1], [0], [0], [0, 0, 1, 0], [], []>} : vector<32x32xbf16>, vector<32x32xbf16>, vector<32x32xf32> -> vector<32x32xf32>
    %cst_60 = arith.constant 0.176776692 : f32
    %148 = vector.broadcast %cst_60 : f32 to vector<32x32xf32>
    %149 = arith.mulf %147, %148 : vector<32x32xf32>
    %150 = arith.addf %149, %87 : vector<32x32xf32>
    %cst_61 = arith.constant dense<0xFF800000> : vector<32xf32>
    %151 = vector.multi_reduction <maximumf>, %150, %cst_61 [1] : vector<32x32xf32> to vector<32xf32>
    %152 = vector.shape_cast %151 : vector<32xf32> to vector<32x1xf32>
    %153 = vector.broadcast %152 : vector<32x1xf32> to vector<32x32xf32>
    %154 = arith.subf %150, %153 : vector<32x32xf32>
    %155 = math.exp %154 : vector<32x32xf32>
    %cst_62 = arith.constant dense<0.000000e+00> : vector<32xf32>
    %156 = vector.multi_reduction <add>, %155, %cst_62 [1] : vector<32x32xf32> to vector<32xf32>
    %157 = vector.shape_cast %156 : vector<32xf32> to vector<32x1xf32>
    %158 = tpu.reciprocal %157 {approx = true} : vector<32x1xf32> -> vector<32x1xf32>
    %159 = vector.broadcast %158 : vector<32x1xf32> to vector<32x32xf32>
    %160 = arith.mulf %155, %159 : vector<32x32xf32>
    %161 = arith.truncf %160 : vector<32x32xf32> to vector<32x32xbf16>
    %162 = vector.extract_strided_slice %73 {offsets = [0, 64], sizes = [32, 32], strides = [1, 1]} : vector<32x128xf32> to vector<32x32xf32>
    %163 = arith.truncf %162 : vector<32x32xf32> to vector<32x32xbf16>
    %cst_63 = arith.constant dense<0.000000e+00> : vector<32x32xf32>
    %164 = tpu.matmul %161, %163, %cst_63 {dimension_numbers = #tpu.dot_dimension_numbers<[1], [0], [0], [1], [0, 0, 1, 1], [], []>} : vector<32x32xbf16>, vector<32x32xbf16>, vector<32x32xf32> -> vector<32x32xf32>
    %165 = arith.truncf %164 : vector<32x32xf32> to vector<32x32xbf16>
    %c0_64 = arith.constant 0 : index
    %c64 = arith.constant 64 : index
    %c0_65 = arith.constant 0 : index
    %166 = vector.load %arg8[%c0_64, %c64, %c0_65] : memref<1x128x64xbf16, #tpu.memory_space<vmem>>, vector<1x32x64xbf16>
    %167 = vector.shape_cast %166 : vector<1x32x64xbf16> to vector<32x64xbf16>
    %cst_66 = arith.constant dense<0.000000e+00> : vector<32x64xf32>
    %168 = tpu.matmul %165, %167, %cst_66 {dimension_numbers = #tpu.dot_dimension_numbers<[1], [0], [0], [1], [0, 0, 1, 1], [], []>} : vector<32x32xbf16>, vector<32x64xbf16>, vector<32x64xf32> -> vector<32x64xf32>
    %169 = arith.addf %142, %168 : vector<32x64xf32>
    %170 = vector.extract_strided_slice %81 {offsets = [0, 96], sizes = [32, 32], strides = [1, 1]} : vector<32x128xf32> to vector<32x32xf32>
    %171 = arith.truncf %170 : vector<32x32xf32> to vector<32x32xbf16>
    %172 = vector.extract_strided_slice %86 {offsets = [0, 96], sizes = [32, 32], strides = [1, 1]} : vector<32x128xf32> to vector<32x32xf32>
    %173 = arith.truncf %172 : vector<32x32xf32> to vector<32x32xbf16>
    %cst_67 = arith.constant dense<0.000000e+00> : vector<32x32xf32>
    %174 = tpu.matmul %171, %173, %cst_67 {dimension_numbers = #tpu.dot_dimension_numbers<[1], [1], [0], [0], [0, 0, 1, 0], [], []>} : vector<32x32xbf16>, vector<32x32xbf16>, vector<32x32xf32> -> vector<32x32xf32>
    %cst_68 = arith.constant 0.176776692 : f32
    %175 = vector.broadcast %cst_68 : f32 to vector<32x32xf32>
    %176 = arith.mulf %174, %175 : vector<32x32xf32>
    %177 = arith.addf %176, %87 : vector<32x32xf32>
    %cst_69 = arith.constant dense<0xFF800000> : vector<32xf32>
    %178 = vector.multi_reduction <maximumf>, %177, %cst_69 [1] : vector<32x32xf32> to vector<32xf32>
    %179 = vector.shape_cast %178 : vector<32xf32> to vector<32x1xf32>
    %180 = vector.broadcast %179 : vector<32x1xf32> to vector<32x32xf32>
    %181 = arith.subf %177, %180 : vector<32x32xf32>
    %182 = math.exp %181 : vector<32x32xf32>
    %cst_70 = arith.constant dense<0.000000e+00> : vector<32xf32>
    %183 = vector.multi_reduction <add>, %182, %cst_70 [1] : vector<32x32xf32> to vector<32xf32>
    %184 = vector.shape_cast %183 : vector<32xf32> to vector<32x1xf32>
    %185 = tpu.reciprocal %184 {approx = true} : vector<32x1xf32> -> vector<32x1xf32>
    %186 = vector.broadcast %185 : vector<32x1xf32> to vector<32x32xf32>
    %187 = arith.mulf %182, %186 : vector<32x32xf32>
    %188 = arith.truncf %187 : vector<32x32xf32> to vector<32x32xbf16>
    %189 = vector.extract_strided_slice %73 {offsets = [0, 96], sizes = [32, 32], strides = [1, 1]} : vector<32x128xf32> to vector<32x32xf32>
    %190 = arith.truncf %189 : vector<32x32xf32> to vector<32x32xbf16>
    %cst_71 = arith.constant dense<0.000000e+00> : vector<32x32xf32>
    %191 = tpu.matmul %188, %190, %cst_71 {dimension_numbers = #tpu.dot_dimension_numbers<[1], [0], [0], [1], [0, 0, 1, 1], [], []>} : vector<32x32xbf16>, vector<32x32xbf16>, vector<32x32xf32> -> vector<32x32xf32>
    %192 = arith.truncf %191 : vector<32x32xf32> to vector<32x32xbf16>
    %c0_72 = arith.constant 0 : index
    %c96 = arith.constant 96 : index
    %c0_73 = arith.constant 0 : index
    %193 = vector.load %arg8[%c0_72, %c96, %c0_73] : memref<1x128x64xbf16, #tpu.memory_space<vmem>>, vector<1x32x64xbf16>
    %194 = vector.shape_cast %193 : vector<1x32x64xbf16> to vector<32x64xbf16>
    %cst_74 = arith.constant dense<0.000000e+00> : vector<32x64xf32>
    %195 = tpu.matmul %192, %194, %cst_74 {dimension_numbers = #tpu.dot_dimension_numbers<[1], [0], [0], [1], [0, 0, 1, 1], [], []>} : vector<32x32xbf16>, vector<32x64xbf16>, vector<32x64xf32> -> vector<32x64xf32>
    %196 = arith.addf %169, %195 : vector<32x64xf32>
    %197 = arith.addf %44, %196 : vector<32x64xf32>
    %cst_75 = arith.constant dense<0.000000e+00> : vector<32xf32>
    %198 = vector.multi_reduction <add>, %197, %cst_75 [1] : vector<32x64xf32> to vector<32xf32>
    %199 = vector.shape_cast %198 : vector<32xf32> to vector<32x1xf32>
    %cst_76 = arith.constant 6.400000e+01 : f32
    %200 = vector.broadcast %cst_76 : f32 to vector<32x1xf32>
    %201 = arith.divf %199, %200 : vector<32x1xf32>
    %202 = vector.broadcast %201 : vector<32x1xf32> to vector<32x64xf32>
    %203 = arith.subf %197, %202 : vector<32x64xf32>
    %204 = arith.mulf %203, %203 : vector<32x64xf32>
    %cst_77 = arith.constant dense<0.000000e+00> : vector<32xf32>
    %205 = vector.multi_reduction <add>, %204, %cst_77 [1] : vector<32x64xf32> to vector<32xf32>
    %206 = vector.shape_cast %205 : vector<32xf32> to vector<32x1xf32>
    %cst_78 = arith.constant 6.400000e+01 : f32
    %207 = vector.broadcast %cst_78 : f32 to vector<32x1xf32>
    %208 = arith.divf %206, %207 : vector<32x1xf32>
    %209 = vector.broadcast %201 : vector<32x1xf32> to vector<32x64xf32>
    %210 = arith.subf %197, %209 : vector<32x64xf32>
    %cst_79 = arith.constant 9.99999974E-6 : f32
    %211 = vector.broadcast %cst_79 : f32 to vector<32x1xf32>
    %212 = arith.addf %208, %211 : vector<32x1xf32>
    %213 = math.rsqrt %212 : vector<32x1xf32>
    %214 = vector.broadcast %213 : vector<32x1xf32> to vector<32x64xf32>
    %215 = arith.mulf %210, %214 : vector<32x64xf32>
    %216 = arith.truncf %215 : vector<32x64xf32> to vector<32x64xbf16>
    %c0_80 = arith.constant 0 : index
    %c0_81 = arith.constant 0 : index
    %c0_82 = arith.constant 0 : index
    %217 = vector.load %arg9[%c0_80, %c0_81, %c0_82] : memref<1x64x256xbf16, #tpu.memory_space<vmem>>, vector<1x64x256xbf16>
    %218 = vector.shape_cast %217 : vector<1x64x256xbf16> to vector<64x256xbf16>
    %cst_83 = arith.constant dense<0.000000e+00> : vector<32x256xf32>
    %219 = tpu.matmul %216, %218, %cst_83 {dimension_numbers = #tpu.dot_dimension_numbers<[1], [0], [0], [1], [0, 0, 1, 1], [], []>} : vector<32x64xbf16>, vector<64x256xbf16>, vector<32x256xf32> -> vector<32x256xf32>
    %c0_84 = arith.constant 0 : index
    %c3 = arith.constant 3 : index
    %c0_85 = arith.constant 0 : index
    %220 = vector.load %arg4[%c0_84, %c3, %c0_85] : memref<1x11x384xf32, #tpu.memory_space<vmem>>, vector<1x1x256xf32>
    %221 = vector.shape_cast %220 : vector<1x1x256xf32> to vector<1x256xf32>
    %222 = vector.broadcast %221 : vector<1x256xf32> to vector<32x256xf32>
    %223 = arith.addf %219, %222 : vector<32x256xf32>
    %224 = vector.extract_strided_slice %223 {offsets = [0, 0], sizes = [32, 128], strides = [1, 1]} : vector<32x256xf32> to vector<32x128xf32>
    %225 = vector.extract_strided_slice %223 {offsets = [0, 128], sizes = [32, 128], strides = [1, 1]} : vector<32x256xf32> to vector<32x128xf32>
    %226 = arith.negf %225 : vector<32x128xf32>
    %227 = math.exp %226 : vector<32x128xf32>
    %cst_86 = arith.constant 1.000000e+00 : f32
    %228 = vector.broadcast %cst_86 : f32 to vector<32x128xf32>
    %229 = arith.addf %228, %227 : vector<32x128xf32>
    %230 = arith.divf %228, %229 : vector<32x128xf32>
    %231 = arith.mulf %224, %230 : vector<32x128xf32>
    %232 = vector.shape_cast %231 : vector<32x128xf32> to vector<2x16x128xf32>
    %c0_87 = arith.constant 0 : index
    %c8 = arith.constant 8 : index
    %c0_88 = arith.constant 0 : index
    %233 = vector.load %arg20[%c0_87, %c8, %c0_88] : memref<2x32x128xf32, #tpu.memory_space<vmem>>, vector<2x16x128xf32>
    tpu.vector_store %arg20[%c0_87, %c8, %c0_88], %232 {strides = array<i32>} : memref<2x32x128xf32, #tpu.memory_space<vmem>>, vector<2x16x128xf32>,
    %cst_89 = arith.constant 0.000000e+00 : f32
    %234 = vector.broadcast %cst_89 : f32 to vector<2x16x128xf32>
    %c0_90 = arith.constant 0 : index
    %c1_91 = arith.constant 1 : index
    %c0_92 = arith.constant 0 : index
    %235 = vector.load %arg20[%c0_90, %c1_91, %c0_92] : memref<2x32x128xf32, #tpu.memory_space<vmem>>, vector<2x16x128xf32>
    %c0_93 = arith.constant 0 : index
    %c0_94 = arith.constant 0 : index
    %c0_95 = arith.constant 0 : index
    %236 = vector.load %arg10[%c0_93, %c0_94, %c0_95] : memref<1x15x128xf32, #tpu.memory_space<vmem>>, vector<1x1x128xf32>
    %237 = vector.shape_cast %236 : vector<1x1x128xf32> to vector<1x128xf32>
    %238 = vector.shape_cast %237 : vector<1x128xf32> to vector<1x1x128xf32>
    %239 = vector.broadcast %238 : vector<1x1x128xf32> to vector<2x16x128xf32>
    %240 = arith.mulf %235, %239 : vector<2x16x128xf32>
    %241 = arith.addf %234, %240 : vector<2x16x128xf32>
    %c0_96 = arith.constant 0 : index
    %c2_97 = arith.constant 2 : index
    %c0_98 = arith.constant 0 : index
    %242 = vector.load %arg20[%c0_96, %c2_97, %c0_98] : memref<2x32x128xf32, #tpu.memory_space<vmem>>, vector<2x16x128xf32>
    %c0_99 = arith.constant 0 : index
    %c1_100 = arith.constant 1 : index
    %c0_101 = arith.constant 0 : index
    %243 = vector.load %arg10[%c0_99, %c1_100, %c0_101] : memref<1x15x128xf32, #tpu.memory_space<vmem>>, vector<1x1x128xf32>
    %244 = vector.shape_cast %243 : vector<1x1x128xf32> to vector<1x128xf32>
    %245 = vector.shape_cast %244 : vector<1x128xf32> to vector<1x1x128xf32>
    %246 = vector.broadcast %245 : vector<1x1x128xf32> to vector<2x16x128xf32>
    %247 = arith.mulf %242, %246 : vector<2x16x128xf32>
    %248 = arith.addf %241, %247 : vector<2x16x128xf32>
    %c0_102 = arith.constant 0 : index
    %c3_103 = arith.constant 3 : index
    %c0_104 = arith.constant 0 : index
    %249 = vector.load %arg20[%c0_102, %c3_103, %c0_104] : memref<2x32x128xf32, #tpu.memory_space<vmem>>, vector<2x16x128xf32>
    %c0_105 = arith.constant 0 : index
    %c2_106 = arith.constant 2 : index
    %c0_107 = arith.constant 0 : index
    %250 = vector.load %arg10[%c0_105, %c2_106, %c0_107] : memref<1x15x128xf32, #tpu.memory_space<vmem>>, vector<1x1x128xf32>
    %251 = vector.shape_cast %250 : vector<1x1x128xf32> to vector<1x128xf32>
    %252 = vector.shape_cast %251 : vector<1x128xf32> to vector<1x1x128xf32>
    %253 = vector.broadcast %252 : vector<1x1x128xf32> to vector<2x16x128xf32>
    %254 = arith.mulf %249, %253 : vector<2x16x128xf32>
    %255 = arith.addf %248, %254 : vector<2x16x128xf32>
    %c0_108 = arith.constant 0 : index
    %c4 = arith.constant 4 : index
    %c0_109 = arith.constant 0 : index
    %256 = vector.load %arg20[%c0_108, %c4, %c0_109] : memref<2x32x128xf32, #tpu.memory_space<vmem>>, vector<2x16x128xf32>
    %c0_110 = arith.constant 0 : index
    %c3_111 = arith.constant 3 : index
    %c0_112 = arith.constant 0 : index
    %257 = vector.load %arg10[%c0_110, %c3_111, %c0_112] : memref<1x15x128xf32, #tpu.memory_space<vmem>>, vector<1x1x128xf32>
    %258 = vector.shape_cast %257 : vector<1x1x128xf32> to vector<1x128xf32>
    %259 = vector.shape_cast %258 : vector<1x128xf32> to vector<1x1x128xf32>
    %260 = vector.broadcast %259 : vector<1x1x128xf32> to vector<2x16x128xf32>
    %261 = arith.mulf %256, %260 : vector<2x16x128xf32>
    %262 = arith.addf %255, %261 : vector<2x16x128xf32>
    %c0_113 = arith.constant 0 : index
    %c5 = arith.constant 5 : index
    %c0_114 = arith.constant 0 : index
    %263 = vector.load %arg20[%c0_113, %c5, %c0_114] : memref<2x32x128xf32, #tpu.memory_space<vmem>>, vector<2x16x128xf32>
    %c0_115 = arith.constant 0 : index
    %c4_116 = arith.constant 4 : index
    %c0_117 = arith.constant 0 : index
    %264 = vector.load %arg10[%c0_115, %c4_116, %c0_117] : memref<1x15x128xf32, #tpu.memory_space<vmem>>, vector<1x1x128xf32>
    %265 = vector.shape_cast %264 : vector<1x1x128xf32> to vector<1x128xf32>
    %266 = vector.shape_cast %265 : vector<1x128xf32> to vector<1x1x128xf32>
    %267 = vector.broadcast %266 : vector<1x1x128xf32> to vector<2x16x128xf32>
    %268 = arith.mulf %263, %267 : vector<2x16x128xf32>
    %269 = arith.addf %262, %268 : vector<2x16x128xf32>
    %c0_118 = arith.constant 0 : index
    %c6 = arith.constant 6 : index
    %c0_119 = arith.constant 0 : index
    %270 = vector.load %arg20[%c0_118, %c6, %c0_119] : memref<2x32x128xf32, #tpu.memory_space<vmem>>, vector<2x16x128xf32>
    %c0_120 = arith.constant 0 : index
    %c5_121 = arith.constant 5 : index
    %c0_122 = arith.constant 0 : index
    %271 = vector.load %arg10[%c0_120, %c5_121, %c0_122] : memref<1x15x128xf32, #tpu.memory_space<vmem>>, vector<1x1x128xf32>
    %272 = vector.shape_cast %271 : vector<1x1x128xf32> to vector<1x128xf32>
    %273 = vector.shape_cast %272 : vector<1x128xf32> to vector<1x1x128xf32>
    %274 = vector.broadcast %273 : vector<1x1x128xf32> to vector<2x16x128xf32>
    %275 = arith.mulf %270, %274 : vector<2x16x128xf32>
    %276 = arith.addf %269, %275 : vector<2x16x128xf32>
    %c0_123 = arith.constant 0 : index
    %c7 = arith.constant 7 : index
    %c0_124 = arith.constant 0 : index
    %277 = vector.load %arg20[%c0_123, %c7, %c0_124] : memref<2x32x128xf32, #tpu.memory_space<vmem>>, vector<2x16x128xf32>
    %c0_125 = arith.constant 0 : index
    %c6_126 = arith.constant 6 : index
    %c0_127 = arith.constant 0 : index
    %278 = vector.load %arg10[%c0_125, %c6_126, %c0_127] : memref<1x15x128xf32, #tpu.memory_space<vmem>>, vector<1x1x128xf32>
    %279 = vector.shape_cast %278 : vector<1x1x128xf32> to vector<1x128xf32>
    %280 = vector.shape_cast %279 : vector<1x128xf32> to vector<1x1x128xf32>
    %281 = vector.broadcast %280 : vector<1x1x128xf32> to vector<2x16x128xf32>
    %282 = arith.mulf %277, %281 : vector<2x16x128xf32>
    %283 = arith.addf %276, %282 : vector<2x16x128xf32>
    %c0_128 = arith.constant 0 : index
    %c8_129 = arith.constant 8 : index
    %c0_130 = arith.constant 0 : index
    %284 = vector.load %arg20[%c0_128, %c8_129, %c0_130] : memref<2x32x128xf32, #tpu.memory_space<vmem>>, vector<2x16x128xf32>
    %c0_131 = arith.constant 0 : index
    %c7_132 = arith.constant 7 : index
    %c0_133 = arith.constant 0 : index
    %285 = vector.load %arg10[%c0_131, %c7_132, %c0_133] : memref<1x15x128xf32, #tpu.memory_space<vmem>>, vector<1x1x128xf32>
    %286 = vector.shape_cast %285 : vector<1x1x128xf32> to vector<1x128xf32>
    %287 = vector.shape_cast %286 : vector<1x128xf32> to vector<1x1x128xf32>
    %288 = vector.broadcast %287 : vector<1x1x128xf32> to vector<2x16x128xf32>
    %289 = arith.mulf %284, %288 : vector<2x16x128xf32>
    %290 = arith.addf %283, %289 : vector<2x16x128xf32>
    %c0_134 = arith.constant 0 : index
    %c9 = arith.constant 9 : index
    %c0_135 = arith.constant 0 : index
    %291 = vector.load %arg20[%c0_134, %c9, %c0_135] : memref<2x32x128xf32, #tpu.memory_space<vmem>>, vector<2x16x128xf32>
    %c0_136 = arith.constant 0 : index
    %c8_137 = arith.constant 8 : index
    %c0_138 = arith.constant 0 : index
    %292 = vector.load %arg10[%c0_136, %c8_137, %c0_138] : memref<1x15x128xf32, #tpu.memory_space<vmem>>, vector<1x1x128xf32>
    %293 = vector.shape_cast %292 : vector<1x1x128xf32> to vector<1x128xf32>
    %294 = vector.shape_cast %293 : vector<1x128xf32> to vector<1x1x128xf32>
    %295 = vector.broadcast %294 : vector<1x1x128xf32> to vector<2x16x128xf32>
    %296 = arith.mulf %291, %295 : vector<2x16x128xf32>
    %297 = arith.addf %290, %296 : vector<2x16x128xf32>
    %c0_139 = arith.constant 0 : index
    %c10 = arith.constant 10 : index
    %c0_140 = arith.constant 0 : index
    %298 = vector.load %arg20[%c0_139, %c10, %c0_140] : memref<2x32x128xf32, #tpu.memory_space<vmem>>, vector<2x16x128xf32>
    %c0_141 = arith.constant 0 : index
    %c9_142 = arith.constant 9 : index
    %c0_143 = arith.constant 0 : index
    %299 = vector.load %arg10[%c0_141, %c9_142, %c0_143] : memref<1x15x128xf32, #tpu.memory_space<vmem>>, vector<1x1x128xf32>
    %300 = vector.shape_cast %299 : vector<1x1x128xf32> to vector<1x128xf32>
    %301 = vector.shape_cast %300 : vector<1x128xf32> to vector<1x1x128xf32>
    %302 = vector.broadcast %301 : vector<1x1x128xf32> to vector<2x16x128xf32>
    %303 = arith.mulf %298, %302 : vector<2x16x128xf32>
    %304 = arith.addf %297, %303 : vector<2x16x128xf32>
    %c0_144 = arith.constant 0 : index
    %c11 = arith.constant 11 : index
    %c0_145 = arith.constant 0 : index
    %305 = vector.load %arg20[%c0_144, %c11, %c0_145] : memref<2x32x128xf32, #tpu.memory_space<vmem>>, vector<2x16x128xf32>
    %c0_146 = arith.constant 0 : index
    %c10_147 = arith.constant 10 : index
    %c0_148 = arith.constant 0 : index
    %306 = vector.load %arg10[%c0_146, %c10_147, %c0_148] : memref<1x15x128xf32, #tpu.memory_space<vmem>>, vector<1x1x128xf32>
    %307 = vector.shape_cast %306 : vector<1x1x128xf32> to vector<1x128xf32>
    %308 = vector.shape_cast %307 : vector<1x128xf32> to vector<1x1x128xf32>
    %309 = vector.broadcast %308 : vector<1x1x128xf32> to vector<2x16x128xf32>
    %310 = arith.mulf %305, %309 : vector<2x16x128xf32>
    %311 = arith.addf %304, %310 : vector<2x16x128xf32>
    %c0_149 = arith.constant 0 : index
    %c12 = arith.constant 12 : index
    %c0_150 = arith.constant 0 : index
    %312 = vector.load %arg20[%c0_149, %c12, %c0_150] : memref<2x32x128xf32, #tpu.memory_space<vmem>>, vector<2x16x128xf32>
    %c0_151 = arith.constant 0 : index
    %c11_152 = arith.constant 11 : index
    %c0_153 = arith.constant 0 : index
    %313 = vector.load %arg10[%c0_151, %c11_152, %c0_153] : memref<1x15x128xf32, #tpu.memory_space<vmem>>, vector<1x1x128xf32>
    %314 = vector.shape_cast %313 : vector<1x1x128xf32> to vector<1x128xf32>
    %315 = vector.shape_cast %314 : vector<1x128xf32> to vector<1x1x128xf32>
    %316 = vector.broadcast %315 : vector<1x1x128xf32> to vector<2x16x128xf32>
    %317 = arith.mulf %312, %316 : vector<2x16x128xf32>
    %318 = arith.addf %311, %317 : vector<2x16x128xf32>
    %c0_154 = arith.constant 0 : index
    %c13 = arith.constant 13 : index
    %c0_155 = arith.constant 0 : index
    %319 = vector.load %arg20[%c0_154, %c13, %c0_155] : memref<2x32x128xf32, #tpu.memory_space<vmem>>, vector<2x16x128xf32>
    %c0_156 = arith.constant 0 : index
    %c12_157 = arith.constant 12 : index
    %c0_158 = arith.constant 0 : index
    %320 = vector.load %arg10[%c0_156, %c12_157, %c0_158] : memref<1x15x128xf32, #tpu.memory_space<vmem>>, vector<1x1x128xf32>
    %321 = vector.shape_cast %320 : vector<1x1x128xf32> to vector<1x128xf32>
    %322 = vector.shape_cast %321 : vector<1x128xf32> to vector<1x1x128xf32>
    %323 = vector.broadcast %322 : vector<1x1x128xf32> to vector<2x16x128xf32>
    %324 = arith.mulf %319, %323 : vector<2x16x128xf32>
    %325 = arith.addf %318, %324 : vector<2x16x128xf32>
    %c0_159 = arith.constant 0 : index
    %c14 = arith.constant 14 : index
    %c0_160 = arith.constant 0 : index
    %326 = vector.load %arg20[%c0_159, %c14, %c0_160] : memref<2x32x128xf32, #tpu.memory_space<vmem>>, vector<2x16x128xf32>
    %c0_161 = arith.constant 0 : index
    %c13_162 = arith.constant 13 : index
    %c0_163 = arith.constant 0 : index
    %327 = vector.load %arg10[%c0_161, %c13_162, %c0_163] : memref<1x15x128xf32, #tpu.memory_space<vmem>>, vector<1x1x128xf32>
    %328 = vector.shape_cast %327 : vector<1x1x128xf32> to vector<1x128xf32>
    %329 = vector.shape_cast %328 : vector<1x128xf32> to vector<1x1x128xf32>
    %330 = vector.broadcast %329 : vector<1x1x128xf32> to vector<2x16x128xf32>
    %331 = arith.mulf %326, %330 : vector<2x16x128xf32>
    %332 = arith.addf %325, %331 : vector<2x16x128xf32>
    %c0_164 = arith.constant 0 : index
    %c15 = arith.constant 15 : index
    %c0_165 = arith.constant 0 : index
    %333 = vector.load %arg20[%c0_164, %c15, %c0_165] : memref<2x32x128xf32, #tpu.memory_space<vmem>>, vector<2x16x128xf32>
    %c0_166 = arith.constant 0 : index
    %c14_167 = arith.constant 14 : index
    %c0_168 = arith.constant 0 : index
    %334 = vector.load %arg10[%c0_166, %c14_167, %c0_168] : memref<1x15x128xf32, #tpu.memory_space<vmem>>, vector<1x1x128xf32>
    %335 = vector.shape_cast %334 : vector<1x1x128xf32> to vector<1x128xf32>
    %336 = vector.shape_cast %335 : vector<1x128xf32> to vector<1x1x128xf32>
    %337 = vector.broadcast %336 : vector<1x1x128xf32> to vector<2x16x128xf32>
    %338 = arith.mulf %333, %337 : vector<2x16x128xf32>
    %339 = arith.addf %332, %338 : vector<2x16x128xf32>
    %340 = vector.shape_cast %339 : vector<2x16x128xf32> to vector<32x128xf32>
    %c0_169 = arith.constant 0 : index
    %c4_170 = arith.constant 4 : index
    %c0_171 = arith.constant 0 : index
    %341 = vector.load %arg4[%c0_169, %c4_170, %c0_171] : memref<1x11x384xf32, #tpu.memory_space<vmem>>, vector<1x1x128xf32>
    %342 = vector.shape_cast %341 : vector<1x1x128xf32> to vector<1x128xf32>
    %343 = vector.broadcast %342 : vector<1x128xf32> to vector<32x128xf32>
    %344 = arith.mulf %340, %343 : vector<32x128xf32>
    %c0_172 = arith.constant 0 : index
    %c5_173 = arith.constant 5 : index
    %c0_174 = arith.constant 0 : index
    %345 = vector.load %arg4[%c0_172, %c5_173, %c0_174] : memref<1x11x384xf32, #tpu.memory_space<vmem>>, vector<1x1x128xf32>
    %346 = vector.shape_cast %345 : vector<1x1x128xf32> to vector<1x128xf32>
    %347 = vector.broadcast %346 : vector<1x128xf32> to vector<32x128xf32>
    %348 = arith.addf %344, %347 : vector<32x128xf32>
    %349 = arith.negf %348 : vector<32x128xf32>
    %350 = math.exp %349 : vector<32x128xf32>
    %cst_175 = arith.constant 1.000000e+00 : f32
    %351 = vector.broadcast %cst_175 : f32 to vector<32x128xf32>
    %352 = arith.addf %351, %350 : vector<32x128xf32>
    %353 = arith.divf %351, %352 : vector<32x128xf32>
    %354 = arith.mulf %348, %353 : vector<32x128xf32>
    %355 = arith.truncf %354 : vector<32x128xf32> to vector<32x128xbf16>
    %c0_176 = arith.constant 0 : index
    %c0_177 = arith.constant 0 : index
    %c0_178 = arith.constant 0 : index
    %356 = vector.load %arg11[%c0_176, %c0_177, %c0_178] : memref<1x128x64xbf16, #tpu.memory_space<vmem>>, vector<1x128x64xbf16>
    %357 = vector.shape_cast %356 : vector<1x128x64xbf16> to vector<128x64xbf16>
    %cst_179 = arith.constant dense<0.000000e+00> : vector<32x64xf32>
    %358 = tpu.matmul %355, %357, %cst_179 {dimension_numbers = #tpu.dot_dimension_numbers<[1], [0], [0], [1], [0, 0, 1, 1], [], []>} : vector<32x128xbf16>, vector<128x64xbf16>, vector<32x64xf32> -> vector<32x64xf32>
    %359 = arith.addf %197, %358 : vector<32x64xf32>
    %c0_180 = arith.constant 0 : index
    %c6_181 = arith.constant 6 : index
    %c0_182 = arith.constant 0 : index
    %360 = vector.load %arg4[%c0_180, %c6_181, %c0_182] : memref<1x11x384xf32, #tpu.memory_space<vmem>>, vector<1x1x64xf32>
    %361 = vector.shape_cast %360 : vector<1x1x64xf32> to vector<1x64xf32>
    %362 = vector.broadcast %361 : vector<1x64xf32> to vector<32x64xf32>
    %363 = arith.addf %359, %362 : vector<32x64xf32>
    %c0_183 = arith.constant 0 : index
    %c7_184 = arith.constant 7 : index
    %c0_185 = arith.constant 0 : index
    %364 = vector.load %arg4[%c0_183, %c7_184, %c0_185] : memref<1x11x384xf32, #tpu.memory_space<vmem>>, vector<1x1x256xf32>
    %365 = vector.shape_cast %364 : vector<1x1x256xf32> to vector<1x256xf32>
    %c0_186 = arith.constant 0 : index
    %c8_187 = arith.constant 8 : index
    %c0_188 = arith.constant 0 : index
    %366 = vector.load %arg4[%c0_186, %c8_187, %c0_188] : memref<1x11x384xf32, #tpu.memory_space<vmem>>, vector<1x1x64xf32>
    %367 = vector.shape_cast %366 : vector<1x1x64xf32> to vector<1x64xf32>
    %cst_189 = arith.constant dense<0.000000e+00> : vector<32xf32>
    %368 = vector.multi_reduction <add>, %363, %cst_189 [1] : vector<32x64xf32> to vector<32xf32>
    %369 = vector.shape_cast %368 : vector<32xf32> to vector<32x1xf32>
    %cst_190 = arith.constant 6.400000e+01 : f32
    %370 = vector.broadcast %cst_190 : f32 to vector<32x1xf32>
    %371 = arith.divf %369, %370 : vector<32x1xf32>
    %372 = vector.broadcast %371 : vector<32x1xf32> to vector<32x64xf32>
    %373 = arith.subf %363, %372 : vector<32x64xf32>
    %374 = arith.mulf %373, %373 : vector<32x64xf32>
    %cst_191 = arith.constant dense<0.000000e+00> : vector<32xf32>
    %375 = vector.multi_reduction <add>, %374, %cst_191 [1] : vector<32x64xf32> to vector<32xf32>
    %376 = vector.shape_cast %375 : vector<32xf32> to vector<32x1xf32>
    %cst_192 = arith.constant 6.400000e+01 : f32
    %377 = vector.broadcast %cst_192 : f32 to vector<32x1xf32>
    %378 = arith.divf %376, %377 : vector<32x1xf32>
    %379 = vector.broadcast %371 : vector<32x1xf32> to vector<32x64xf32>
    %380 = arith.subf %363, %379 : vector<32x64xf32>
    %cst_193 = arith.constant 9.99999974E-6 : f32
    %381 = vector.broadcast %cst_193 : f32 to vector<32x1xf32>
    %382 = arith.addf %378, %381 : vector<32x1xf32>
    %383 = math.rsqrt %382 : vector<32x1xf32>
    %384 = vector.broadcast %383 : vector<32x1xf32> to vector<32x64xf32>
    %385 = arith.mulf %380, %384 : vector<32x64xf32>
    %386 = arith.truncf %385 : vector<32x64xf32> to vector<32x64xbf16>
    %c0_194 = arith.constant 0 : index
    %c0_195 = arith.constant 0 : index
    %c0_196 = arith.constant 0 : index
    %387 = vector.load %arg12[%c0_194, %c0_195, %c0_196] : memref<1x64x256xbf16, #tpu.memory_space<vmem>>, vector<1x64x256xbf16>
    %388 = vector.shape_cast %387 : vector<1x64x256xbf16> to vector<64x256xbf16>
    %cst_197 = arith.constant dense<0.000000e+00> : vector<32x256xf32>
    %389 = tpu.matmul %386, %388, %cst_197 {dimension_numbers = #tpu.dot_dimension_numbers<[1], [0], [0], [1], [0, 0, 1, 1], [], []>} : vector<32x64xbf16>, vector<64x256xbf16>, vector<32x256xf32> -> vector<32x256xf32>
    %390 = vector.broadcast %365 : vector<1x256xf32> to vector<32x256xf32>
    %391 = arith.addf %389, %390 : vector<32x256xf32>
    %392 = arith.negf %391 : vector<32x256xf32>
    %393 = math.exp %392 : vector<32x256xf32>
    %cst_198 = arith.constant 1.000000e+00 : f32
    %394 = vector.broadcast %cst_198 : f32 to vector<32x256xf32>
    %395 = arith.addf %394, %393 : vector<32x256xf32>
    %396 = arith.divf %394, %395 : vector<32x256xf32>
    %397 = arith.mulf %391, %396 : vector<32x256xf32>
    %398 = arith.truncf %397 : vector<32x256xf32> to vector<32x256xbf16>
    %c0_199 = arith.constant 0 : index
    %c0_200 = arith.constant 0 : index
    %c0_201 = arith.constant 0 : index
    %399 = vector.load %arg13[%c0_199, %c0_200, %c0_201] : memref<1x256x64xbf16, #tpu.memory_space<vmem>>, vector<1x256x64xbf16>
    %400 = vector.shape_cast %399 : vector<1x256x64xbf16> to vector<256x64xbf16>
    %cst_202 = arith.constant dense<0.000000e+00> : vector<32x64xf32>
    %401 = tpu.matmul %398, %400, %cst_202 {dimension_numbers = #tpu.dot_dimension_numbers<[1], [0], [0], [1], [0, 0, 1, 1], [], []>} : vector<32x256xbf16>, vector<256x64xbf16>, vector<32x64xf32> -> vector<32x64xf32>
    %402 = vector.broadcast %367 : vector<1x64xf32> to vector<32x64xf32>
    %403 = arith.addf %401, %402 : vector<32x64xf32>
    %404 = arith.addf %363, %403 : vector<32x64xf32>
    %cst_203 = arith.constant dense<0.000000e+00> : vector<32xf32>
    %405 = vector.multi_reduction <add>, %404, %cst_203 [1] : vector<32x64xf32> to vector<32xf32>
    %406 = vector.shape_cast %405 : vector<32xf32> to vector<32x1xf32>
    %cst_204 = arith.constant 6.400000e+01 : f32
    %407 = vector.broadcast %cst_204 : f32 to vector<32x1xf32>
    %408 = arith.divf %406, %407 : vector<32x1xf32>
    %409 = vector.broadcast %408 : vector<32x1xf32> to vector<32x64xf32>
    %410 = arith.subf %404, %409 : vector<32x64xf32>
    %411 = arith.mulf %410, %410 : vector<32x64xf32>
    %cst_205 = arith.constant dense<0.000000e+00> : vector<32xf32>
    %412 = vector.multi_reduction <add>, %411, %cst_205 [1] : vector<32x64xf32> to vector<32xf32>
    %413 = vector.shape_cast %412 : vector<32xf32> to vector<32x1xf32>
    %cst_206 = arith.constant 6.400000e+01 : f32
    %414 = vector.broadcast %cst_206 : f32 to vector<32x1xf32>
    %415 = arith.divf %413, %414 : vector<32x1xf32>
    %416 = vector.broadcast %408 : vector<32x1xf32> to vector<32x64xf32>
    %417 = arith.subf %404, %416 : vector<32x64xf32>
    %cst_207 = arith.constant 9.99999974E-6 : f32
    %418 = vector.broadcast %cst_207 : f32 to vector<32x1xf32>
    %419 = arith.addf %415, %418 : vector<32x1xf32>
    %420 = math.rsqrt %419 : vector<32x1xf32>
    %421 = vector.broadcast %420 : vector<32x1xf32> to vector<32x64xf32>
    %422 = arith.mulf %417, %421 : vector<32x64xf32>
    %c0_208 = arith.constant 0 : index
    %c9_209 = arith.constant 9 : index
    %c0_210 = arith.constant 0 : index
    %423 = vector.load %arg4[%c0_208, %c9_209, %c0_210] : memref<1x11x384xf32, #tpu.memory_space<vmem>>, vector<1x1x64xf32>
    %424 = vector.shape_cast %423 : vector<1x1x64xf32> to vector<1x64xf32>
    %425 = vector.broadcast %424 : vector<1x64xf32> to vector<32x64xf32>
    %426 = arith.mulf %422, %425 : vector<32x64xf32>
    %c0_211 = arith.constant 0 : index
    %c10_212 = arith.constant 10 : index
    %c0_213 = arith.constant 0 : index
    %427 = vector.load %arg4[%c0_211, %c10_212, %c0_213] : memref<1x11x384xf32, #tpu.memory_space<vmem>>, vector<1x1x64xf32>
    %428 = vector.shape_cast %427 : vector<1x1x64xf32> to vector<1x64xf32>
    %429 = vector.broadcast %428 : vector<1x64xf32> to vector<32x64xf32>
    %430 = arith.addf %426, %429 : vector<32x64xf32>
    %c0_214 = arith.constant 0 : index
    %c0_215 = arith.constant 0 : index
    %431 = vector.load %arg19[%c0_214, %c0_215] : memref<32x64xf32, #tpu.memory_space<vmem>>, vector<32x64xf32>
    tpu.vector_store %arg19[%c0_214, %c0_215], %430 {strides = array<i32>} : memref<32x64xf32, #tpu.memory_space<vmem>>, vector<32x64xf32>,
    %c1_i32 = arith.constant 1 : i32
    %432 = arith.cmpi eq, %arg0, %c1_i32 : i32
    %433 = arith.extui %432 : i1 to i32
    %c0_i32_216 = arith.constant 0 : i32
    %434 = arith.cmpi ne, %433, %c0_i32_216 : i32
    scf.if %434 {
      %c0_217 = arith.constant 0 : index
      %c0_218 = arith.constant 0 : index
      %435 = vector.load %arg18[%c0_217, %c0_218] : memref<32x64xf32, #tpu.memory_space<vmem>>, vector<32x64xf32>
      tpu.vector_store %arg18[%c0_217, %c0_218], %430 {strides = array<i32>} : memref<32x64xf32, #tpu.memory_space<vmem>>, vector<32x64xf32>,
    } else {
    }
    return
  }
  func.func @transform_0(%arg0: i32) -> (i32, i32) {
    %c0_i32 = arith.constant 0 : i32
    %c0_i32_0 = arith.constant 0 : i32
    %c0_i32_1 = arith.constant 0 : i32
    return %c0_i32, %c0_i32_0 : i32, i32
  }
  func.func @transform_1(%arg0: i32) -> (i32, i32) {
    %c0_i32 = arith.constant 0 : i32
    %c0_i32_0 = arith.constant 0 : i32
    %c0_i32_1 = arith.constant 0 : i32
    return %c0_i32, %c0_i32_0 : i32, i32
  }
  func.func @transform_2(%arg0: i32) -> (i32, i32) {
    %c0_i32 = arith.constant 0 : i32
    %c0_i32_0 = arith.constant 0 : i32
    %c0_i32_1 = arith.constant 0 : i32
    return %c0_i32, %c0_i32_0 : i32, i32
  }
  func.func @transform_3(%arg0: i32) -> (i32, i32, i32) {
    %c0_i32 = arith.constant 0 : i32
    %c0_i32_0 = arith.constant 0 : i32
    %c0_i32_1 = arith.constant 0 : i32
    return %arg0, %c0_i32, %c0_i32_0 : i32, i32, i32
  }
  func.func @transform_4(%arg0: i32) -> (i32, i32, i32) {
    %c0_i32 = arith.constant 0 : i32
    %c0_i32_0 = arith.constant 0 : i32
    %c0_i32_1 = arith.constant 0 : i32
    return %arg0, %c0_i32, %c0_i32_0 : i32, i32, i32
  }
  func.func @transform_5(%arg0: i32) -> (i32, i32, i32) {
    %c0_i32 = arith.constant 0 : i32
    %c0_i32_0 = arith.constant 0 : i32
    %c0_i32_1 = arith.constant 0 : i32
    return %arg0, %c0_i32, %c0_i32_0 : i32, i32, i32
  }
  func.func @transform_6(%arg0: i32) -> (i32, i32, i32) {
    %c0_i32 = arith.constant 0 : i32
    %c0_i32_0 = arith.constant 0 : i32
    %c0_i32_1 = arith.constant 0 : i32
    return %arg0, %c0_i32, %c0_i32_0 : i32, i32, i32
  }
  func.func @transform_7(%arg0: i32) -> (i32, i32, i32) {
    %c0_i32 = arith.constant 0 : i32
    %c0_i32_0 = arith.constant 0 : i32
    %c0_i32_1 = arith.constant 0 : i32
    return %arg0, %c0_i32, %c0_i32_0 : i32, i32, i32
  }
  func.func @transform_8(%arg0: i32) -> (i32, i32, i32) {
    %c0_i32 = arith.constant 0 : i32
    %c0_i32_0 = arith.constant 0 : i32
    %c0_i32_1 = arith.constant 0 : i32
    return %arg0, %c0_i32, %c0_i32_0 : i32, i32, i32
  }
  func.func @transform_9(%arg0: i32) -> (i32, i32, i32) {
    %c0_i32 = arith.constant 0 : i32
    %c0_i32_0 = arith.constant 0 : i32
    %c0_i32_1 = arith.constant 0 : i32
    return %arg0, %c0_i32, %c0_i32_0 : i32, i32, i32
  }
  func.func @transform_10(%arg0: i32) -> (i32, i32, i32) {
    %c0_i32 = arith.constant 0 : i32
    %c0_i32_0 = arith.constant 0 : i32
    %c0_i32_1 = arith.constant 0 : i32
    return %arg0, %c0_i32, %c0_i32_0 : i32, i32, i32
  }
  func.func @transform_11(%arg0: i32) -> (i32, i32, i32) {
    %c0_i32 = arith.constant 0 : i32
    %c0_i32_0 = arith.constant 0 : i32
    %c0_i32_1 = arith.constant 0 : i32
    return %arg0, %c0_i32, %c0_i32_0 : i32, i32, i32
  }
  func.func @transform_12(%arg0: i32) -> (i32, i32, i32) {
    %c0_i32 = arith.constant 0 : i32
    %c0_i32_0 = arith.constant 0 : i32
    %c0_i32_1 = arith.constant 0 : i32
    return %arg0, %c0_i32, %c0_i32_0 : i32, i32, i32
  }
  func.func @transform_13(%arg0: i32) -> (i32, i32) {
    %c0_i32 = arith.constant 0 : i32
    %c0_i32_0 = arith.constant 0 : i32
    %c0_i32_1 = arith.constant 0 : i32
    return %c0_i32, %c0_i32_0 : i32, i32
  }
  func.func @transform_14(%arg0: i32) -> (i32, i32) {
    %c0_i32 = arith.constant 0 : i32
    %c0_i32_0 = arith.constant 0 : i32
    %c0_i32_1 = arith.constant 0 : i32
    return %c0_i32, %c0_i32_0 : i32, i32
  }
  func.func @transform_15(%arg0: i32) -> (i32, i32) {
    %c0_i32 = arith.constant 0 : i32
    %c0_i32_0 = arith.constant 0 : i32
    %c0_i32_1 = arith.constant 0 : i32
    return %c0_i32, %c0_i32_0 : i32, i32
  }
  func.func @transform_16(%arg0: i32) -> (i32, i32) {
    %c0_i32 = arith.constant 0 : i32
    %c0_i32_0 = arith.constant 0 : i32
    %c0_i32_1 = arith.constant 0 : i32
    return %c0_i32, %c0_i32_0 : i32, i32
  }
  func.func @transform_17(%arg0: i32) -> (i32, i32) {
    %c0_i32 = arith.constant 0 : i32
    %c0_i32_0 = arith.constant 0 : i32
    %c0_i32_1 = arith.constant 0 : i32
    return %c0_i32, %c0_i32_0 : i32, i32
  }
}

</mosaic_0001>

<bundles_post_ra>
// kernel: encoder_forward.1
= control target key start
LH: loop header
LB: loop body
LE: loop exit
PB: predicated region body
PF: predicated region fallthrough
CT: control target
= control target key end

     0   :  { %s5940_s0 = inlined_call_operand.vmem [shape: f32[32,32], index: 0, kind: input, shape index: {}]   ;;  %s5941_s1 = inlined_call_operand.vmem [shape: bf16[32,64], index: 1, kind: input, shape index: {}]   ;;  %s5942_s2 = inlined_call_operand.vmem [shape: f32[1,64], index: 2, kind: input, shape index: {}]   ;;  %s5943_s3 = inlined_call_operand.vmem [shape: f32[2,11,384], index: 3, kind: input, shape index: {}]   ;;  %s5944_s4 = inlined_call_operand.vmem [shape: bf16[2,64,256], index: 4, kind: input, shape index: {}]   ;;  %s5945_s5 = inlined_call_operand.vmem [shape: bf16[2,256,64], index: 5, kind: input, shape index: {}]   ;;  %s5946_s6 = inlined_call_operand.vmem [shape: bf16[2,64,384], index: 6, kind: input, shape index: {}]   ;;  %s5947_s7 = inlined_call_operand.vmem [shape: bf16[2,128,64], index: 7, kind: input, shape index: {}]   ;;  %s5948_s8 = inlined_call_operand.vmem [shape: bf16[2,64,256], index: 8, kind: input, shape index: {}]   ;;  %s5949_s9 = inlined_call_operand.vmem [shape: f32[2,15,128], index: 9, kind: input, shape index: {}]   ;;  %s5950_s10 = inlined_call_operand.vmem [shape: bf16[2,128,64], index: 10, kind: input, shape index: {}]   ;;  %s5951_s11 = inlined_call_operand.vmem [shape: bf16[2,64,256], index: 11, kind: input, shape index: {}]   ;;  %s5952_s12 = inlined_call_operand.vmem [shape: bf16[2,256,64], index: 12, kind: input, shape index: {}]   ;;  %s5953_s13 = inlined_call_operand.vmem [shape: f32[32,128], index: 13, kind: input, shape index: {}]   ;;  %s5954_s14 = inlined_call_operand.vmem [shape: f32[32,128], index: 14, kind: input, shape index: {}]   ;;  %s5955_s15 = inlined_call_operand.vmem [shape: bf16[128,128], index: 15, kind: input, shape index: {}]   ;;  %s5956_s16 = inlined_call_operand.vmem [shape: f32[32,32], index: 16, kind: input, shape index: {}]   ;;  %s5957_s17 = inlined_call_operand.hbm [shape: f32[32,64], index: 17, kind: output, shape index: {}]  }
   0x1   :  { %5964 = sst [smem:[#allocation8_spill]] %s5940_s0 }
   0x2   :  { %5965 = sst [smem:[#allocation9_spill]] %s5941_s1 }
   0x3   :  { %5966 = sst [smem:[#allocation10_spill]] %s5943_s3 }
   0x4   :  { %5967 = sst [smem:[#allocation11_spill]] %s5944_s4 }
   0x5   :  { %5968 = sst [smem:[#allocation12_spill]] %s5945_s5 }
   0x6   :  { %5969 = sst [smem:[#allocation13_spill]] %s5947_s7 }
   0x7   :  { %5970 = sst [smem:[#allocation14_spill]] %s5948_s8 }
   0x8   :  { %5971 = sst [smem:[#allocation15_spill]] %s5953_s13 }
   0x9   :  { %5972 = sst [smem:[#allocation16_spill]] %s5954_s14 }
   0xa   :  { %5973 = sst [smem:[#allocation17_spill]] %s5956_s16 }
   0xb   :  { %5974 = sst [smem:[#allocation18_spill]] %s5957_s17 }
   0xc   :  { %22 = vsyncpa [#allocation5], 0  ;;  %s4787_s24 = smov 0  }
   0xd LB: > { %5975 = sst [smem:[#allocation7_spill]] %s4687_s24  ;;  %s4793_s25 = sadd.s32 4294967295, %s4687_s24   ;;  %s4687_s24 = sphi %s4787_s24, %s28_s24  }
   0xe   : > { %p3831_p0 = scmp.ge.s32.totalorder %s4687_s24, 1  ;;  %p573_p1 = scmp.lt.s32.totalorder %s4687_s24, 3 }
  0x10   : > { %p574_p2 = pnand %p3831_p0, %p573_p1 }
  0x11   : > { %p665_p3 = scmp.lt.s32.totalorder (!%p574_p2), %s4793_s25, 1  ;;  %s5976_s4 = sld [smem:[#allocation11_spill]] (!%p574_p2) }
  0x12   : > { %577 = sbr.rel (%p574_p2) target bundleno = 4253 (0x109d), region = 88  ;;  %s5977_s3 = sld [smem:[#allocation10_spill]] (!%p574_p2) }
  0x13   : > { %s5978_s5 = sld [smem:[#allocation12_spill]] (!%p574_p2)  ;;  %p3850_p4 = scmp.ne.s32.totalorder (!%p574_p2), %s4793_s25, 0 }
  0x14   : > { %s5979_s7 = sld [smem:[#allocation13_spill]] (!%p574_p2) }
  0x15   : > { %s5980_s8 = sld [smem:[#allocation14_spill]] (!%p574_p2) }
  0x17   : > { %s666_s26 = scalar_select %p665_p3, %s4793_s25, 1 }
  0x18   : > { %s5982_s22 = sld [smem:[#allocation8_spill]] (!%p3850_p4) }
  0x19   : > { %s4407_s27 = smul.u32 48, %s666_s26  ;;  %s4303_s28 = sshll.u32 %s666_s26, 6 }
  0x1a   : > { %s4802_s30 = scalar_lea.vmem %s5976_s4, %s4303_s28  ;;  %s4304_s18 = sshll.u32 %s666_s26, 7 }
  0x1b   : > { %s4807_s20 = scalar_lea.vmem %s5977_s3, %s4407_s27  ;;  %s4812_s23 = scalar_lea.vmem %s5978_s5, %s4304_s18 }
  0x1c   : > { %s4408_s24 = smul.u32 96, %s666_s26  ;;  %s4817_s13 = scalar_lea.vmem %s5979_s7, %s4303_s28 }
  0x1d   : > { %s4822_s4 = scalar_lea.vmem %s5980_s8, %s4303_s28  ;;  %s4307_s14 = sshll.u32 %s666_s26, 4 }
  0x1e   : > { %s4827_s1 = scalar_lea.vmem %s5946_s6, %s4408_s24  ;;  %s4832_s3 = scalar_lea.vmem %s5949_s9, %s4307_s14 }
  0x1f   : > { %s4837_s17 = scalar_lea.vmem %s5950_s10, %s4303_s28  ;;  %s4842_s0 = scalar_lea.vmem %s5951_s11, %s4303_s28 }
  0x20   : > { %s4847_s24 = scalar_lea.vmem %s5952_s12, %s4304_s18  ;;  %719 = sbr.rel (%p3850_p4) target bundleno = 185 (0xb9), region = 92 }
  0x21   : > { %s5981_s27 = sld [smem:[#allocation9_spill]] (!%p3850_p4) }
  0x25   : > { %v4689_v1 = vmov 0.0   ;;  %v728_v3 = vld [vmem:[%s5982_s22] sm:$0xff]  ;;  %v729_v4 = vld [vmem:[%s5982_s22 + $0x8] sm:$0xff]  ;;  %v730_v5 = vld [vmem:[%s5982_s22 + $0x10] sm:$0xff]  ;;  %vm754_vm0 = vcmask 261120   ;;  %vm780_vm1 = vcmask 523264  }
  0x26   : > { %720 = vst [vmem:[#allocation3] sm:$0xff] %v4689_v1  ;;  %v731_v6 = vld [vmem:[%s5982_s22 + $0x18] sm:$0xff]  ;;  %v732_v7 = vpack.c.bf16 %v729_v4, %v728_v3  ;;  %v4431_v9 = vld [vmem:[%s5942_s2] ss:$0 sm:$0xff] }
  0x27   : > { %v4312_v0 = vld [vmem:[%s5981_s27 + $0x8] sm:$0xff]  ;;  %v4311_v2 = vld [vmem:[%s5981_s27] sm:$0xff]  ;;  %721 = vst [vmem:[#allocation3 + $0x8] sm:$0xff] %v4689_v1  ;;  %v733_v8 = vpack.c.bf16 %v731_v6, %v730_v5 }
  0x28   : > { %767 = vmatpush.bf16.msra.mxu0 %v4312_v0  ;;  %4405 = vmatpush.bf16.msra.mxu1 %v4312_v0  ;;  %722 = vst [vmem:[#allocation3 + $0x10] sm:$0xff] %v4689_v1 }
  0x29   : > { %723 = vst [vmem:[#allocation3 + $0x18] sm:$0xff] %v4689_v1 }
  0x2a   : > { %724 = vst [vmem:[#allocation3 + $0x20] sm:$0xff] %v4689_v1 }
  0x2b   : > { %725 = vst [vmem:[#allocation3 + $0x28] sm:$0xff] %v4689_v1 }
  0x2c   : > { %768 = vmatpush.bf16.msra.mxu0 %v4311_v2  ;;  %4406 = vmatpush.bf16.msra.mxu1 %v4311_v2  ;;  %726 = vst [vmem:[#allocation3 + $0x30] sm:$0xff] %v4689_v1 }
  0x2d   : > { %727 = vst [vmem:[#allocation3 + $0x38] sm:$0xff] %v4689_v1 }
  0x2f   : > { %3859 = vmatmul.msk.bf16.vlgmr.msra.gmra.mxu0 %vm754_vm0, %v732_v7  ;;  %3860 = vmatmul.msk.bf16.vlgmr.msra.gmra.mxu1 %vm754_vm0, %v733_v8 }
  0xac   : > { %v770_v10 = vpop.f32.mrf.mxu0  ;;  %v775_v11 = vpop.f32.mrf.mxu1 }
  0xad   : > { %v771_v12 = vadd.f32 %v4431_v9, %v770_v10  ;;  %v776_v13 = vadd.f32 %v4431_v9, %v775_v11 }
  0xaf   : > { %781 = vst.msk [vmem:[#allocation2] sm:$0xff] %vm780_vm1, %v771_v12 }
  0xb0   : > { %783 = vst.msk [vmem:[#allocation2 + $0x10] sm:$0xff] %vm780_vm1, %v776_v13 }
  0xb4   : > { %v772_v14 = vpop.f32.mrf.mxu0  ;;  %v777_v15 = vpop.f32.mrf.mxu1 }
  0xb5   : > { %v773_v16 = vadd.f32 %v4431_v9, %v772_v14  ;;  %v778_v17 = vadd.f32 %v4431_v9, %v777_v15 }
  0xb7   : > { %782 = vst.msk [vmem:[#allocation2 + $0x8] sm:$0xff] %vm780_vm1, %v773_v16 }
  0xb8   : > { %784 = vst.msk [vmem:[#allocation2 + $0x18] sm:$0xff] %vm780_vm1, %v778_v17 }
  0xb9 PF: > { %v4871_v18 = vld [vmem:[#allocation2 + $0x10] sm:$0xff]  ;;  %vm791_vm2 = vcmask 523264   ;;  %v4873_v19 = vld [vmem:[#allocation2] sm:$0xff]  ;;  %v4690_v26 = vmov 64.0   ;;  %v4320_v54 = vld [vmem:[%s4802_s30 + $0x34] sm:$0xf0] }
  0xba   : > { %v798_v20 = vsel %vm791_vm2, %v4871_v18, 0.0  ;;  %v792_v21 = vsel %vm791_vm2, %v4873_v19, 0.0  ;;  %4447 = vrcp.f32 %v4690_v26  ;;  %v3887_v53 = vld [vmem:[%s4802_s30 + $0x30] sm:$0xf]  ;;  %v4319_v55 = vld [vmem:[%s4802_s30 + $0x34] sm:$0xf] }
  0xbb   : > { %799 = vadd.xlane.f32.xlu1 %v798_v20  ;;  %793 = vadd.xlane.f32.xlu0 %v792_v21  ;;  %v3888_v56 = vor.u32 %v4320_v54, %v3887_v53  ;;  %v3889_v57 = vld [vmem:[%s4802_s30 + $0x38] sm:$0xf0]  ;;  %v3879_v59 = vld [vmem:[%s4802_s30 + $0x20] sm:$0xf]  ;;  %v4318_v60 = vld [vmem:[%s4802_s30 + $0x24] sm:$0xf0] }
  0xbc   : > { %v3892_v58 = vor.u32 %v4319_v55, %v3889_v57  ;;  %v4317_v61 = vld [vmem:[%s4802_s30 + $0x24] sm:$0xf]  ;;  %v3880_v62 = vor.u32 %v4318_v60, %v3879_v59  ;;  %v3881_v63 = vld [vmem:[%s4802_s30 + $0x28] sm:$0xf0]  ;;  %v3871_v1 = vld [vmem:[%s4802_s30 + $0x10] sm:$0xf] }
  0xbd   : > { %952 = vmatpush.bf16.msra.mxu0 %v3888_v56  ;;  %v3884_v0 = vor.u32 %v4317_v61, %v3881_v63  ;;  %v4316_v2 = vld [vmem:[%s4802_s30 + $0x14] sm:$0xf0]  ;;  %v4315_v3 = vld [vmem:[%s4802_s30 + $0x14] sm:$0xf]  ;;  %v3873_v5 = vld [vmem:[%s4802_s30 + $0x18] sm:$0xf0] }
  0xbe   : > { %v4881_v23 = vld [vmem:[#allocation2 + $0x8] sm:$0xff]  ;;  %971 = vmatpush.bf16.msra.mxu1 %v3892_v58  ;;  %v3872_v4 = vor.u32 %v4316_v2, %v3871_v1  ;;  %v3876_v6 = vor.u32 %v4315_v3, %v3873_v5  ;;  %v3863_v7 = vld [vmem:[%s4802_s30] sm:$0xf]  ;;  %v4313_v9 = vld [vmem:[%s4802_s30 + $0x4] sm:$0xf]  ;;  %s5997_s7 = sld [smem:[#allocation16_spill]] }
  0xbf   : > { %v4879_v22 = vld [vmem:[#allocation2 + $0x18] sm:$0xff]  ;;  %v795_v25 = vsel %vm791_vm2, %v4881_v23, 0.0  ;;  %v4314_v8 = vld [vmem:[%s4802_s30 + $0x4] sm:$0xf0]  ;;  %v3865_v11 = vld [vmem:[%s4802_s30 + $0x8] sm:$0xf0] }
  0xc0   : > { %v801_v24 = vsel %vm791_vm2, %v4879_v22, 0.0  ;;  %v4448_v27 = vpop.eup %4447  ;;  %v3864_v10 = vor.u32 %v4314_v8, %v3863_v7  ;;  %v3868_v12 = vor.u32 %v4313_v9, %v3865_v11  ;;  %v4328_v2 = vld [vmem:[%s4812_s23 + $0x38] sm:$0xff]  ;;  %v4335_v5 = vld [vmem:[%s4812_s23 + $0x70] sm:$0xff]  ;;  %v4325_v7 = vld [vmem:[%s4812_s23 + $0x20] sm:$0xff]  ;;  %s5998_s18 = sld [smem:[#allocation15_spill]]  ;;  %s4691_s21 = smov 96  }
  0xc1   : > { %v805_v28 = vmul.f32 64.0, %v4448_v27  ;;  %vm809_vm3 = vweird.f32 %v4448_v27  ;;  %953 = vmatpush.bf16.msra.mxu0 %v3880_v62  ;;  %v4336_v3 = vld [vmem:[%s4812_s23 + $0x78] sm:$0xff]  ;;  %1278 = vmatpush.bf16.msra.mxu2 %v4328_v2  ;;  %v4333_v8 = vld [vmem:[%s4812_s23 + $0x60] sm:$0xff]  ;;  %s5999_s26 = sld [smem:[#allocation17_spill]]  ;;  %s4692_s28 = smov 32  }
  0xc2   : > { %972 = vmatpush.bf16.msra.mxu1 %v3884_v0  ;;  %1297 = vmatpush.bf16.msra.mxu3 %v4336_v3  ;;  %v4324_v11 = vld [vmem:[%s4812_s23 + $0x18] sm:$0xff]  ;;  %s4693_s8 = smov 64   ;;  %p4298_p5 = scmp.ne.s32.totalorder %s4793_s25, 1 }
  0xc3   : > { %802 = vadd.xlane.f32.xlu1 %v801_v24  ;;  %796 = vadd.xlane.f32.xlu0 %v795_v25  ;;  %v806_v29 = vsub.f32 1.0, %v805_v28 }
  0xc5   : > { %v807_v30 = vmul.f32 %v4448_v27, %v806_v29  ;;  %954 = vmatpush.bf16.msra.mxu0 %v3872_v4  ;;  %v4327_v4 = vld [vmem:[%s4812_s23 + $0x30] sm:$0xff] }
  0xc6   : > { %973 = vmatpush.bf16.msra.mxu1 %v3876_v6  ;;  %1279 = vmatpush.bf16.msra.mxu2 %v4327_v4  ;;  %v789_v6 = vld [vmem:[%s4807_s20] ss:$8 sm:$0x3] }
  0xc7   : > { %v808_v31 = vadd.f32 %v4448_v27, %v807_v30  ;;  %1298 = vmatpush.bf16.msra.mxu3 %v4335_v5  ;;  %v898_v9 = vperm.slane %v789_v6, 0 }
  0xc9   : > { %v4887_v32 = vsel %vm809_vm3, %v4448_v27, %v808_v31  ;;  %955 = vmatpush.bf16.msra.mxu0 %v3864_v10  ;;  %v899_v10 = vperm.slane %v789_v6, 1 }
  0xca   : > { %974 = vmatpush.bf16.msra.mxu1 %v3868_v12  ;;  %v4332_v12 = vld [vmem:[%s4812_s23 + $0x58] sm:$0xff] }
 0x12e   : > { %v800_v33 = vpop.xlane.xlu1 %799  ;;  %v794_v34 = vpop.xlane.xlu0 %793 }
 0x12f   : > { %v813_v35 = vmul.f32 %v4887_v32, %v800_v33  ;;  %v811_v36 = vmul.f32 %v4887_v32, %v794_v34 }
 0x131   : > { %v4892_v37 = vsub.f32 %v4871_v18, %v813_v35  ;;  %v4895_v38 = vsub.f32 %v4873_v19, %v811_v36 }
 0x133   : > { %v821_v39 = vmul.f32 %v4892_v37, %v4892_v37  ;;  %v819_v40 = vmul.f32 %v4895_v38, %v4895_v38 }
 0x135   : > { %v829_v41 = vsel %vm791_vm2, %v821_v39, 0.0  ;;  %v823_v42 = vsel %vm791_vm2, %v819_v40, 0.0 }
 0x136   : > { %v803_v43 = vpop.xlane.xlu1 %802  ;;  %830 = vadd.xlane.f32.xlu0 %v829_v41  ;;  %824 = vadd.xlane.f32.xlu2 %v823_v42  ;;  %v797_v44 = vpop.xlane.xlu0 %796 }
 0x137   : > { %v814_v45 = vmul.f32 %v4887_v32, %v803_v43  ;;  %v812_v46 = vmul.f32 %v4887_v32, %v797_v44 }
 0x139   : > { %v4906_v47 = vsub.f32 %v4879_v22, %v814_v45  ;;  %v4909_v48 = vsub.f32 %v4881_v23, %v812_v46 }
 0x13b   : > { %v822_v49 = vmul.f32 %v4906_v47, %v4906_v47  ;;  %v820_v50 = vmul.f32 %v4909_v48, %v4909_v48 }
 0x13d   : > { %v832_v51 = vsel %vm791_vm2, %v822_v49, 0.0  ;;  %v826_v52 = vsel %vm791_vm2, %v820_v50, 0.0 }
 0x13e   : > { %833 = vadd.xlane.f32.xlu1 %v832_v51  ;;  %827 = vadd.xlane.f32.xlu2 %v826_v52 }
 0x1a9   : > { %v825_v13 = vpop.xlane.xlu2 %824  ;;  %v831_v16 = vpop.xlane.xlu0 %830 }
 0x1aa   : > { %v835_v14 = vmul.f32 %v825_v13, %v4887_v32  ;;  %v837_v17 = vmul.f32 %v831_v16, %v4887_v32 }
 0x1ac   : > { %v839_v15 = vadd.f32 1e-05, %v835_v14  ;;  %v841_v30 = vadd.f32 1e-05, %v837_v17  ;;  %v4323_v17 = vld [vmem:[%s4812_s23 + $0x10] sm:$0xff] }
 0x1ae   : > { %4449 = vrsqrt.f32 %v839_v15  ;;  %vm849_vm5 = vweird.f32 %v839_v15  ;;  %vm869_vm12 = vweird.f32 %v841_v30 }
 0x1b1   : > { %v834_v20 = vpop.xlane.xlu1 %833  ;;  %v828_v21 = vpop.xlane.xlu2 %827 }
 0x1b2   : > { %v838_v24 = vmul.f32 %v834_v20, %v4887_v32  ;;  %v836_v25 = vmul.f32 %v828_v21, %v4887_v32  ;;  %v4331_v20 = vld [vmem:[%s4812_s23 + $0x50] sm:$0xff] }
 0x1b4   : > { %v4450_v26 = vpop.eup %4449  ;;  %v842_v27 = vadd.f32 1e-05, %v838_v24  ;;  %v840_v28 = vadd.f32 1e-05, %v836_v25  ;;  %v4322_v25 = vld [vmem:[%s4812_s23 + $0x8] sm:$0xff] }
 0x1b5   : > { %v844_v29 = vmul.f32 %v4450_v26, %v839_v15  ;;  %vm850_vm4 = vweird.f32 %v4450_v26 }
 0x1b6   : > { %4451 = vrsqrt.f32 %v842_v27  ;;  %vm851_vm7 = vmor %vm849_vm5, %vm850_vm4  ;;  %vm859_vm8 = vweird.f32 %v840_v28  ;;  %vm879_vm10 = vweird.f32 %v842_v27 }
 0x1b7   : > { %v845_v31 = vmul.f32 %v4450_v26, %v844_v29  ;;  %4453 = vrsqrt.f32 %v840_v28 }
 0x1b8   : > { %4455 = vrsqrt.f32 %v841_v30 }
 0x1b9   : > { %v846_v33 = vmul.f32 0.5, %v845_v31  ;;  %v4321_v31 = vld [vmem:[%s4812_s23] sm:$0xff] }
 0x1bb   : > { %v847_v36 = vsub.f32 1.5, %v846_v33  ;;  %v4329_v33 = vld [vmem:[%s4812_s23 + $0x40] sm:$0xff] }
 0x1bc   : > { %v4452_v34 = vpop.eup %4451 }
 0x1bd   : > { %v4454_v35 = vpop.eup %4453  ;;  %v874_v41 = vmul.f32 %v4452_v34, %v842_v27  ;;  %v848_v43 = vmul.f32 %v4450_v26, %v847_v36  ;;  %vm880_vm11 = vweird.f32 %v4452_v34 }
 0x1be   : > { %v854_v39 = vmul.f32 %v4454_v35, %v840_v28  ;;  %v4456_v40 = vpop.eup %4455  ;;  %vm860_vm6 = vweird.f32 %v4454_v35  ;;  %vm881_vm14 = vmor %vm879_vm10, %vm880_vm11 }
 0x1bf   : > { %v864_v44 = vmul.f32 %v4456_v40, %v841_v30  ;;  %v875_v46 = vmul.f32 %v4452_v34, %v874_v41  ;;  %v852_v52 = vsel %vm851_vm7, %v4450_v26, %v848_v43  ;;  %vm861_vm9 = vmor %vm859_vm8, %vm860_vm6  ;;  %vm870_vm13 = vweird.f32 %v4456_v40  ;;  %v4330_v26 = vld [vmem:[%s4812_s23 + $0x48] sm:$0xff] }
 0x1c0   : > { %v855_v42 = vmul.f32 %v4454_v35, %v854_v39  ;;  %v883_v55 = vmul.f32 %v852_v52, %v4895_v38  ;;  %vm871_vm15 = vmor %vm869_vm12, %vm870_vm13 }
 0x1c1   : > { %v865_v50 = vmul.f32 %v4456_v40, %v864_v44  ;;  %v876_v53 = vmul.f32 0.5, %v875_v46 }
 0x1c2   : > { %v856_v45 = vmul.f32 0.5, %v855_v42 }
 0x1c3   : > { %v866_v57 = vmul.f32 0.5, %v865_v50  ;;  %v877_v59 = vsub.f32 1.5, %v876_v53 }
 0x1c4   : > { %v857_v49 = vsub.f32 1.5, %v856_v45 }
 0x1c5   : > { %v867_v60 = vsub.f32 1.5, %v866_v57  ;;  %v878_v61 = vmul.f32 %v4452_v34, %v877_v59 }
 0x1c6   : > { %v858_v51 = vmul.f32 %v4454_v35, %v857_v49 }
 0x1c7   : > { %v868_v38 = vmul.f32 %v4456_v40, %v867_v60 }
 0x1c8   : > { %v862_v54 = vsel %vm861_vm9, %v4454_v35, %v858_v51 }
 0x1c9   : > { %v884_v56 = vmul.f32 %v862_v54, %v4909_v48  ;;  %v882_v48 = vsel %vm881_vm14, %v4452_v34, %v878_v61  ;;  %v872_v62 = vsel %vm871_vm15, %v4456_v40, %v868_v38 }
 0x1ca   : > { %v886_v63 = vmul.f32 %v882_v48, %v4906_v47  ;;  %v885_v0 = vmul.f32 %v872_v62, %v4892_v37  ;;  %v4326_v47 = vld [vmem:[%s4812_s23 + $0x28] sm:$0xff] }
 0x1cb   : > { %v887_v58 = vpack.c.bf16 %v884_v56, %v883_v55  ;;  %v4334_v37 = vld [vmem:[%s4812_s23 + $0x68] sm:$0xff]  ;;  %1280 = vmatpush.bf16.msra.mxu2 %v4326_v47 }
 0x1cc   : > { %v888_v1 = vpack.c.bf16 %v886_v63, %v885_v0  ;;  %1299 = vmatpush.bf16.msra.mxu3 %v4334_v37 }
 0x1cd   : > { %3893 = vmatmul.msk.bf16.vlgmr.msra.gmra.mxu0 %vm791_vm2, %v887_v58  ;;  %3895 = vmatmul.msk.bf16.vlgmr.msra.gmra.mxu1 %vm791_vm2, %v887_v58 }
 0x1cf   : > { %1281 = vmatpush.bf16.msra.mxu2 %v4325_v7 }
 0x1d0   : > { %1300 = vmatpush.bf16.msra.mxu3 %v4333_v8 }
 0x1d3   : > { %1282 = vmatpush.bf16.msra.mxu2 %v4324_v11 }
 0x1d4   : > { %1301 = vmatpush.bf16.msra.mxu3 %v4332_v12 }
 0x1d7   : > { %1283 = vmatpush.bf16.msra.mxu2 %v4323_v17 }
 0x1d8   : > { %1302 = vmatpush.bf16.msra.mxu3 %v4331_v20 }
 0x1db   : > { %1284 = vmatpush.bf16.msra.mxu2 %v4322_v25 }
 0x1dc   : > { %1303 = vmatpush.bf16.msra.mxu3 %v4330_v26 }
 0x1dd   : > { %3894 = vmatmul.msk.bf16.gmra.mxu0 %vm791_vm2, %v888_v1  ;;  %3896 = vmatmul.msk.bf16.gmra.mxu1 %vm791_vm2, %v888_v1 }
 0x1df   : > { %1285 = vmatpush.bf16.msra.mxu2 %v4321_v31 }
 0x1e0   : > { %1304 = vmatpush.bf16.msra.mxu3 %v4329_v33 }
 0x24a   : > { %v957_v13 = vpop.f32.mrf.mxu0  ;;  %v976_v14 = vpop.f32.mrf.mxu1 }
 0x24b   : > { %v4956_v15 = vadd.f32 %v957_v13, %v898_v9  ;;  %v4958_v16 = vadd.f32 %v976_v14, %v899_v10 }
 0x24d   : > { %v3897_v21 = vmul.f32 -1.442695, %v4956_v15  ;;  %v3898_v24 = vmul.f32 -1.442695, %v4958_v16 }
 0x24f   : > { %4457 = vpow2.f32 %v3897_v21 }
 0x250   : > { %4459 = vpow2.f32 %v3898_v24 }
 0x252   : > { %v959_v27 = vpop.f32.mrf.mxu0  ;;  %v978_v28 = vpop.f32.mrf.mxu1 }
 0x253   : > { %v4966_v29 = vadd.f32 %v959_v27, %v898_v9  ;;  %v4968_v30 = vadd.f32 %v978_v28, %v899_v10 }
 0x255   : > { %v4458_v34 = vpop.eup %4457  ;;  %v3899_v35 = vmul.f32 -1.442695, %v4966_v29  ;;  %v3900_v40 = vmul.f32 -1.442695, %v4968_v30 }
 0x256   : > { %v4460_v36 = vpop.eup %4459  ;;  %v1010_v39 = vadd.f32 1.0, %v4458_v34 }
 0x257   : > { %v4974_v41 = vadd.f32 1.0, %v4460_v36  ;;  %4461 = vpow2.f32 %v3899_v35 }
 0x258   : > { %4463 = vrcp.f32 %v1010_v39  ;;  %v1027_v2 = vand.u32 2147483647, %v1010_v39  ;;  %v1029_v47 = vand.u32 2147483648, %v1010_v39  ;;  %vm1023_vm1 = vweird.f32 %v1010_v39 }
 0x259   : > { %4465 = vrcp.f32 %v4974_v41  ;;  %v1044_v37 = vand.u32 2147483648, %v4974_v41  ;;  %vm1038_vm3 = vweird.f32 %v4974_v41 }
 0x25a   : > { %4467 = vpow2.f32 %v3900_v40  ;;  %v962_v42 = vpop.f32.mrf.mxu0  ;;  %v981_v43 = vpop.f32.mrf.mxu1  ;;  %vm5021_vm5 = vcmp.eq.f32.partialorder %v1027_v2, 8.507059e+37  ;;  %v1030_v21 = vor.u32 1.1754944e-38, %v1029_v47 }
 0x25b   : > { %v4977_v44 = vadd.f32 %v962_v42, %v898_v9  ;;  %v4979_v45 = vadd.f32 %v981_v43, %v899_v10  ;;  %v1045_v24 = vor.u32 1.1754944e-38, %v1044_v37 }
 0x25d   : > { %v4462_v46 = vpop.eup %4461  ;;  %v3901_v49 = vmul.f32 -1.442695, %v4977_v44  ;;  %v3902_v50 = vmul.f32 -1.442695, %v4979_v45 }
 0x25e   : > { %v4983_v51 = vpop.eup %4463  ;;  %v4985_v52 = vadd.f32 1.0, %v4462_v46 }
 0x25f   : > { %v4987_v53 = vpop.eup %4465  ;;  %v1019_v54 = vmul.f32 %v4983_v51, %v1010_v39  ;;  %4469 = vpow2.f32 %v3901_v49  ;;  %vm1024_vm0 = vweird.f32 %v4983_v51 }
 0x260   : > { %v4468_v55 = vpop.eup %4467  ;;  %v1034_v56 = vmul.f32 %v4987_v53, %v4974_v41  ;;  %4471 = vrcp.f32 %v4985_v52  ;;  %v1057_v11 = vand.u32 2147483647, %v4985_v52  ;;  %v1059_v14 = vand.u32 2147483648, %v4985_v52  ;;  %vm5017_vm4 = vmor %vm1023_vm1, %vm1024_vm0 }
 0x261   : > { %v1020_v57 = vsub.f32 1.0, %v1019_v54  ;;  %v4993_v58 = vadd.f32 1.0, %v4468_v55  ;;  %4473 = vpow2.f32 %v3902_v50  ;;  %vm1039_vm6 = vweird.f32 %v4987_v53 }
 0x262   : > { %v964_v59 = vpop.f32.mrf.mxu0  ;;  %v983_v60 = vpop.f32.mrf.mxu1  ;;  %v1035_v62 = vsub.f32 1.0, %v1034_v56  ;;  %vm1053_vm7 = vweird.f32 %v4985_v52  ;;  %vm5037_vm9 = vcmp.eq.f32.partialorder %v1057_v11, 8.507059e+37  ;;  %v1060_v39 = vor.u32 1.1754944e-38, %v1059_v14  ;;  %vm5046_vm10 = vmor %vm1038_vm3, %vm1039_vm6 }
 0x263   : > { %4475 = vrcp.f32 %v4993_v58  ;;  %v4996_v61 = vadd.f32 %v964_v59, %v898_v9  ;;  %v4998_v38 = vadd.f32 %v983_v60, %v899_v10  ;;  %v1021_v48 = vmul.f32 %v4983_v51, %v1020_v57 }
 0x264   : > { %v1036_v8 = vmul.f32 %v4987_v53, %v1035_v62  ;;  %v1042_v10 = vand.u32 2147483647, %v4974_v41  ;;  %v1074_v40 = vand.u32 2147483648, %v4993_v58  ;;  %v1072_v41 = vand.u32 2147483647, %v4993_v58 }
 0x265   : > { %v4470_v63 = vpop.eup %4469  ;;  %v3903_v0 = vmul.f32 -1.442695, %v4996_v61  ;;  %v3904_v4 = vmul.f32 -1.442695, %v4998_v38  ;;  %v1022_v7 = vadd.f32 %v4983_v51, %v1021_v48  ;;  %vm1068_vm14 = vweird.f32 %v4993_v58 }
 0x266   : > { %v4472_v1 = vpop.eup %4471  ;;  %v5002_v3 = vadd.f32 1.0, %v4470_v63  ;;  %v1037_v27 = vadd.f32 %v4987_v53, %v1036_v8  ;;  %vm1043_vm13 = vcmp.eq.f32.partialorder %v1042_v10, 8.507059e+37  ;;  %v1075_v63 = vor.u32 1.1754944e-38, %v1074_v40 }
 0x267   : > { %v4474_v5 = vpop.eup %4473  ;;  %4477 = vpow2.f32 %v3903_v0  ;;  %v1049_v6 = vmul.f32 %v4472_v1, %v4985_v52  ;;  %v1026_v26 = vsel %vm5017_vm4, %v4983_v51, %v1022_v7  ;;  %vm1054_vm8 = vweird.f32 %v4472_v1 }
 0x268   : > { %4479 = vrcp.f32 %v5002_v3  ;;  %v5014_v12 = vadd.f32 1.0, %v4474_v5  ;;  %v1031_v42 = vsel %vm5021_vm5, %v1030_v21, %v1026_v26  ;;  %v1041_v54 = vsel %vm5046_vm10, %v4987_v53, %v1037_v27  ;;  %vm1055_vm11 = vmor %vm1053_vm7, %vm1054_vm8 }
 0x269   : > { %v4476_v9 = vpop.eup %4475  ;;  %4481 = vpow2.f32 %v3904_v4  ;;  %v1050_v13 = vsub.f32 1.0, %v1049_v6  ;;  %v1138_v48 = vmul.f32 %v1031_v42, %v4956_v15  ;;  %v1046_v52 = vsel %vm1043_vm13, %v1045_v24, %v1041_v54 }
 0x26a   : > { %v1064_v25 = vmul.f32 %v4476_v9, %v4993_v58  ;;  %4483 = vrcp.f32 %v5014_v12  ;;  %vm1069_vm12 = vweird.f32 %v4476_v9  ;;  %vm1073_vm0 = vcmp.eq.f32.partialorder %v1072_v41, 8.507059e+37 }
 0x26b   : > { %v1051_v31 = vmul.f32 %v4472_v1, %v1050_v13  ;;  %vm1070_vm15 = vmor %vm1068_vm14, %vm1069_vm12  ;;  %v1087_v15 = vand.u32 2147483647, %v5002_v3  ;;  %v1139_v58 = vmul.f32 %v1046_v52, %v4958_v16  ;;  %v1089_v37 = vand.u32 2147483648, %v5002_v3  ;;  %v790_v52 = vld [vmem:[%s4807_s20 + $0x1] ss:$0 sm:$0xff] }
 0x26c   : > { %v1065_v33 = vsub.f32 1.0, %v1064_v25  ;;  %vm1083_vm3 = vweird.f32 %v5002_v3  ;;  %vm1098_vm8 = vweird.f32 %v5014_v12  ;;  %v1102_v27 = vand.u32 2147483647, %v5014_v12 }
 0x26d   : > { %v4478_v28 = vpop.eup %4477  ;;  %v1052_v49 = vadd.f32 %v4472_v1, %v1051_v31  ;;  %vm5082_vm4 = vcmp.eq.f32.partialorder %v1087_v15, 8.507059e+37  ;;  %v1090_v14 = vor.u32 1.1754944e-38, %v1089_v37 }
 0x26e   : > { %v5033_v34 = vpop.eup %4479  ;;  %v5035_v35 = vadd.f32 1.0, %v4478_v28  ;;  %v1066_v50 = vmul.f32 %v4476_v9, %v1065_v33  ;;  %vm1103_vm14 = vcmp.eq.f32.partialorder %v1102_v27, 8.507059e+37 }
 0x26f   : > { %v1079_v46 = vmul.f32 %v5033_v34, %v5002_v3  ;;  %v4482_v51 = vpop.eup %4481  ;;  %v1056_v57 = vsel %vm1055_vm11, %v4472_v1, %v1052_v49  ;;  %vm1084_vm1 = vweird.f32 %v5033_v34  ;;  %v1104_v3 = vand.u32 2147483648, %v5014_v12 }
 0x270   : > { %4485 = vrcp.f32 %v5035_v35  ;;  %v5060_v56 = vadd.f32 1.0, %v4482_v51  ;;  %v1067_v59 = vadd.f32 %v4476_v9, %v1066_v50  ;;  %v5062_v60 = vpop.eup %4483  ;;  %v1061_v53 = vsel %vm5037_vm9, %v1060_v39, %v1056_v57  ;;  %vm5090_vm6 = vmor %vm1083_vm3, %vm1084_vm1 }
 0x271   : > { %v1080_v55 = vsub.f32 1.0, %v1079_v46  ;;  %v1094_v62 = vmul.f32 %v5062_v60, %v5014_v12  ;;  %v1140_v1 = vmul.f32 %v1061_v53, %v4966_v29  ;;  %vm1099_vm5 = vweird.f32 %v5062_v60 }
 0x272   : > { %4487 = vrcp.f32 %v5060_v56  ;;  %v1071_v2 = vsel %vm1070_vm15, %v4476_v9, %v1067_v59  ;;  %v1117_v25 = vand.u32 2147483647, %v5035_v35  ;;  %vm5101_vm9 = vmor %vm1098_vm8, %vm1099_vm5  ;;  %vm1113_vm10 = vweird.f32 %v5035_v35 }
 0x273   : > { %v1081_v0 = vmul.f32 %v5033_v34, %v1080_v55  ;;  %v1095_v4 = vsub.f32 1.0, %v1094_v62  ;;  %v1076_v5 = vsel %vm1073_vm0, %v1075_v63, %v1071_v2  ;;  %v1146_v6 = vpack.c.bf16 %v1140_v1, %v1138_v48 }
 0x274   : > { %v1141_v7 = vmul.f32 %v1076_v5, %v4968_v30  ;;  %v1119_v30 = vand.u32 2147483648, %v5035_v35  ;;  %v1134_v39 = vand.u32 2147483648, %v5060_v56  ;;  %v1132_v12 = vand.u32 2147483647, %v5060_v56 }
 0x275   : > { %v1096_v8 = vmul.f32 %v5062_v60, %v1095_v4  ;;  %v1082_v29 = vadd.f32 %v5033_v34, %v1081_v0  ;;  %1286 = vmatmul.bf16.vlgmr.msra.gmra.mxu2 %v1146_v6  ;;  %v1105_v43 = vor.u32 1.1754944e-38, %v1104_v3  ;;  %vm1118_vm13 = vcmp.eq.f32.partialorder %v1117_v25, 8.507059e+37 }
 0x276   : > { %v4486_v47 = vpop.eup %4485  ;;  %v1147_v9 = vpack.c.bf16 %v1141_v7, %v1139_v58  ;;  %v1120_v36 = vor.u32 1.1754944e-38, %v1119_v30  ;;  %vm1128_vm15 = vweird.f32 %v5060_v56  ;;  %v1135_v54 = vor.u32 1.1754944e-38, %v1134_v39 }
 0x277   : > { %v1109_v10 = vmul.f32 %v4486_v47, %v5035_v35  ;;  %v1097_v17 = vadd.f32 %v5062_v60, %v1096_v8  ;;  %vm1114_vm7 = vweird.f32 %v4486_v47  ;;  %v1086_v26 = vsel %vm5090_vm6, %v5033_v34, %v1082_v29 }
 0x278   : > { %v4488_v11 = vpop.eup %4487  ;;  %1305 = vmatmul.bf16.vlgmr.msra.gmra.mxu3 %v1147_v9  ;;  %vm1115_vm11 = vmor %vm1113_vm10, %vm1114_vm7  ;;  %v1091_v42 = vsel %vm5082_vm4, %v1090_v14, %v1086_v26  ;;  %vm1133_vm1 = vcmp.eq.f32.partialorder %v1132_v12, 8.507059e+37  ;;  %v4346_v12 = vld [vmem:[%s4827_s1 + $0x4c] sm:$0xf] }
 0x279   : > { %v1110_v13 = vsub.f32 1.0, %v1109_v10  ;;  %v1124_v20 = vmul.f32 %v4488_v11, %v5060_v56  ;;  %v1101_v40 = vsel %vm5101_vm9, %v5062_v60, %v1097_v17  ;;  %vm1129_vm12 = vweird.f32 %v4488_v11 }
 0x27a   : > { %v1106_v50 = vsel %vm1103_vm14, %v1105_v43, %v1101_v40  ;;  %vm1130_vm0 = vmor %vm1128_vm15, %vm1129_vm12  ;;  %v1142_v41 = vmul.f32 %v1091_v42, %v4977_v44  ;;  %v4008_v40 = vld [vmem:[%s4827_s1 + $0x48] sm:$0xf]  ;;  %v4010_v43 = vld [vmem:[%s4827_s1 + $0x54] sm:$0xf0]  ;;  %vm1708_vm15 = vcmask 261120  }
 0x27b   : > { %v1111_v24 = vmul.f32 %v4486_v47, %v1110_v13  ;;  %v1125_v28 = vsub.f32 1.0, %v1124_v20  ;;  %v1143_v59 = vmul.f32 %v1106_v50, %v4979_v45 }
 0x27d   : > { %v1112_v33 = vadd.f32 %v4486_v47, %v1111_v24  ;;  %v1126_v34 = vmul.f32 %v4488_v11, %v1125_v28 }
 0x27f   : > { %v1116_v46 = vsel %vm1115_vm11, %v4486_v47, %v1112_v33  ;;  %v1127_v49 = vadd.f32 %v4488_v11, %v1126_v34  ;;  %v4347_v34 = vld [vmem:[%s4827_s1 + $0x50] sm:$0xf0] }
 0x280   : > { %v1121_v35 = vsel %vm1118_vm13, %v1120_v36, %v1116_v46  ;;  %v4009_v42 = vor.u32 %v4347_v34, %v4008_v40  ;;  %v4016_v46 = vld [vmem:[%s4827_s1 + $0x50] sm:$0xf] }
 0x281   : > { %v1144_v51 = vmul.f32 %v1121_v35, %v4996_v61  ;;  %v1131_v55 = vsel %vm1130_vm0, %v4488_v11, %v1127_v49  ;;  %v4348_v35 = vld [vmem:[%s4827_s1 + $0x58] sm:$0xf0]  ;;  %v4013_v49 = vor.u32 %v4346_v12, %v4010_v43 }
 0x282   : > { %v1136_v57 = vsel %vm1133_vm1, %v1135_v54, %v1131_v55  ;;  %v4017_v50 = vor.u32 %v4348_v35, %v4016_v46  ;;  %1509 = vmatpush.bf16.msrb.mxu0 %v4009_v42  ;;  %v4344_v54 = vld [vmem:[%s4827_s1 + $0x38] sm:$0xf0]  ;;  %v4354_v46 = vld [vmem:[%s5955_s15 + $0x28] sm:$0xff] }
 0x283   : > { %v1148_v60 = vpack.c.bf16 %v1144_v51, %v1142_v41  ;;  %v1145_v48 = vmul.f32 %v1136_v57, %v4998_v38  ;;  %1528 = vmatpush.bf16.msrb.mxu1 %v4013_v49  ;;  %v3996_v51 = vld [vmem:[%s4827_s1 + $0x30] sm:$0xf]  ;;  %v4343_v41 = vld [vmem:[%s4827_s1 + $0x34] sm:$0xf]  ;;  %v3998_v57 = vld [vmem:[%s4827_s1 + $0x3c] sm:$0xf0] }
 0x284   : > { %1547 = vmatpush.bf16.msrb.mxu2 %v4017_v50  ;;  %v3997_v55 = vor.u32 %v4344_v54, %v3996_v51 }
 0x285   : > { %v1149_v53 = vpack.c.bf16 %v1145_v48, %v1143_v59  ;;  %1291 = vmatmul.bf16.gmra.mxu2 %v1148_v60  ;;  %v4004_v59 = vld [vmem:[%s4827_s1 + $0x38] sm:$0xf]  ;;  %v4345_v60 = vld [vmem:[%s4827_s1 + $0x40] sm:$0xf0]  ;;  %v4001_v48 = vor.u32 %v4343_v41, %v3998_v57 }
 0x286   : > { %1510 = vmatpush.bf16.msrb.mxu0 %v3997_v55  ;;  %v4353_v57 = vld [vmem:[%s5955_s15 + $0x20] sm:$0xff] }
 0x287   : > { %1529 = vmatpush.bf16.msrb.mxu1 %v4001_v48 }
 0x288   : > { %1310 = vmatmul.bf16.gmra.mxu3 %v1149_v53  ;;  %v4005_v53 = vor.u32 %v4345_v60, %v4004_v59 }
 0x28a   : > { %1548 = vmatpush.bf16.msrb.mxu2 %v4005_v53 }
 0x2f8   : > { %v1287_v56 = vpop.f32.mrf.mxu2 }
 0x2f9   : > { %v1288_v62 = vadd.f32 %v1287_v56, %v790_v52 }
 0x2fb   : > { %v1306_v63 = vpop.f32.mrf.mxu3 }
 0x2fc   : > { %v1307_v61 = vadd.f32 %v1306_v63, %v1288_v62  ;;  %v3984_v62 = vld [vmem:[%s4827_s1 + $0x18] sm:$0xf]  ;;  %v4341_v63 = vld [vmem:[%s4827_s1 + $0x20] sm:$0xf0] }
 0x2fe   : > { %v5120_v0 = vadd.f32 %v1307_v61, %v4873_v19  ;;  %v4340_v61 = vld [vmem:[%s4827_s1 + $0x1c] sm:$0xf] }
 0x300   : > { %v1320_v44 = vsel %vm791_vm2, %v5120_v0, 0.0  ;;  %v1289_v1 = vpop.f32.mrf.mxu2 }
 0x301   : > { %1321 = vadd.xlane.f32.xlu2 %v1320_v44  ;;  %v1290_v45 = vadd.f32 %v1289_v1, %v790_v52  ;;  %v3985_v44 = vor.u32 %v4341_v63, %v3984_v62  ;;  %v3986_v1 = vld [vmem:[%s4827_s1 + $0x24] sm:$0xf0] }
 0x303   : > { %v1308_v2 = vpop.f32.mrf.mxu3  ;;  %1511 = vmatpush.bf16.msrb.mxu0 %v3985_v44 }
 0x304   : > { %v1309_v15 = vadd.f32 %v1308_v2, %v1290_v45  ;;  %v3992_v45 = vld [vmem:[%s4827_s1 + $0x20] sm:$0xf]  ;;  %v4342_v2 = vld [vmem:[%s4827_s1 + $0x28] sm:$0xf0] }
 0x306   : > { %v5125_v38 = vadd.f32 %v1309_v15, %v4881_v23 }
 0x308   : > { %v1323_v4 = vsel %vm791_vm2, %v5125_v38, 0.0  ;;  %v1292_v5 = vpop.f32.mrf.mxu2 }
 0x309   : > { %1324 = vadd.xlane.f32.xlu0 %v1323_v4  ;;  %v1293_v47 = vadd.f32 %v1292_v5, %v790_v52  ;;  %v3989_v4 = vor.u32 %v4340_v61, %v3986_v1  ;;  %v3993_v5 = vor.u32 %v4342_v2, %v3992_v45 }
 0x30b   : > { %v1311_v58 = vpop.f32.mrf.mxu3  ;;  %1530 = vmatpush.bf16.msrb.mxu1 %v3989_v4  ;;  %1549 = vmatpush.bf16.msrb.mxu2 %v3993_v5 }
 0x30c   : > { %v1312_v19 = vadd.f32 %v1311_v58, %v1293_v47  ;;  %v3972_v47 = vld [vmem:[%s4827_s1] sm:$0xf]  ;;  %v4338_v58 = vld [vmem:[%s4827_s1 + $0x8] sm:$0xf0] }
 0x30e   : > { %v5130_v37 = vadd.f32 %v1312_v19, %v4871_v18  ;;  %v4337_v19 = vld [vmem:[%s4827_s1 + $0x4] sm:$0xf] }
 0x310   : > { %v1326_v6 = vsel %vm791_vm2, %v5130_v37, 0.0  ;;  %v1294_v7 = vpop.f32.mrf.mxu2 }
 0x311   : > { %1327 = vadd.xlane.f32.xlu1 %v1326_v6  ;;  %v1295_v8 = vadd.f32 %v1294_v7, %v790_v52  ;;  %v3973_v6 = vor.u32 %v4338_v58, %v3972_v47  ;;  %v3974_v7 = vld [vmem:[%s4827_s1 + $0xc] sm:$0xf0] }
 0x312   : > { %v4351_v47 = vld [vmem:[%s5955_s15 + $0x10] sm:$0xff] }
 0x313   : > { %v1313_v10 = vpop.f32.mrf.mxu3  ;;  %1512 = vmatpush.bf16.msrb.mxu0 %v3973_v6  ;;  %v3969_v6 = vld [vmem:[%s4807_s20 + $0x2] ss:$8 sm:$0x7] }
 0x314   : > { %v1314_v23 = vadd.f32 %v1313_v10, %v1295_v8  ;;  %v3980_v8 = vld [vmem:[%s4827_s1 + $0x8] sm:$0xf]  ;;  %v4339_v10 = vld [vmem:[%s4827_s1 + $0x10] sm:$0xf0] }
 0x316   : > { %v5135_v29 = vadd.f32 %v1314_v23, %v4879_v22  ;;  %v3977_v23 = vor.u32 %v4337_v19, %v3974_v7  ;;  %v1429_v7 = vperm.slane %v3969_v6, 0 }
 0x318   : > { %v1329_v9 = vsel %vm791_vm2, %v5135_v29, 0.0  ;;  %1531 = vmatpush.bf16.msrb.mxu1 %v3977_v23 }
 0x319   : > { %1330 = vadd.xlane.f32.xlu2 %v1329_v9  ;;  %v3981_v9 = vor.u32 %v4339_v10, %v3980_v8  ;;  %v1430_v8 = vperm.slane %v3969_v6, 1 }
 0x31b   : > { %1550 = vmatpush.bf16.msrb.mxu2 %v3981_v9 }
 0x374   : > { %v1322_v11 = vpop.xlane.xlu2 %1321 }
 0x375   : > { %v1332_v16 = vmul.f32 %v1322_v11, %v4887_v32 }
 0x377   : > { %v5141_v18 = vsub.f32 %v5120_v0, %v1332_v16 }
 0x379   : > { %v1340_v13 = vmul.f32 %v5141_v18, %v5141_v18 }
 0x37b   : > { %v1344_v30 = vsel %vm791_vm2, %v1340_v13, 0.0 }
 0x37c   : > { %1345 = vadd.xlane.f32.xlu0 %v1344_v30  ;;  %v1325_v14 = vpop.xlane.xlu0 %1324 }
 0x37d   : > { %v1333_v22 = vmul.f32 %v1325_v14, %v4887_v32 }
 0x37f   : > { %v5148_v17 = vsub.f32 %v5125_v38, %v1333_v22 }
 0x381   : > { %v1341_v20 = vmul.f32 %v5148_v17, %v5148_v17 }
 0x383   : > { %v1347_v21 = vsel %vm791_vm2, %v1341_v20, 0.0 }
 0x384   : > { %v1328_v3 = vpop.xlane.xlu1 %1327  ;;  %1348 = vadd.xlane.f32.xlu1 %v1347_v21 }
 0x385   : > { %v1334_v24 = vmul.f32 %v1328_v3, %v4887_v32 }
 0x387   : > { %v5155_v25 = vsub.f32 %v5130_v37, %v1334_v24 }
 0x389   : > { %v1342_v26 = vmul.f32 %v5155_v25, %v5155_v25 }
 0x38b   : > { %v1350_v27 = vsel %vm791_vm2, %v1342_v26, 0.0 }
 0x38c   : > { %v1331_v28 = vpop.xlane.xlu2 %1330  ;;  %1351 = vadd.xlane.f32.xlu2 %v1350_v27 }
 0x38d   : > { %v1335_v31 = vmul.f32 %v1331_v28, %v4887_v32 }
 0x38f   : > { %v5162_v33 = vsub.f32 %v5135_v29, %v1335_v31  ;;  %v4356_v31 = vld [vmem:[%s5955_s15 + $0x38] sm:$0xff] }
 0x390   : > { %1640 = vmatpush.bf16.msrb.mxu3 %v4356_v31  ;;  %1673 = vmatpush.bf16.msra.mxu0 %v4356_v31 }
 0x391   : > { %v1343_v36 = vmul.f32 %v5162_v33, %v5162_v33 }
 0x393   : > { %v1353_v39 = vsel %vm791_vm2, %v1343_v36, 0.0 }
 0x394   : > { %1354 = vadd.xlane.f32.xlu0 %v1353_v39  ;;  %v4355_v39 = vld [vmem:[%s5955_s15 + $0x30] sm:$0xff] }
 0x395   : > { %1641 = vmatpush.bf16.msrb.mxu3 %v4355_v39  ;;  %1674 = vmatpush.bf16.msra.mxu0 %v4355_v39 }
 0x399   : > { %1642 = vmatpush.bf16.msrb.mxu3 %v4354_v46  ;;  %1675 = vmatpush.bf16.msra.mxu0 %v4354_v46 }
 0x39d   : > { %1643 = vmatpush.bf16.msrb.mxu3 %v4353_v57  ;;  %1676 = vmatpush.bf16.msra.mxu0 %v4353_v57  ;;  %v1563_v57 = vld [vmem:[%s5998_s18 + $0x8] sm:$0xff] }
 0x3ef   : > { %v1346_v52 = vpop.xlane.xlu0 %1345 }
 0x3f0   : > { %v1356_v56 = vmul.f32 %v1346_v52, %v4887_v32  ;;  %v4352_v52 = vld [vmem:[%s5955_s15 + $0x18] sm:$0xff] }
 0x3f1   : > { %1644 = vmatpush.bf16.msrb.mxu3 %v4352_v52  ;;  %1677 = vmatpush.bf16.msra.mxu0 %v4352_v52 }
 0x3f2   : > { %v1360_v15 = vadd.f32 1e-05, %v1356_v56 }
 0x3f4   : > { %4489 = vrsqrt.f32 %v1360_v15  ;;  %vm1370_vm4 = vweird.f32 %v1360_v15 }
 0x3f5   : > { %1645 = vmatpush.bf16.msrb.mxu3 %v4351_v47  ;;  %1678 = vmatpush.bf16.msra.mxu0 %v4351_v47 }
 0x3f7   : > { %v1349_v11 = vpop.xlane.xlu1 %1348 }
 0x3f8   : > { %v1357_v16 = vmul.f32 %v1349_v11, %v4887_v32 }
 0x3fa   : > { %v4490_v13 = vpop.eup %4489  ;;  %v1361_v30 = vadd.f32 1e-05, %v1357_v16 }
 0x3fb   : > { %v1365_v14 = vmul.f32 %v4490_v13, %v1360_v15  ;;  %vm1371_vm3 = vweird.f32 %v4490_v13 }
 0x3fc   : > { %4491 = vrsqrt.f32 %v1361_v30  ;;  %vm1372_vm6 = vmor %vm1370_vm4, %vm1371_vm3  ;;  %vm1380_vm7 = vweird.f32 %v1361_v30 }
 0x3fd   : > { %v1366_v22 = vmul.f32 %v4490_v13, %v1365_v14 }
 0x3ff   : > { %v1367_v20 = vmul.f32 0.5, %v1366_v22  ;;  %v1352_v21 = vpop.xlane.xlu2 %1351 }
 0x400   : > { %v1358_v3 = vmul.f32 %v1352_v21, %v4887_v32 }
 0x401   : > { %v1368_v27 = vsub.f32 1.5, %v1367_v20 }
 0x402   : > { %v4492_v24 = vpop.eup %4491  ;;  %v1362_v26 = vadd.f32 1e-05, %v1358_v3 }
 0x403   : > { %v1375_v28 = vmul.f32 %v4492_v24, %v1361_v30  ;;  %v1369_v40 = vmul.f32 %v4490_v13, %v1368_v27  ;;  %vm1381_vm5 = vweird.f32 %v4492_v24 }
 0x404   : > { %4493 = vrsqrt.f32 %v1362_v26  ;;  %vm1382_vm8 = vmor %vm1380_vm7, %vm1381_vm5  ;;  %vm1390_vm10 = vweird.f32 %v1362_v26 }
 0x405   : > { %v1376_v36 = vmul.f32 %v4492_v24, %v1375_v28  ;;  %v1373_v50 = vsel %vm1372_vm6, %v4490_v13, %v1369_v40 }
 0x406   : > { %v1404_v59 = vmul.f32 %v1373_v50, %v5141_v18 }
 0x407   : > { %v1377_v34 = vmul.f32 0.5, %v1376_v36  ;;  %v1355_v12 = vpop.xlane.xlu0 %1354 }
 0x408   : > { %v1359_v42 = vmul.f32 %v1355_v12, %v4887_v32  ;;  %v1431_v12 = vperm.slane %v3969_v6, 2  ;;  %v1569_v6 = vld [vmem:[%s5997_s7 + $0x18] sm:$0xff] }
 0x409   : > { %v1378_v43 = vsub.f32 1.5, %v1377_v34 }
 0x40a   : > { %v4494_v35 = vpop.eup %4493  ;;  %v1363_v49 = vadd.f32 1e-05, %v1359_v42 }
 0x40b   : > { %v1379_v51 = vmul.f32 %v4492_v24, %v1378_v43  ;;  %v1385_v54 = vmul.f32 %v4494_v35, %v1362_v26  ;;  %vm1391_vm9 = vweird.f32 %v4494_v35 }
 0x40c   : > { %4495 = vrsqrt.f32 %v1363_v49  ;;  %vm1392_vm12 = vmor %vm1390_vm10, %vm1391_vm9  ;;  %vm1400_vm13 = vweird.f32 %v1363_v49 }
 0x40d   : > { %v1383_v41 = vsel %vm1382_vm8, %v4492_v24, %v1379_v51  ;;  %v1386_v55 = vmul.f32 %v4494_v35, %v1385_v54 }
 0x40e   : > { %v1405_v60 = vmul.f32 %v1383_v41, %v5148_v17  ;;  %v1566_v41 = vld [vmem:[%s5997_s7] sm:$0xff] }
 0x40f   : > { %v1387_v48 = vmul.f32 0.5, %v1386_v55  ;;  %v1562_v55 = vld [vmem:[%s5998_s18] sm:$0xff] }
 0x410   : > { %v1408_v53 = vpack.c.bf16 %v1405_v60, %v1404_v59  ;;  %v1567_v60 = vld [vmem:[%s5997_s7 + $0x8] sm:$0xff] }
 0x411   : > { %v1388_v62 = vsub.f32 1.5, %v1387_v48 }
 0x412   : > { %v4496_v56 = vpop.eup %4495  ;;  %4018 = vmatmul.msk.bf16.vlgmr.msrb.gmra.mxu0 %vm791_vm2, %v1408_v53  ;;  %4020 = vmatmul.msk.bf16.vlgmr.msrb.gmra.mxu1 %vm791_vm2, %v1408_v53 }
 0x413   : > { %v1395_v63 = vmul.f32 %v4496_v56, %v1363_v49  ;;  %4022 = vmatmul.msk.bf16.vlgmr.msrb.gmra.mxu2 %vm791_vm2, %v1408_v53  ;;  %v1389_v17 = vmul.f32 %v4494_v35, %v1388_v62  ;;  %vm1401_vm11 = vweird.f32 %v4496_v56 }
 0x414   : > { %vm1402_vm14 = vmor %vm1400_vm13, %vm1401_vm11 }
 0x415   : > { %v1396_v18 = vmul.f32 %v4496_v56, %v1395_v63  ;;  %v1393_v45 = vsel %vm1392_vm12, %v4494_v35, %v1389_v17 }
 0x416   : > { %v1406_v15 = vmul.f32 %v1393_v45, %v5155_v25  ;;  %v4350_v25 = vld [vmem:[%s5955_s15 + $0x8] sm:$0xff] }
 0x417   : > { %v1397_v61 = vmul.f32 0.5, %v1396_v18  ;;  %1646 = vmatpush.bf16.msrb.mxu3 %v4350_v25  ;;  %1679 = vmatpush.bf16.msra.mxu0 %v4350_v25  ;;  %v1568_v25 = vld [vmem:[%s5997_s7 + $0x10] sm:$0xff] }
 0x419   : > { %v1398_v44 = vsub.f32 1.5, %v1397_v61 }
 0x41b   : > { %v1399_v1 = vmul.f32 %v4496_v56, %v1398_v44 }
 0x41d   : > { %v1403_v2 = vsel %vm1402_vm14, %v4496_v56, %v1399_v1 }
 0x41e   : > { %v1407_v4 = vmul.f32 %v1403_v2, %v5162_v33  ;;  %v4349_v33 = vld [vmem:[%s5955_s15] sm:$0xff] }
 0x41f   : > { %1647 = vmatpush.bf16.msrb.mxu3 %v4349_v33  ;;  %1680 = vmatpush.bf16.msra.mxu0 %v4349_v33  ;;  %v1564_v33 = vld [vmem:[%s5998_s18 + $0x10] sm:$0xff] }
 0x420   : > { %v1409_v5 = vpack.c.bf16 %v1407_v4, %v1406_v15 }
 0x422   : > { %4019 = vmatmul.msk.bf16.gmra.mxu0 %vm791_vm2, %v1409_v5  ;;  %4021 = vmatmul.msk.bf16.gmra.mxu1 %vm791_vm2, %v1409_v5 }
 0x423   : > { %4023 = vmatmul.msk.bf16.gmra.mxu2 %vm791_vm2, %v1409_v5 }
 0x48f   : > { %v1514_v58 = vpop.f32.mrf.mxu0  ;;  %v1533_v19 = vpop.f32.mrf.mxu1 }
 0x490   : > { %v1515_v11 = vadd.f32 %v1514_v58, %v1429_v7  ;;  %v1534_v16 = vadd.f32 %v1533_v19, %v1430_v8  ;;  %v1565_v58 = vld [vmem:[%s5998_s18 + $0x18] sm:$0xff] }
 0x492   : > { %v1667_v52 = vmul.f32 %v1562_v55, %v1534_v16  ;;  %v1586_v1 = vmul.f32 %v1562_v55, %v1515_v11 }
 0x496   : > { %v1552_v10 = vpop.f32.mrf.mxu2 }
 0x497   : > { %v1516_v23 = vpop.f32.mrf.mxu0  ;;  %v1535_v9 = vpop.f32.mrf.mxu1  ;;  %v1553_v50 = vadd.f32 %v1552_v10, %v1431_v12 }
 0x498   : > { %v1517_v13 = vadd.f32 %v1516_v23, %v1429_v7  ;;  %v1536_v30 = vadd.f32 %v1535_v9, %v1430_v8 }
 0x49a   : > { %v1590_v14 = vpack.c.bf16 %v1517_v13, %v1515_v11  ;;  %v1671_v22 = vpack.c.bf16 %v1536_v30, %v1534_v16  ;;  %v1668_v56 = vmul.f32 %v1563_v57, %v1536_v30  ;;  %v1587_v45 = vmul.f32 %v1563_v57, %v1517_v13 }
 0x49c   : > { %1648 = vmatmul.bf16.vlgmr.msrb.gmra.mxu3 %v1590_v14  ;;  %1681 = vmatmul.bf16.vlgmr.msra.gmra.mxu0 %v1671_v22 }
 0x49e   : > { %v1554_v20 = vpop.f32.mrf.mxu2 }
 0x49f   : > { %v1519_v21 = vpop.f32.mrf.mxu0  ;;  %v1538_v3 = vpop.f32.mrf.mxu1  ;;  %v1555_v35 = vadd.f32 %v1554_v20, %v1431_v12 }
 0x4a0   : > { %v1520_v28 = vadd.f32 %v1519_v21, %v1429_v7  ;;  %v1539_v31 = vadd.f32 %v1538_v3, %v1430_v8 }
 0x4a1   : > { %v5233_v51 = vpack.c.bf16 %v1555_v35, %v1553_v50 }
 0x4a2   : > { %v1669_v10 = vmul.f32 %v1564_v33, %v1539_v31  ;;  %v1588_v22 = vmul.f32 %v1564_v33, %v1520_v28 }
 0x4a6   : > { %v1557_v24 = vpop.f32.mrf.mxu2 }
 0x4a7   : > { %v1521_v26 = vpop.f32.mrf.mxu0  ;;  %v1540_v27 = vpop.f32.mrf.mxu1  ;;  %v1558_v43 = vadd.f32 %v1557_v24, %v1431_v12 }
 0x4a8   : > { %v1522_v36 = vadd.f32 %v1521_v26, %v1429_v7  ;;  %v1541_v39 = vadd.f32 %v1540_v27, %v1430_v8 }
 0x4aa   : > { %v1591_v40 = vpack.c.bf16 %v1522_v36, %v1520_v28  ;;  %v1672_v34 = vpack.c.bf16 %v1541_v39, %v1539_v31  ;;  %v1670_v23 = vmul.f32 %v1565_v58, %v1541_v39  ;;  %v1589_v20 = vmul.f32 %v1565_v58, %v1522_v36  ;;  %v5279_v36 = vld [vmem:[%s5999_s26] sm:$0xff] }
 0x4ac   : > { %1653 = vmatmul.bf16.gmra.mxu3 %v1591_v40  ;;  %1686 = vmatmul.bf16.gmra.mxu0 %v1672_v34 }
 0x4ae   : > { %v1559_v42 = vpop.f32.mrf.mxu2 }
 0x4af   : > { %v1560_v46 = vadd.f32 %v1559_v42, %v1431_v12  ;;  %v5286_v42 = vld [vmem:[%s5999_s26 + $0x8] sm:$0xff] }
 0x4b1   : > { %v5230_v49 = vpack.c.bf16 %v1560_v46, %v1558_v43 }
 0x4b3   : > { %1808 = vmatpush.bf16.msra.mxu2 %v5230_v49 }
 0x4b7   : > { %1809 = vmatpush.bf16.msra.mxu2 %v5233_v51 }
 0x519   : > { %v1682_v54 = vpop.f32.mrf.mxu0 }
 0x51a   : > { %v1692_v48 = vmul.f32 %v1682_v54, %v1566_v41  ;;  %v5293_v54 = vld [vmem:[%s5999_s26 + $0x10] sm:$0xff] }
 0x51c   : > { %v1696_v63 = vadd.f32 %v1692_v48, %v1667_v52 }
 0x51f   : > { %v1649_v59 = vpop.f32.mrf.mxu3 }
 0x520   : > { %v1659_v17 = vmul.f32 %v1649_v59, %v1566_v41 }
 0x521   : > { %v1684_v53 = vpop.f32.mrf.mxu0 }
 0x522   : > { %v1693_v62 = vmul.f32 %v1684_v53, %v1567_v60  ;;  %v1663_v4 = vadd.f32 %v1659_v17, %v1586_v1 }
 0x524   : > { %v1697_v18 = vadd.f32 %v1693_v62, %v1668_v56 }
 0x526   : > { %v5248_v61 = vpack.c.bf16 %v1697_v18, %v1696_v63 }
 0x527   : > { %v1651_v44 = vpop.f32.mrf.mxu3 }
 0x528   : > { %v1660_v2 = vmul.f32 %v1651_v44, %v1567_v60  ;;  %v1716_v31 = vsel %vm1708_vm15, %v5248_v61, 0  ;;  %v5300_v60 = vld [vmem:[%s5999_s26 + $0x18] sm:$0xff] }
 0x529   : > { %v1687_v15 = vpop.f32.mrf.mxu0 }
 0x52a   : > { %v1664_v5 = vadd.f32 %v1660_v2, %v1587_v45  ;;  %v1694_v7 = vmul.f32 %v1687_v15, %v1568_v25 }
 0x52c   : > { %v5250_v47 = vpack.c.bf16 %v1664_v5, %v1663_v4  ;;  %v1698_v11 = vadd.f32 %v1694_v7, %v1669_v10 }
 0x52f   : > { %v1654_v19 = vpop.f32.mrf.mxu3 }
 0x530   : > { %v1661_v13 = vmul.f32 %v1654_v19, %v1568_v25 }
 0x531   : > { %v1689_v8 = vpop.f32.mrf.mxu0 }
 0x532   : > { %v1695_v9 = vmul.f32 %v1689_v8, %v1569_v6  ;;  %v1665_v24 = vadd.f32 %v1661_v13, %v1588_v22 }
 0x534   : > { %v1699_v16 = vadd.f32 %v1695_v9, %v1670_v23  ;;  %v4358_v23 = vld [vmem:[%s4817_s13 + $0x8] sm:$0xff] }
 0x535   : > { %2024 = vmatpush.bf16.msrb.mxu2 %v4358_v23 }
 0x536   : > { %v5264_v30 = vpack.c.bf16 %v1699_v16, %v1698_v11  ;;  %v4357_v11 = vld [vmem:[%s4817_s13] sm:$0xff] }
 0x537   : > { %v1656_v14 = vpop.f32.mrf.mxu3 }
 0x538   : > { %v1662_v21 = vmul.f32 %v1656_v14, %v1569_v6  ;;  %v1719_v3 = vsel %vm1708_vm15, %v5264_v30, 0 }
 0x539   : > { %1727 = vmatpush.bf16.xpose.msra.mxu1 %v1719_v3  ;;  %2025 = vmatpush.bf16.msrb.mxu2 %v4357_v11 }
 0x53a   : > { %v1666_v26 = vadd.f32 %v1662_v21, %v1589_v20 }
 0x53c   : > { %v5268_v27 = vpack.c.bf16 %v1666_v26, %v1665_v24 }
 0x541   : > { %1728 = vmatpush.bf16.xpose.msra.mxu1 %v1716_v31 }
 0x548   : > { %4056 = vmatmul.msk.bf16.vlgmr.msra.gmra.mxu1 %vm1708_vm15, %v5250_v47 }
 0x558   : > { %4057 = vmatmul.msk.bf16.gmra.mxu1 %vm1708_vm15, %v5268_v27 }
 0x5c5   : > { %v1730_v28 = vpop.f32.mrf.mxu1 }
 0x5c6   : > { %v1740_v39 = vmul.f32 0.17677669, %v1730_v28 }
 0x5c8   : > { %v1744_v40 = vadd.f32 %v1740_v39, %v5279_v36 }
 0x5ca   : > { %v1748_v34 = vsel %vm1708_vm15, %v1744_v40, -inf }
 0x5cb   : > { %1749 = vmax.xlane.f32.xlu1 %v1748_v34 }
 0x5cd   : > { %v1732_v12 = vpop.f32.mrf.mxu1 }
 0x5ce   : > { %v1741_v43 = vmul.f32 0.17677669, %v1732_v12 }
 0x5d0   : > { %v1745_v46 = vadd.f32 %v1741_v43, %v5286_v42 }
 0x5d2   : > { %v1751_v35 = vsel %vm1708_vm15, %v1745_v46, -inf }
 0x5d3   : > { %1752 = vmax.xlane.f32.xlu2 %v1751_v35 }
 0x5d5   : > { %v1735_v50 = vpop.f32.mrf.mxu1 }
 0x5d6   : > { %v1742_v41 = vmul.f32 0.17677669, %v1735_v50 }
 0x5d8   : > { %v1746_v55 = vadd.f32 %v1742_v41, %v5293_v54 }
 0x5da   : > { %v1754_v57 = vsel %vm1708_vm15, %v1746_v55, -inf }
 0x5db   : > { %1755 = vmax.xlane.f32.xlu0 %v1754_v57 }
 0x5dd   : > { %v1737_v59 = vpop.f32.mrf.mxu1 }
 0x5de   : > { %v1743_v48 = vmul.f32 0.17677669, %v1737_v59 }
 0x5e0   : > { %v1747_v53 = vadd.f32 %v1743_v48, %v5300_v60 }
 0x5e2   : > { %v1757_v52 = vsel %vm1708_vm15, %v1747_v53, -inf }
 0x5e3   : > { %1758 = vmax.xlane.f32.xlu1 %v1757_v52 }
 0x63e   : > { %v1750_v56 = vpop.xlane.xlu1 %1749 }
 0x63f   : > { %v1760_v62 = vsub.f32 %v1744_v40, %v1750_v56 }
 0x641   : > { %v1764_v63 = vmul.f32 1.442695, %v1760_v62 }
 0x643   : > { %4497 = vpow2.f32 %v1764_v63 }
 0x646   : > { %v1753_v18 = vpop.xlane.xlu2 %1752 }
 0x647   : > { %v1761_v17 = vsub.f32 %v1745_v46, %v1753_v18 }
 0x649   : > { %v4498_v44 = vpop.eup %4497  ;;  %v1766_v1 = vmul.f32 1.442695, %v1761_v17 }
 0x64a   : > { %v1772_v45 = vsel %vm1708_vm15, %v4498_v44, 0.0 }
 0x64b   : > { %4499 = vpow2.f32 %v1766_v1  ;;  %1773 = vadd.xlane.f32.xlu2 %v1772_v45 }
 0x64e   : > { %v1756_v2 = vpop.xlane.xlu0 %1755 }
 0x64f   : > { %v1762_v15 = vsub.f32 %v1746_v55, %v1756_v2 }
 0x651   : > { %v4500_v4 = vpop.eup %4499  ;;  %v1768_v5 = vmul.f32 1.442695, %v1762_v15 }
 0x652   : > { %v1775_v25 = vsel %vm1708_vm15, %v4500_v4, 0.0 }
 0x653   : > { %4501 = vpow2.f32 %v1768_v5  ;;  %1776 = vadd.xlane.f32.xlu0 %v1775_v25 }
 0x656   : > { %v1759_v33 = vpop.xlane.xlu1 %1758 }
 0x657   : > { %v1763_v58 = vsub.f32 %v1747_v53, %v1759_v33 }
 0x659   : > { %v4502_v19 = vpop.eup %4501  ;;  %v1770_v6 = vmul.f32 1.442695, %v1763_v58 }
 0x65a   : > { %v1778_v7 = vsel %vm1708_vm15, %v4502_v19, 0.0 }
 0x65b   : > { %4503 = vpow2.f32 %v1770_v6  ;;  %1779 = vadd.xlane.f32.xlu1 %v1778_v7 }
 0x661   : > { %v4504_v8 = vpop.eup %4503 }
 0x662   : > { %v1781_v10 = vsel %vm1708_vm15, %v4504_v8, 0.0 }
 0x663   : > { %1782 = vadd.xlane.f32.xlu2 %v1781_v10 }
 0x667   : > { %1837 = vrot.lane.b32.xlu0 %v5264_v30, %s4691_s21 }
 0x66f   : > { %2214 = vrot.lane.b32.xlu0 %v5264_v30, %s4692_s28 }
 0x674   : > { %1835 = vrot.lane.b32.xlu1 %v5248_v61, %s4691_s21 }
 0x677   : > { %2212 = vrot.lane.b32.xlu0 %v5248_v61, %s4692_s28 }
 0x67b   : > { %1829 = vrot.lane.b32.xlu2 %v5250_v47, %s4691_s21 }
 0x67c   : > { %2043 = vrot.lane.b32.xlu1 %v5264_v30, %s4693_s8 }
 0x67f   : > { %2037 = vrot.lane.b32.xlu0 %v5250_v47, %s4693_s8 }
 0x683   : > { %1831 = vrot.lane.b32.xlu2 %v5268_v27, %s4691_s21 }
 0x684   : > { %2208 = vrot.lane.b32.xlu1 %v5250_v47, %s4692_s28 }
 0x68b   : > { %2041 = vrot.lane.b32.xlu2 %v5248_v61, %s4693_s8 }
 0x68c   : > { %2039 = vrot.lane.b32.xlu1 %v5268_v27, %s4693_s8 }
 0x693   : > { %2210 = vrot.lane.b32.xlu2 %v5268_v27, %s4692_s28 }
 0x6be   : > { %v1774_v9 = vpop.xlane.xlu2 %1773 }
 0x6bf   : > { %4505 = vrcp.f32 %v1774_v9 }
 0x6c5   : > { %v4506_v13 = vpop.eup %4505 }
 0x6c6   : > { %v1777_v16 = vpop.xlane.xlu0 %1776  ;;  %v1788_v47 = vmul.f32 %v4506_v13, %v4498_v44 }
 0x6c7   : > { %4507 = vrcp.f32 %v1777_v16 }
 0x6cd   : > { %v4508_v30 = vpop.eup %4507 }
 0x6ce   : > { %v1789_v14 = vmul.f32 %v4508_v30, %v4500_v4  ;;  %v1780_v61 = vpop.xlane.xlu1 %1779 }
 0x6cf   : > { %4509 = vrcp.f32 %v1780_v61 }
 0x6d0   : > { %v1792_v22 = vpack.c.bf16 %v1789_v14, %v1788_v47 }
 0x6d2   : > { %4058 = vmatmul.msk.bf16.vlgmr.msra.gmra.mxu2 %vm1708_vm15, %v1792_v22 }
 0x6d5   : > { %v4510_v24 = vpop.eup %4509 }
 0x6d6   : > { %v1783_v20 = vpop.xlane.xlu2 %1782  ;;  %v1790_v27 = vmul.f32 %v4510_v24, %v4502_v19 }
 0x6d7   : > { %4511 = vrcp.f32 %v1783_v20 }
 0x6d9   : > { %v1838_v21 = vpop.permute.xlu0 %1837 }
 0x6da   : > { %v1849_v3 = vsel %vm1708_vm15, %v1838_v21, 0 }
 0x6db   : > { %1857 = vmatpush.bf16.xpose.msra.mxu3 %v1849_v3 }
 0x6dd   : > { %v4512_v26 = vpop.eup %4511 }
 0x6de   : > { %v1791_v31 = vmul.f32 %v4512_v26, %v4504_v8  ;;  %v1830_v28 = vpop.permute.xlu2 %1829 }
 0x6e0   : > { %v1793_v39 = vpack.c.bf16 %v1791_v31, %v1790_v27 }
 0x6e1   : > { %v2215_v40 = vpop.permute.xlu0 %2214 }
 0x6e2   : > { %v2226_v34 = vsel %vm1708_vm15, %v2215_v40, 0  ;;  %4059 = vmatmul.msk.bf16.gmra.mxu2 %vm1708_vm15, %v1793_v39 }
 0x6e3   : > { %2234 = vmatpush.bf16.xpose.msra.mxu2 %v2226_v34 }
 0x6e6   : > { %v1836_v12 = vpop.permute.xlu1 %1835  ;;  %v1832_v35 = vpop.permute.xlu2 %1831 }
 0x6e7   : > { %v1846_v43 = vsel %vm1708_vm15, %v1836_v12, 0 }
 0x6e8   : > { %1858 = vmatpush.bf16.xpose.msra.mxu3 %v1846_v43 }
 0x6e9   : > { %v2213_v46 = vpop.permute.xlu0 %2212 }
 0x6ea   : > { %v2223_v50 = vsel %vm1708_vm15, %v2213_v46, 0 }
 0x6eb   : > { %2235 = vmatpush.bf16.xpose.msra.mxu2 %v2223_v50 }
 0x6ee   : > { %v2044_v41 = vpop.permute.xlu1 %2043  ;;  %v2042_v57 = vpop.permute.xlu2 %2041 }
 0x6ef   : > { %v2055_v55 = vsel %vm1708_vm15, %v2044_v41, 0  ;;  %4060 = vmatmul.msk.bf16.vlgmr.msra.gmra.mxu3 %vm1708_vm15, %v1830_v28  ;;  %v2052_v59 = vsel %vm1708_vm15, %v2042_v57, 0 }
 0x6f0   : > { %2063 = vmatpush.bf16.xpose.msrb.mxu3 %v2055_v55 }
 0x6f1   : > { %v2038_v48 = vpop.permute.xlu0 %2037 }
 0x6f6   : > { %v2209_v53 = vpop.permute.xlu1 %2208  ;;  %v2211_v9 = vpop.permute.xlu2 %2210 }
 0x6f8   : > { %2064 = vmatpush.bf16.xpose.msrb.mxu3 %v2052_v59 }
 0x6fe   : > { %v2040_v52 = vpop.permute.xlu1 %2039 }
 0x6ff   : > { %4061 = vmatmul.msk.bf16.gmra.mxu3 %vm1708_vm15, %v1832_v35 }
 0x70f   : > { %4084 = vmatmul.msk.bf16.vlgmr.msrb.gmra.mxu3 %vm1708_vm15, %v2038_v48 }
 0x71f   : > { %4085 = vmatmul.msk.bf16.gmra.mxu3 %vm1708_vm15, %v2040_v52 }
 0x755   : > { %v1811_v56 = vpop.f32.mrf.mxu2 }
 0x75d   : > { %v1813_v62 = vpop.f32.mrf.mxu2 }
 0x75e   : > { %v1821_v63 = vpack.c.bf16 %v1813_v62, %v1811_v56 }
 0x760   : > { %4082 = vmatmul.msk.bf16.vlgmr.msrb.gmra.mxu2 %vm1708_vm15, %v1821_v63 }
 0x765   : > { %v1816_v18 = vpop.f32.mrf.mxu2 }
 0x76d   : > { %v1818_v17 = vpop.f32.mrf.mxu2 }
 0x76e   : > { %v1822_v44 = vpack.c.bf16 %v1818_v17, %v1816_v18 }
 0x770   : > { %4083 = vmatmul.msk.bf16.gmra.mxu2 %vm1708_vm15, %v1822_v44 }
 0x772   : > { %v1860_v1 = vpop.f32.mrf.mxu3 }
 0x773   : > { %v1870_v45 = vmul.f32 0.17677669, %v1860_v1 }
 0x775   : > { %v1874_v2 = vadd.f32 %v1870_v45, %v5279_v36 }
 0x777   : > { %v1878_v15 = vsel %vm1708_vm15, %v1874_v2, -inf }
 0x778   : > { %1879 = vmax.xlane.f32.xlu0 %v1878_v15 }
 0x77a   : > { %v1862_v4 = vpop.f32.mrf.mxu3 }
 0x77b   : > { %v1871_v5 = vmul.f32 0.17677669, %v1862_v4 }
 0x77d   : > { %v1875_v25 = vadd.f32 %v1871_v5, %v5286_v42 }
 0x77f   : > { %v1881_v33 = vsel %vm1708_vm15, %v1875_v25, -inf }
 0x780   : > { %1882 = vmax.xlane.f32.xlu2 %v1881_v33  ;;  %4098 = vmatmul.msk.bf16.vlgmr.msra.gmra.mxu2 %vm1708_vm15, %v2209_v53 }
 0x782   : > { %v1865_v58 = vpop.f32.mrf.mxu3 }
 0x783   : > { %v1872_v19 = vmul.f32 0.17677669, %v1865_v58 }
 0x785   : > { %v1876_v6 = vadd.f32 %v1872_v19, %v5293_v54 }
 0x787   : > { %v1884_v7 = vsel %vm1708_vm15, %v1876_v6, -inf }
 0x788   : > { %1885 = vmax.xlane.f32.xlu1 %v1884_v7 }
 0x78a   : > { %v1867_v8 = vpop.f32.mrf.mxu3 }
 0x78b   : > { %v1873_v10 = vmul.f32 0.17677669, %v1867_v8 }
 0x78d   : > { %v1877_v23 = vadd.f32 %v1873_v10, %v5300_v60 }
 0x78f   : > { %v1887_v11 = vsel %vm1708_vm15, %v1877_v23, -inf }
 0x790   : > { %1888 = vmax.xlane.f32.xlu0 %v1887_v11  ;;  %4099 = vmatmul.msk.bf16.gmra.mxu2 %vm1708_vm15, %v2211_v9 }
 0x792   : > { %v2066_v16 = vpop.f32.mrf.mxu3 }
 0x793   : > { %v2076_v24 = vmul.f32 0.17677669, %v2066_v16 }
 0x795   : > { %v2080_v31 = vadd.f32 %v2076_v24, %v5279_v36 }
 0x797   : > { %v2084_v39 = vsel %vm1708_vm15, %v2080_v31, -inf }
 0x798   : > { %2303 = vrot.lane.b32.xlu2 %v5230_v49, %s4692_s28 }
 0x79a   : > { %v2068_v13 = vpop.f32.mrf.mxu3 }
 0x79b   : > { %v2077_v47 = vmul.f32 0.17677669, %v2068_v13 }
 0x79d   : > { %v5365_v14 = vadd.f32 %v2077_v47, %v5286_v42 }
 0x79f   : > { %v2087_v20 = vsel %vm1708_vm15, %v5365_v14, -inf }
 0x7a1   : > { %1928 = vrot.lane.b32.xlu1 %v5230_v49, %s4691_s21 }
 0x7a2   : > { %v2071_v30 = vpop.f32.mrf.mxu3 }
 0x7a3   : > { %v2078_v61 = vmul.f32 0.17677669, %v2071_v30 }
 0x7a4   : > { %1926 = vrot.lane.b32.xlu0 %v5233_v51, %s4691_s21 }
 0x7a5   : > { %v5370_v3 = vadd.f32 %v2078_v61, %v5293_v54 }
 0x7a7   : > { %v2090_v27 = vsel %vm1708_vm15, %v5370_v3, -inf }
 0x7aa   : > { %v2073_v22 = vpop.f32.mrf.mxu3 }
 0x7ab   : > { %v2079_v21 = vmul.f32 0.17677669, %v2073_v22 }
 0x7ad   : > { %v5373_v26 = vadd.f32 %v2079_v21, %v5300_v60 }
 0x7af   : > { %v2093_v28 = vsel %vm1708_vm15, %v5373_v26, -inf }
 0x7c1   : > { %2088 = vmax.xlane.f32.xlu2 %v2087_v20 }
 0x7c9   : > { %2091 = vmax.xlane.f32.xlu2 %v2090_v27 }
 0x7cb   : > { %2094 = vmax.xlane.f32.xlu1 %v2093_v28 }
 0x7ce   : > { %2085 = vmax.xlane.f32.xlu0 %v2084_v39 }
 0x7e3   : > { %v5381_v40 = vpop.f32.mrf.mxu2 }
 0x7eb   : > { %v5383_v34 = vpop.f32.mrf.mxu2  ;;  %v1880_v12 = vpop.xlane.xlu0 %1879 }
 0x7ec   : > { %v1890_v43 = vsub.f32 %v1874_v2, %v1880_v12 }
 0x7ee   : > { %v1894_v46 = vmul.f32 1.442695, %v1890_v43 }
 0x7f0   : > { %4513 = vpow2.f32 %v1894_v46 }
 0x7f3   : > { %v5385_v35 = vpop.f32.mrf.mxu2  ;;  %v1883_v50 = vpop.xlane.xlu2 %1882 }
 0x7f4   : > { %v1891_v41 = vsub.f32 %v1875_v25, %v1883_v50 }
 0x7f6   : > { %v5387_v55 = vpop.eup %4513  ;;  %v1896_v57 = vmul.f32 1.442695, %v1891_v41 }
 0x7f7   : > { %v1902_v59 = vsel %vm1708_vm15, %v5387_v55, 0.0 }
 0x7f8   : > { %4515 = vpow2.f32 %v1896_v57  ;;  %1903 = vadd.xlane.f32.xlu0 %v1902_v59 }
 0x7fb   : > { %v5391_v48 = vpop.f32.mrf.mxu2  ;;  %v2304_v53 = vpop.permute.xlu2 %2303 }
 0x7fc   : > { %v1886_v52 = vpop.xlane.xlu1 %1885  ;;  %2319 = vmatpush.bf16.msra.mxu3 %v2304_v53 }
 0x7fd   : > { %v1892_v56 = vsub.f32 %v1876_v6, %v1886_v52 }
 0x7fe   : > { %v4516_v62 = vpop.eup %4515 }
 0x7ff   : > { %v1898_v63 = vmul.f32 1.442695, %v1892_v56  ;;  %v1905_v18 = vsel %vm1708_vm15, %v4516_v62, 0.0 }
 0x800   : > { %1906 = vadd.xlane.f32.xlu2 %v1905_v18 }
 0x801   : > { %4517 = vpow2.f32 %v1898_v63 }
 0x803   : > { %v1889_v17 = vpop.xlane.xlu0 %1888  ;;  %v2237_v44 = vpop.f32.mrf.mxu2 }
 0x804   : > { %v1893_v1 = vsub.f32 %v1877_v23, %v1889_v17  ;;  %v2247_v13 = vmul.f32 0.17677669, %v2237_v44 }
 0x806   : > { %v1900_v45 = vmul.f32 1.442695, %v1893_v1  ;;  %v2251_v61 = vadd.f32 %v2247_v13, %v5279_v36 }
 0x807   : > { %v4518_v2 = vpop.eup %4517 }
 0x808   : > { %4519 = vpow2.f32 %v1900_v45  ;;  %v1908_v15 = vsel %vm1708_vm15, %v4518_v2, 0.0  ;;  %v2255_v20 = vsel %vm1708_vm15, %v2251_v61, -inf }
 0x809   : > { %1909 = vadd.xlane.f32.xlu2 %v1908_v15 }
 0x80b   : > { %v2239_v4 = vpop.f32.mrf.mxu2 }
 0x80e   : > { %v4520_v5 = vpop.eup %4519 }
 0x80f   : > { %v1911_v25 = vsel %vm1708_vm15, %v4520_v5, 0.0 }
 0x811   : > { %1912 = vadd.xlane.f32.xlu2 %v1911_v25 }
 0x813   : > { %v2242_v33 = vpop.f32.mrf.mxu2  ;;  %v1929_v58 = vpop.permute.xlu1 %1928 }
 0x814   : > { %1944 = vmatpush.bf16.msrb.mxu0 %v1929_v58  ;;  %v2249_v28 = vmul.f32 0.17677669, %v2242_v33 }
 0x816   : > { %v1927_v19 = vpop.permute.xlu0 %1926 }
 0x818   : > { %1945 = vmatpush.bf16.msrb.mxu0 %v1927_v19 }
 0x81b   : > { %v2244_v6 = vpop.f32.mrf.mxu2 }
 0x81c   : > { %v2250_v7 = vmul.f32 0.17677669, %v2244_v6 }
 0x81e   : > { %v5397_v8 = vadd.f32 %v2250_v7, %v5300_v60 }
 0x820   : > { %v2264_v10 = vsel %vm1708_vm15, %v5397_v8, -inf }
 0x821   : > { %2265 = vmax.xlane.f32.xlu0 %v2264_v10 }
 0x834   : > { %v2089_v23 = vpop.xlane.xlu2 %2088 }
 0x835   : > { %v2097_v9 = vsub.f32 %v5365_v14, %v2089_v23  ;;  %v2248_v14 = vmul.f32 0.17677669, %v2239_v4 }
 0x837   : > { %v2102_v11 = vmul.f32 1.442695, %v2097_v9  ;;  %v2252_v27 = vadd.f32 %v2248_v14, %v5286_v42 }
 0x839   : > { %4521 = vpow2.f32 %v2102_v11  ;;  %v2258_v39 = vsel %vm1708_vm15, %v2252_v27, -inf }
 0x83c   : > { %v2092_v12 = vpop.xlane.xlu2 %2091 }
 0x83d   : > { %v2098_v44 = vsub.f32 %v5370_v3, %v2092_v12 }
 0x83e   : > { %v2095_v15 = vpop.xlane.xlu1 %2094 }
 0x83f   : > { %v5402_v16 = vpop.eup %4521  ;;  %v2104_v1 = vmul.f32 1.442695, %v2098_v44  ;;  %v2099_v14 = vsub.f32 %v5373_v26, %v2095_v15 }
 0x840   : > { %v2111_v30 = vsel %vm1708_vm15, %v5402_v16, 0.0 }
 0x841   : > { %v2086_v47 = vpop.xlane.xlu0 %2085  ;;  %2112 = vadd.xlane.f32.xlu2 %v2111_v30 }
 0x842   : > { %v2096_v22 = vsub.f32 %v2080_v31, %v2086_v47  ;;  %v5412_v31 = vadd.f32 %v2249_v28, %v5293_v54  ;;  %v4360_v47 = vld [vmem:[%s4817_s13 + $0x18] sm:$0xff] }
 0x843   : > { %1987 = vmatpush.bf16.msrb.mxu1 %v4360_v47 }
 0x844   : > { %v2100_v60 = vmul.f32 1.442695, %v2096_v22  ;;  %v2261_v36 = vsel %vm1708_vm15, %v5412_v31, -inf  ;;  %v4359_v22 = vld [vmem:[%s4817_s13 + $0x10] sm:$0xff] }
 0x846   : > { %4523 = vpow2.f32 %v2100_v60 }
 0x847   : > { %1988 = vmatpush.bf16.msrb.mxu1 %v4359_v22 }
 0x849   : > { %2256 = vmax.xlane.f32.xlu2 %v2255_v20 }
 0x84c   : > { %v4524_v21 = vpop.eup %4523 }
 0x84d   : > { %v2108_v24 = vsel %vm1708_vm15, %v4524_v21, 0.0 }
 0x84e   : > { %2109 = vadd.xlane.f32.xlu1 %v2108_v24 }
 0x856   : > { %2259 = vmax.xlane.f32.xlu1 %v2258_v39 }
 0x85e   : > { %2262 = vmax.xlane.f32.xlu1 %v2261_v36 }
 0x86b   : > { %v1904_v43 = vpop.xlane.xlu0 %1903 }
 0x86c   : > { %4525 = vrcp.f32 %v1904_v43 }
 0x872   : > { %v4526_v42 = vpop.eup %4525 }
 0x873   : > { %v1907_v46 = vpop.xlane.xlu2 %1906  ;;  %v1918_v41 = vmul.f32 %v4526_v42, %v5387_v55 }
 0x874   : > { %4527 = vrcp.f32 %v1907_v46 }
 0x877   : > { %2130 = vrot.lane.b32.xlu1 %v5233_v51, %s4693_s8 }
 0x87a   : > { %v4528_v50 = vpop.eup %4527 }
 0x87b   : > { %v1919_v57 = vmul.f32 %v4528_v50, %v4516_v62 }
 0x87c   : > { %v1910_v59 = vpop.xlane.xlu2 %1909 }
 0x87d   : > { %v1922_v54 = vpack.c.bf16 %v1919_v57, %v1918_v41  ;;  %4529 = vrcp.f32 %v1910_v59 }
 0x87f   : > { %4062 = vmatmul.msk.bf16.vlgmr.msrb.gmra.mxu0 %vm1708_vm15, %v1922_v54 }
 0x883   : > { %v4530_v52 = vpop.eup %4529 }
 0x884   : > { %v1913_v53 = vpop.xlane.xlu2 %1912  ;;  %v1920_v63 = vmul.f32 %v4530_v52, %v4518_v2 }
 0x885   : > { %4531 = vrcp.f32 %v1913_v53 }
 0x886   : > { %4533 = vpow2.f32 %v2104_v1 }
 0x88b   : > { %v4532_v56 = vpop.eup %4531 }
 0x88c   : > { %v1921_v18 = vmul.f32 %v4532_v56, %v4520_v5  ;;  %v5422_v55 = vpop.eup %4533 }
 0x88d   : > { %v2114_v62 = vsel %vm1708_vm15, %v5422_v55, 0.0 }
 0x88e   : > { %v1923_v17 = vpack.c.bf16 %v1921_v18, %v1920_v63 }
 0x890   : > { %4063 = vmatmul.msk.bf16.gmra.mxu0 %vm1708_vm15, %v1923_v17 }
 0x8a1   : > { %2115 = vadd.xlane.f32.xlu1 %v2114_v62 }
 0x8b4   : > { %v2113_v45 = vpop.xlane.xlu2 %2112 }
 0x8b5   : > { %4535 = vrcp.f32 %v2113_v45 }
 0x8bb   : > { %v4536_v3 = vpop.eup %4535 }
 0x8bc   : > { %v2257_v4 = vpop.xlane.xlu2 %2256  ;;  %v2125_v6 = vmul.f32 %v4536_v3, %v5402_v16 }
 0x8bd   : > { %v2267_v25 = vsub.f32 %v2251_v61, %v2257_v4 }
 0x8bf   : > { %v2271_v33 = vmul.f32 1.442695, %v2267_v25 }
 0x8c1   : > { %4537 = vpow2.f32 %v2271_v33  ;;  %v2110_v2 = vpop.xlane.xlu1 %2109 }
 0x8c2   : > { %4539 = vrcp.f32 %v2110_v2 }
 0x8c7   : > { %v4538_v5 = vpop.eup %4537 }
 0x8c8   : > { %v4540_v58 = vpop.eup %4539  ;;  %v2279_v19 = vsel %vm1708_vm15, %v4538_v5, 0.0 }
 0x8c9   : > { %v2124_v7 = vmul.f32 %v4540_v58, %v4524_v21  ;;  %2280 = vadd.xlane.f32.xlu2 %v2279_v19  ;;  %v2260_v10 = vpop.xlane.xlu1 %2259  ;;  %v2266_v21 = vpop.xlane.xlu0 %2265 }
 0x8ca   : > { %v2268_v23 = vsub.f32 %v2252_v27, %v2260_v10  ;;  %v2270_v24 = vsub.f32 %v5397_v8, %v2266_v21  ;;  %v2106_v27 = vmul.f32 1.442695, %v2099_v14  ;;  %v4364_v10 = vld [vmem:[%s4817_s13 + $0x38] sm:$0xff] }
 0x8cb   : > { %v2128_v9 = vpack.c.bf16 %v2125_v6, %v2124_v7  ;;  %v4362_v6 = vld [vmem:[%s4817_s13 + $0x28] sm:$0xff]  ;;  %v4361_v7 = vld [vmem:[%s4817_s13 + $0x20] sm:$0xff] }
 0x8cc   : > { %v2273_v11 = vmul.f32 1.442695, %v2268_v23  ;;  %v2277_v36 = vmul.f32 1.442695, %v2270_v24  ;;  %2191 = vmatpush.bf16.msra.mxu1 %v4362_v6 }
 0x8ce   : > { %4541 = vpow2.f32 %v2273_v11 }
 0x8d0   : > { %2192 = vmatpush.bf16.msra.mxu1 %v4361_v7 }
 0x8d1   : > { %v2263_v16 = vpop.xlane.xlu1 %2262 }
 0x8d2   : > { %v2269_v60 = vsub.f32 %v5412_v31, %v2263_v16 }
 0x8d4   : > { %v4542_v13 = vpop.eup %4541  ;;  %v2275_v61 = vmul.f32 1.442695, %v2269_v60 }
 0x8d5   : > { %v2282_v30 = vsel %vm1708_vm15, %v4542_v13, 0.0 }
 0x8d6   : > { %2283 = vadd.xlane.f32.xlu0 %v2282_v30  ;;  %4543 = vpow2.f32 %v2275_v61 }
 0x8d7   : > { %4545 = vpow2.f32 %v2106_v27 }
 0x8d8   : > { %4547 = vpow2.f32 %v2277_v36 }
 0x8e1   : > { %2132 = vrot.lane.b32.xlu2 %v5230_v49, %s4693_s8  ;;  %v4544_v49 = vpop.eup %4543 }
 0x8e2   : > { %v4546_v12 = vpop.eup %4545 }
 0x8e3   : > { %v4548_v43 = vpop.eup %4547  ;;  %v2117_v26 = vsel %vm1708_vm15, %v4546_v12, 0.0 }
 0x8e4   : > { %v2288_v8 = vsel %vm1708_vm15, %v4548_v43, 0.0 }
 0x8e9   : > { %v2131_v57 = vpop.permute.xlu1 %2130 }
 0x8ea   : > { %2301 = vrot.lane.b32.xlu0 %v5233_v51, %s4692_s28  ;;  %v2285_v51 = vsel %vm1708_vm15, %v4544_v49, 0.0 }
 0x8fc   : > { %v1947_v20 = vpop.f32.mrf.mxu0 }
 0x904   : > { %v1949_v28 = vpop.f32.mrf.mxu0 }
 0x905   : > { %v1957_v39 = vpack.c.bf16 %v1949_v28, %v1947_v20 }
 0x907   : > { %4072 = vmatmul.msk.bf16.vlgmr.msrb.gmra.mxu1 %vm1708_vm15, %v1957_v39 }
 0x90a   : > { %2286 = vadd.xlane.f32.xlu2 %v2285_v51 }
 0x90d   : > { %v1952_v31 = vpop.f32.mrf.mxu0 }
 0x912   : > { %2118 = vadd.xlane.f32.xlu2 %v2117_v26 }
 0x914   : > { %2289 = vadd.xlane.f32.xlu0 %v2288_v8  ;;  %v2116_v44 = vpop.xlane.xlu1 %2115 }
 0x915   : > { %v1954_v46 = vpop.f32.mrf.mxu0 }
 0x916   : > { %v1958_v42 = vpack.c.bf16 %v1954_v46, %v1952_v31 }
 0x918   : > { %4073 = vmatmul.msk.bf16.gmra.mxu1 %vm1708_vm15, %v1958_v42 }
 0x93c   : > { %v2281_v50 = vpop.xlane.xlu2 %2280 }
 0x944   : > { %v2133_v41 = vpop.permute.xlu2 %2132 }
 0x945   : > { %2148 = vmatpush.bf16.msra.mxu0 %v2133_v41 }
 0x949   : > { %2149 = vmatpush.bf16.msra.mxu0 %v2131_v57  ;;  %v2284_v59 = vpop.xlane.xlu0 %2283 }
 0x94a   : > { %4549 = vrcp.f32 %v2284_v59 }
 0x94b   : > { %4551 = vrcp.f32 %v2281_v50 }
 0x94c   : > { %4086 = vmatmul.msk.bf16.vlgmr.msra.gmra.mxu0 %vm1708_vm15, %v2128_v9  ;;  %4553 = vrcp.f32 %v2116_v44  ;;  %v4363_v9 = vld [vmem:[%s4817_s13 + $0x30] sm:$0xff] }
 0x94d   : > { %2362 = vmatpush.bf16.msrb.mxu0 %v4364_v10 }
 0x950   : > { %v4550_v54 = vpop.eup %4549 }
 0x951   : > { %v4552_v53 = vpop.eup %4551  ;;  %v2296_v52 = vmul.f32 %v4550_v54, %v4542_v13  ;;  %2363 = vmatpush.bf16.msrb.mxu0 %v4363_v9 }
 0x952   : > { %v2295_v56 = vmul.f32 %v4552_v53, %v4538_v5  ;;  %v4554_v45 = vpop.eup %4553 }
 0x953   : > { %v2126_v25 = vmul.f32 %v4554_v45, %v5422_v55 }
 0x954   : > { %v2299_v18 = vpack.c.bf16 %v2296_v52, %v2295_v56 }
 0x95c   : > { %v2302_v63 = vpop.permute.xlu0 %2301 }
 0x95d   : > { %2320 = vmatpush.bf16.msra.mxu3 %v2302_v63 }
 0x960   : > { %4100 = vmatmul.msk.bf16.vlgmr.msra.gmra.mxu3 %vm1708_vm15, %v2299_v18 }
 0x97d   : > { %v2287_v17 = vpop.xlane.xlu2 %2286 }
 0x97e   : > { %4555 = vrcp.f32 %v2287_v17 }
 0x984   : > { %v4556_v15 = vpop.eup %4555  ;;  %v1990_v14 = vpop.f32.mrf.mxu1 }
 0x985   : > { %v2119_v1 = vpop.xlane.xlu2 %2118  ;;  %v2297_v5 = vmul.f32 %v4556_v15, %v4544_v49  ;;  %v2028_v49 = vadd.f32 %v5381_v40, %v1990_v14 }
 0x986   : > { %4557 = vrcp.f32 %v2119_v1 }
 0x987   : > { %v2290_v62 = vpop.xlane.xlu0 %2289 }
 0x988   : > { %4559 = vrcp.f32 %v2290_v62 }
 0x98c   : > { %v4558_v4 = vpop.eup %4557  ;;  %v1992_v24 = vpop.f32.mrf.mxu1 }
 0x98d   : > { %v2127_v33 = vmul.f32 %v4558_v4, %v4546_v12  ;;  %v2030_v26 = vadd.f32 %v5383_v34, %v1992_v24 }
 0x98e   : > { %v4560_v2 = vpop.eup %4559 }
 0x98f   : > { %v2129_v3 = vpack.c.bf16 %v2127_v33, %v2126_v25  ;;  %v2298_v58 = vmul.f32 %v4560_v2, %v4548_v43 }
 0x991   : > { %4087 = vmatmul.msk.bf16.gmra.mxu0 %vm1708_vm15, %v2129_v3  ;;  %v2300_v19 = vpack.c.bf16 %v2298_v58, %v2297_v5 }
 0x993   : > { %4101 = vmatmul.msk.bf16.gmra.mxu3 %vm1708_vm15, %v2300_v19 }
 0x995   : > { %v1995_v27 = vpop.f32.mrf.mxu1 }
 0x99d   : > { %v1997_v28 = vpop.f32.mrf.mxu1 }
 0x99e   : > { %v2035_v56 = vadd.f32 %v5391_v48, %v1997_v28  ;;  %v4123_v28 = vld [vmem:[%s4822_s4 + $0x10] sm:$0xf] }
 0x9c9   : > { %v2151_v23 = vpop.f32.mrf.mxu0 }
 0x9d1   : > { %v2153_v55 = vpop.f32.mrf.mxu0 }
 0x9d2   : > { %v2161_v11 = vpack.c.bf16 %v2153_v55, %v2151_v23  ;;  %v4139_v55 = vld [vmem:[%s4822_s4 + $0x30] sm:$0xf] }
 0x9d4   : > { %4096 = vmatmul.msk.bf16.vlgmr.msra.gmra.mxu1 %vm1708_vm15, %v2161_v11  ;;  %v4372_v11 = vld [vmem:[%s4822_s4 + $0x34] sm:$0xf0] }
 0x9e3   : > { %v2322_v13 = vpop.f32.mrf.mxu3 }
 0x9eb   : > { %v2324_v30 = vpop.f32.mrf.mxu3 }
 0x9ec   : > { %v2332_v47 = vpack.c.bf16 %v2324_v30, %v2322_v13  ;;  %v4371_v13 = vld [vmem:[%s4822_s4 + $0x34] sm:$0xf]  ;;  %v4140_v30 = vor.u32 %v4372_v11, %v4139_v55 }
 0x9ee   : > { %4110 = vmatmul.msk.bf16.vlgmr.msrb.gmra.mxu0 %vm1708_vm15, %v2332_v47  ;;  %v4141_v47 = vld [vmem:[%s4822_s4 + $0x38] sm:$0xf0]  ;;  %2538 = vmatpush.bf16.msrb.mxu1 %v4140_v30 }
 0xa0e   : > { %v2156_v22 = vpop.f32.mrf.mxu0 }
 0xa16   : > { %v2158_v16 = vpop.f32.mrf.mxu0  ;;  %v2327_v60 = vpop.f32.mrf.mxu3 }
 0xa17   : > { %v2162_v61 = vpack.c.bf16 %v2158_v16, %v2156_v22  ;;  %v4144_v22 = vor.u32 %v4371_v13, %v4141_v47  ;;  %v4131_v16 = vld [vmem:[%s4822_s4 + $0x20] sm:$0xf] }
 0xa19   : > { %4097 = vmatmul.msk.bf16.gmra.mxu1 %vm1708_vm15, %v2162_v61  ;;  %2557 = vmatpush.bf16.msrb.mxu2 %v4144_v22  ;;  %v4369_v61 = vld [vmem:[%s4822_s4 + $0x24] sm:$0xf] }
 0xa1e   : > { %v2329_v20 = vpop.f32.mrf.mxu3 }
 0xa1f   : > { %v2333_v21 = vpack.c.bf16 %v2329_v20, %v2327_v60  ;;  %v4370_v60 = vld [vmem:[%s4822_s4 + $0x24] sm:$0xf0] }
 0xa20   : > { %v4132_v20 = vor.u32 %v4370_v60, %v4131_v16 }
 0xa21   : > { %4111 = vmatmul.msk.bf16.gmra.mxu0 %vm1708_vm15, %v2333_v21  ;;  %v4133_v21 = vld [vmem:[%s4822_s4 + $0x28] sm:$0xf0] }
 0xa22   : > { %v4136_v14 = vor.u32 %v4369_v61, %v4133_v21  ;;  %2539 = vmatpush.bf16.msrb.mxu1 %v4132_v20 }
 0xa24   : > { %2558 = vmatpush.bf16.msrb.mxu2 %v4136_v14 }
 0xa51   : > { %v2194_v39 = vpop.f32.mrf.mxu1 }
 0xa52   : > { %v2204_v36 = vadd.f32 %v2194_v39, %v2028_v49  ;;  %v4368_v39 = vld [vmem:[%s4822_s4 + $0x14] sm:$0xf0]  ;;  %v4367_v49 = vld [vmem:[%s4822_s4 + $0x14] sm:$0xf] }
 0xa59   : > { %v2196_v43 = vpop.f32.mrf.mxu1 }
 0xa5a   : > { %v2205_v46 = vadd.f32 %v2196_v43, %v2030_v26  ;;  %v4366_v43 = vld [vmem:[%s4822_s4 + $0x4] sm:$0xf0] }
 0xa6b   : > { %v2365_v51 = vpop.f32.mrf.mxu0 }
 0xa6c   : > { %v2375_v31 = vadd.f32 %v2365_v51, %v2204_v36  ;;  %v4124_v36 = vor.u32 %v4368_v39, %v4123_v28  ;;  %v4125_v51 = vld [vmem:[%s4822_s4 + $0x18] sm:$0xf0] }
 0xa6e   : > { %v5458_v12 = vadd.f32 %v2375_v31, %v5120_v0  ;;  %v2033_v0 = vadd.f32 %v5385_v35, %v1995_v27  ;;  %v4115_v31 = vld [vmem:[%s4822_s4] sm:$0xf]  ;;  %2540 = vmatpush.bf16.msrb.mxu1 %v4124_v36 }
 0xa70   : > { %v2383_v8 = vsel %vm791_vm2, %v5458_v12, 0.0 }
 0xa71   : > { %2384 = vadd.xlane.f32.xlu2 %v2383_v8  ;;  %v4128_v8 = vor.u32 %v4367_v49, %v4125_v51 }
 0xa73   : > { %v2367_v42 = vpop.f32.mrf.mxu0  ;;  %2559 = vmatpush.bf16.msrb.mxu2 %v4128_v8 }
 0xa74   : > { %v2376_v50 = vadd.f32 %v2367_v42, %v2205_v46  ;;  %v4365_v46 = vld [vmem:[%s4822_s4 + $0x4] sm:$0xf]  ;;  %v4117_v42 = vld [vmem:[%s4822_s4 + $0x8] sm:$0xf0] }
 0xa76   : > { %v5464_v41 = vadd.f32 %v2376_v50, %v5125_v38  ;;  %v4116_v50 = vor.u32 %v4366_v43, %v4115_v31 }
 0xa78   : > { %v2386_v40 = vsel %vm791_vm2, %v5464_v41, 0.0  ;;  %2541 = vmatpush.bf16.msrb.mxu1 %v4116_v50 }
 0xa79   : > { %2387 = vadd.xlane.f32.xlu0 %v2386_v40  ;;  %v4120_v40 = vor.u32 %v4365_v46, %v4117_v42 }
 0xa7b   : > { %2560 = vmatpush.bf16.msrb.mxu2 %v4120_v40 }
 0xa96   : > { %v2199_v57 = vpop.f32.mrf.mxu1 }
 0xa97   : > { %v2206_v59 = vadd.f32 %v2199_v57, %v2033_v0 }
 0xa9e   : > { %v2370_v54 = vpop.f32.mrf.mxu0  ;;  %v2201_v52 = vpop.f32.mrf.mxu1 }
 0xa9f   : > { %v2377_v34 = vadd.f32 %v2370_v54, %v2206_v59  ;;  %v2207_v63 = vadd.f32 %v2201_v52, %v2035_v56 }
 0xaa1   : > { %v5470_v53 = vadd.f32 %v2377_v34, %v5130_v37 }
 0xaa3   : > { %v2389_v38 = vsel %vm791_vm2, %v5470_v53, 0.0 }
 0xaa4   : > { %2390 = vadd.xlane.f32.xlu2 %v2389_v38 }
 0xaa6   : > { %v2372_v18 = vpop.f32.mrf.mxu0 }
 0xaa7   : > { %v2378_v17 = vadd.f32 %v2372_v18, %v2207_v63 }
 0xaa9   : > { %v5476_v44 = vadd.f32 %v2378_v17, %v5135_v29 }
 0xaab   : > { %v2392_v35 = vsel %vm791_vm2, %v5476_v44, 0.0 }
 0xaac   : > { %2393 = vadd.xlane.f32.xlu1 %v2392_v35 }
 0xae4   : > { %v2385_v1 = vpop.xlane.xlu2 %2384 }
 0xae5   : > { %v2395_v37 = vmul.f32 %v2385_v1, %v4887_v32 }
 0xae7   : > { %v5482_v62 = vsub.f32 %v5458_v12, %v2395_v37 }
 0xae9   : > { %v2403_v48 = vmul.f32 %v5482_v62, %v5482_v62 }
 0xaeb   : > { %v2407_v45 = vsel %vm791_vm2, %v2403_v48, 0.0 }
 0xaec   : > { %2408 = vadd.xlane.f32.xlu0 %v2407_v45  ;;  %v2388_v15 = vpop.xlane.xlu0 %2387 }
 0xaed   : > { %v2396_v29 = vmul.f32 %v2388_v15, %v4887_v32 }
 0xaef   : > { %v5489_v4 = vsub.f32 %v5464_v41, %v2396_v29 }
 0xaf1   : > { %v2404_v25 = vmul.f32 %v5489_v4, %v5489_v4 }
 0xaf3   : > { %v2410_v33 = vsel %vm791_vm2, %v2404_v25, 0.0 }
 0xaf4   : > { %2411 = vadd.xlane.f32.xlu2 %v2410_v33 }
 0xb17   : > { %v2391_v2 = vpop.xlane.xlu2 %2390 }
 0xb18   : > { %v2397_v3 = vmul.f32 %v2391_v2, %v4887_v32 }
 0xb1a   : > { %v5496_v5 = vsub.f32 %v5470_v53, %v2397_v3 }
 0xb1c   : > { %v2405_v58 = vmul.f32 %v5496_v5, %v5496_v5 }
 0xb1e   : > { %v2413_v19 = vsel %vm791_vm2, %v2405_v58, 0.0 }
 0xb1f   : > { %2414 = vadd.xlane.f32.xlu1 %v2413_v19  ;;  %v2394_v6 = vpop.xlane.xlu1 %2393 }
 0xb20   : > { %v2398_v7 = vmul.f32 %v2394_v6, %v4887_v32 }
 0xb22   : > { %v5503_v10 = vsub.f32 %v5476_v44, %v2398_v7 }
 0xb24   : > { %v2406_v23 = vmul.f32 %v5503_v10, %v5503_v10 }
 0xb26   : > { %v2416_v9 = vsel %vm791_vm2, %v2406_v23, 0.0 }
 0xb27   : > { %2417 = vadd.xlane.f32.xlu0 %v2416_v9 }
 0xb5f   : > { %v2409_v24 = vpop.xlane.xlu0 %2408 }
 0xb60   : > { %v2419_v27 = vmul.f32 %v2409_v24, %v4887_v32 }
 0xb62   : > { %v2423_v26 = vadd.f32 1e-05, %v2419_v27  ;;  %v4112_v27 = vld [vmem:[%s4807_s20 + $0x3] ss:$8 sm:$0x3] }
 0xb63   : > { %v5537_v28 = vperm.slane %v4112_v27, 1 }
 0xb64   : > { %4561 = vrsqrt.f32 %v2423_v26  ;;  %vm2433_vm1 = vweird.f32 %v2423_v26 }
 0xb67   : > { %v2412_v57 = vpop.xlane.xlu2 %2411 }
 0xb68   : > { %v2420_v0 = vmul.f32 %v2412_v57, %v4887_v32 }
 0xb6a   : > { %v4562_v59 = vpop.eup %4561  ;;  %v2424_v54 = vadd.f32 1e-05, %v2420_v0  ;;  %v5541_v0 = vperm.slane %v4112_v27, 0 }
 0xb6b   : > { %v2428_v34 = vmul.f32 %v4562_v59, %v2423_v26  ;;  %vm2434_vm0 = vweird.f32 %v4562_v59 }
 0xb6c   : > { %4563 = vrsqrt.f32 %v2424_v54  ;;  %vm2435_vm4 = vmor %vm2433_vm1, %vm2434_vm0  ;;  %vm2443_vm5 = vweird.f32 %v2424_v54 }
 0xb6d   : > { %v2429_v52 = vmul.f32 %v4562_v59, %v2428_v34 }
 0xb6f   : > { %v2430_v56 = vmul.f32 0.5, %v2429_v52 }
 0xb71   : > { %v2431_v63 = vsub.f32 1.5, %v2430_v56 }
 0xb72   : > { %v4564_v38 = vpop.eup %4563 }
 0xb73   : > { %v2438_v18 = vmul.f32 %v4564_v38, %v2424_v54  ;;  %v2432_v35 = vmul.f32 %v4562_v59, %v2431_v63  ;;  %vm2444_vm3 = vweird.f32 %v4564_v38 }
 0xb74   : > { %vm2445_vm6 = vmor %vm2443_vm5, %vm2444_vm3 }
 0xb75   : > { %v2439_v17 = vmul.f32 %v4564_v38, %v2438_v18  ;;  %v2436_v48 = vsel %vm2435_vm4, %v4562_v59, %v2432_v35 }
 0xb76   : > { %v2467_v29 = vmul.f32 %v2436_v48, %v5482_v62 }
 0xb77   : > { %v2440_v1 = vmul.f32 0.5, %v2439_v17 }
 0xb79   : > { %v2441_v37 = vsub.f32 1.5, %v2440_v1 }
 0xb7b   : > { %v2442_v45 = vmul.f32 %v4564_v38, %v2441_v37 }
 0xb7d   : > { %v2446_v15 = vsel %vm2445_vm6, %v4564_v38, %v2442_v45 }
 0xb7e   : > { %v2468_v25 = vmul.f32 %v2446_v15, %v5489_v4 }
 0xb80   : > { %v2471_v33 = vpack.c.bf16 %v2468_v25, %v2467_v29 }
 0xb82   : > { %4145 = vmatmul.msk.bf16.vlgmr.msrb.gmra.mxu1 %vm791_vm2, %v2471_v33  ;;  %4147 = vmatmul.msk.bf16.vlgmr.msrb.gmra.mxu2 %vm791_vm2, %v2471_v33 }
 0xb92   : > { %v2415_v2 = vpop.xlane.xlu1 %2414 }
 0xb93   : > { %v2421_v3 = vmul.f32 %v2415_v2, %v4887_v32 }
 0xb95   : > { %v2425_v58 = vadd.f32 1e-05, %v2421_v3  ;;  %v5546_v3 = vld [vmem:[%s4832_s3] ss:$0 sm:$0xff] }
 0xb97   : > { %4565 = vrsqrt.f32 %v2425_v58  ;;  %vm2453_vm8 = vweird.f32 %v2425_v58 }
 0xb9a   : > { %v2418_v19 = vpop.xlane.xlu0 %2417 }
 0xb9b   : > { %v2422_v6 = vmul.f32 %v2418_v19, %v4887_v32 }
 0xb9d   : > { %v4566_v7 = vpop.eup %4565  ;;  %v2426_v23 = vadd.f32 1e-05, %v2422_v6 }
 0xb9e   : > { %v2448_v9 = vmul.f32 %v4566_v7, %v2425_v58  ;;  %vm2454_vm7 = vweird.f32 %v4566_v7  ;;  %v5549_v58 = vld [vmem:[%s4832_s3 + $0x1] ss:$0 sm:$0xff] }
 0xb9f   : > { %4567 = vrsqrt.f32 %v2426_v23  ;;  %vm2455_vm10 = vmor %vm2453_vm8, %vm2454_vm7  ;;  %vm2463_vm11 = vweird.f32 %v2426_v23 }
 0xba0   : > { %v2449_v62 = vmul.f32 %v4566_v7, %v2448_v9 }
 0xba2   : > { %v2450_v55 = vmul.f32 0.5, %v2449_v62 }
 0xba4   : > { %v2451_v11 = vsub.f32 1.5, %v2450_v55 }
 0xba5   : > { %v4568_v4 = vpop.eup %4567 }
 0xba6   : > { %v2458_v13 = vmul.f32 %v4568_v4, %v2426_v23  ;;  %v2452_v47 = vmul.f32 %v4566_v7, %v2451_v11  ;;  %vm2464_vm9 = vweird.f32 %v4568_v4  ;;  %v5560_v11 = vld [vmem:[%s4832_s3 + $0x3] ss:$0 sm:$0xff] }
 0xba7   : > { %vm2465_vm12 = vmor %vm2463_vm11, %vm2464_vm9 }
 0xba8   : > { %v2459_v30 = vmul.f32 %v4568_v4, %v2458_v13  ;;  %v2456_v61 = vsel %vm2455_vm10, %v4566_v7, %v2452_v47  ;;  %v5554_v7 = vld [vmem:[%s4832_s3 + $0x2] ss:$0 sm:$0xff] }
 0xba9   : > { %v2469_v21 = vmul.f32 %v2456_v61, %v5496_v5 }
 0xbaa   : > { %v2460_v22 = vmul.f32 0.5, %v2459_v30 }
 0xbac   : > { %v2461_v16 = vsub.f32 1.5, %v2460_v22  ;;  %v5564_v22 = vld [vmem:[%s4832_s3 + $0x4] ss:$0 sm:$0xff] }
 0xbae   : > { %v2462_v60 = vmul.f32 %v4568_v4, %v2461_v16 }
 0xbb0   : > { %v2466_v20 = vsel %vm2465_vm12, %v4568_v4, %v2462_v60 }
 0xbb1   : > { %v2470_v14 = vmul.f32 %v2466_v20, %v5503_v10  ;;  %v5568_v20 = vld [vmem:[%s4832_s3 + $0x5] ss:$0 sm:$0xff] }
 0xbb3   : > { %v2472_v24 = vpack.c.bf16 %v2470_v14, %v2469_v21 }
 0xbb5   : > { %4146 = vmatmul.msk.bf16.gmra.mxu1 %vm791_vm2, %v2472_v24  ;;  %4148 = vmatmul.msk.bf16.gmra.mxu2 %vm791_vm2, %v2472_v24 }
 0xbff   : > { %v2543_v40 = vpop.f32.mrf.mxu1 }
 0xc00   : > { %v2544_v38 = vadd.f32 %v2543_v40, %v5541_v0 }
 0xc05   : > { %v2562_v39 = vpop.f32.mrf.mxu2 }
 0xc06   : > { %v2563_v49 = vadd.f32 %v2562_v39, %v5537_v28  ;;  %v5572_v39 = vld [vmem:[%s4832_s3 + $0x6] ss:$0 sm:$0xff] }
 0xc07   : > { %v2545_v15 = vpop.f32.mrf.mxu1 }
 0xc08   : > { %v4149_v36 = vmul.f32 -1.442695, %v2563_v49  ;;  %v2546_v33 = vadd.f32 %v2545_v15, %v5541_v0 }
 0xc0a   : > { %4569 = vpow2.f32 %v4149_v36 }
 0xc0d   : > { %v2564_v51 = vpop.f32.mrf.mxu2 }
 0xc0e   : > { %v2565_v31 = vadd.f32 %v2564_v51, %v5537_v28 }
 0xc10   : > { %v4570_v43 = vpop.eup %4569  ;;  %v4150_v5 = vmul.f32 -1.442695, %v2565_v31 }
 0xc11   : > { %v2584_v26 = vadd.f32 1.0, %v4570_v43 }
 0xc12   : > { %4571 = vpow2.f32 %v4150_v5 }
 0xc13   : > { %4573 = vrcp.f32 %v2584_v26  ;;  %v2599_v57 = vand.u32 2147483648, %v2584_v26  ;;  %v2597_v54 = vand.u32 2147483647, %v2584_v26  ;;  %vm2593_vm14 = vweird.f32 %v2584_v26 }
 0xc15   : > { %v2600_v56 = vor.u32 1.1754944e-38, %v2599_v57  ;;  %vm2598_vm0 = vcmp.eq.f32.partialorder %v2597_v54, 8.507059e+37 }
 0xc18   : > { %v4572_v10 = vpop.eup %4571 }
 0xc19   : > { %v4574_v8 = vpop.eup %4573  ;;  %v2585_v46 = vadd.f32 1.0, %v4572_v10  ;;  %v5578_v10 = vld [vmem:[%s4832_s3 + $0x7] ss:$0 sm:$0xff] }
 0xc1a   : > { %v2589_v42 = vmul.f32 %v4574_v8, %v2584_v26  ;;  %vm2594_vm13 = vweird.f32 %v4574_v8 }
 0xc1b   : > { %4575 = vrcp.f32 %v2585_v46  ;;  %vm2595_vm15 = vmor %vm2593_vm14, %vm2594_vm13  ;;  %v2614_v37 = vand.u32 2147483648, %v2585_v46  ;;  %v2612_v45 = vand.u32 2147483647, %v2585_v46  ;;  %vm2608_vm3 = vweird.f32 %v2585_v46 }
 0xc1c   : > { %v2590_v50 = vsub.f32 1.0, %v2589_v42 }
 0xc1d   : > { %v2615_v25 = vor.u32 1.1754944e-38, %v2614_v37  ;;  %vm2613_vm5 = vcmp.eq.f32.partialorder %v2612_v45, 8.507059e+37 }
 0xc1e   : > { %v2591_v59 = vmul.f32 %v4574_v8, %v2590_v50 }
 0xc20   : > { %v2592_v34 = vadd.f32 %v4574_v8, %v2591_v59  ;;  %v5583_v59 = vld [vmem:[%s4832_s3 + $0x8] ss:$0 sm:$0xff] }
 0xc21   : > { %v4576_v52 = vpop.eup %4575 }
 0xc22   : > { %v2596_v63 = vsel %vm2595_vm15, %v4574_v8, %v2592_v34  ;;  %v2604_v18 = vmul.f32 %v4576_v52, %v2585_v46  ;;  %vm2609_vm1 = vweird.f32 %v4576_v52 }
 0xc23   : > { %v2601_v17 = vsel %vm2598_vm0, %v2600_v56, %v2596_v63  ;;  %vm2610_vm4 = vmor %vm2608_vm3, %vm2609_vm1 }
 0xc24   : > { %v2648_v35 = vmul.f32 %v2601_v17, %v2544_v38  ;;  %v2605_v1 = vsub.f32 1.0, %v2604_v18  ;;  %v5589_v18 = vld [vmem:[%s4832_s3 + $0x9] ss:$0 sm:$0xff] }
 0xc26   : > { %2652 = vst [vmem:[#allocation3 + $0x8] sm:$0xff] %v2648_v35  ;;  %v2606_v48 = vmul.f32 %v4576_v52, %v2605_v1  ;;  %v2760_v63 = vmul.f32 %v5578_v10, %v2648_v35 }
 0xc28   : > { %v2607_v29 = vadd.f32 %v4576_v52, %v2606_v48 }
 0xc2a   : > { %v2611_v2 = vsel %vm2610_vm4, %v4576_v52, %v2607_v29  ;;  %v5594_v29 = vld [vmem:[%s4832_s3 + $0xa] ss:$0 sm:$0xff] }
 0xc2b   : > { %v2616_v19 = vsel %vm2613_vm5, %v2615_v25, %v2611_v2 }
 0xc2c   : > { %v5551_v6 = vmul.f32 %v2616_v19, %v2546_v33 }
 0xc2d   : > { %v2656_v23 = vld [vmem:[#allocation3 + $0x1] sm:$0xff] }
 0xc2e   : > { %v2670_v9 = vld [vmem:[#allocation3 + $0x2] sm:$0xff]  ;;  %2653 = vst [vmem:[#allocation3 + $0x10] sm:$0xff] %v5551_v6  ;;  %v2662_v55 = vmul.f32 %v5546_v3, %v2656_v23  ;;  %v5599_v23 = vld [vmem:[%s4832_s3 + $0xb] ss:$0 sm:$0xff] }
 0xc2f   : > { %v2684_v62 = vld [vmem:[#allocation3 + $0x3] sm:$0xff]  ;;  %v2676_v4 = vmul.f32 %v5549_v58, %v2670_v9  ;;  %v4380_v9 = vld [vmem:[%s4837_s17 + $0x38] sm:$0xff] }
 0xc30   : > { %v2698_v13 = vld [vmem:[#allocation3 + $0x4] sm:$0xff]  ;;  %v2690_v47 = vmul.f32 %v5554_v7, %v2684_v62  ;;  %3008 = vmatpush.bf16.msrb.mxu3 %v4380_v9 }
 0xc31   : > { %v2680_v30 = vadd.f32 %v2676_v4, %v2662_v55  ;;  %v2712_v16 = vld [vmem:[#allocation3 + $0x5] sm:$0xff]  ;;  %v2704_v61 = vmul.f32 %v5560_v11, %v2698_v13 }
 0xc32   : > { %v2726_v21 = vld [vmem:[#allocation3 + $0x6] sm:$0xff]  ;;  %v2718_v24 = vmul.f32 %v5564_v22, %v2712_v16  ;;  %v4379_v16 = vld [vmem:[%s4837_s17 + $0x30] sm:$0xff]  ;;  %v5636_v9 = vld [vmem:[%s4807_s20 + $0x5] ss:$0 sm:$0xff] }
 0xc33   : > { %v2694_v60 = vadd.f32 %v2690_v47, %v2680_v30  ;;  %v2740_v27 = vld [vmem:[#allocation3 + $0x7] sm:$0xff]  ;;  %v2732_v26 = vmul.f32 %v5568_v20, %v2726_v21  ;;  %v2761_v21 = vmul.f32 %v5578_v10, %v5551_v6 }
 0xc34   : > { %v2746_v57 = vmul.f32 %v5572_v39, %v2740_v27  ;;  %3009 = vmatpush.bf16.msrb.mxu3 %v4379_v16 }
 0xc35   : > { %v2708_v14 = vadd.f32 %v2704_v61, %v2694_v60  ;;  %v2657_v49 = vld [vmem:[#allocation3 + $0x9] sm:$0xff] }
 0xc36   : > { %v2671_v36 = vld [vmem:[#allocation3 + $0xa] sm:$0xff]  ;;  %v2663_v31 = vmul.f32 %v5546_v3, %v2657_v49  ;;  %v2772_v15 = vmul.f32 %v5583_v59, %v2657_v49 }
 0xc37   : > { %v2685_v51 = vld [vmem:[#allocation3 + $0xb] sm:$0xff]  ;;  %v2677_v43 = vmul.f32 %v5549_v58, %v2671_v36  ;;  %v2722_v5 = vadd.f32 %v2718_v24, %v2708_v14  ;;  %v2784_v19 = vmul.f32 %v5589_v18, %v2671_v36 }
 0xc38   : > { %v2699_v8 = vld [vmem:[#allocation3 + $0xc] sm:$0xff]  ;;  %v2567_v46 = vpop.f32.mrf.mxu2  ;;  %v2691_v50 = vmul.f32 %v5554_v7, %v2685_v51  ;;  %v2796_v30 = vmul.f32 %v5594_v29, %v2685_v51 }
 0xc39   : > { %v2681_v42 = vadd.f32 %v2677_v43, %v2663_v31  ;;  %v2736_v40 = vadd.f32 %v2732_v26, %v2722_v5  ;;  %v2568_v54 = vadd.f32 %v2567_v46, %v5537_v28  ;;  %v2713_v34 = vld [vmem:[#allocation3 + $0xd] sm:$0xff]  ;;  %v2705_v56 = vmul.f32 %v5560_v11, %v2699_v8  ;;  %v5607_v60 = vld [vmem:[%s4832_s3 + $0xc] ss:$0 sm:$0xff] }
 0xc3a   : > { %v2727_v1 = vld [vmem:[#allocation3 + $0xe] sm:$0xff]  ;;  %v2719_v48 = vmul.f32 %v5564_v22, %v2713_v34  ;;  %v2808_v27 = vmul.f32 %v5599_v23, %v2699_v8  ;;  %v5613_v31 = vld [vmem:[%s4832_s3 + $0xd] ss:$0 sm:$0xff]  ;;  %v2820_v46 = vmul.f32 %v5607_v60, %v2713_v34 }
 0xc3b   : > { %v2695_v52 = vadd.f32 %v2691_v50, %v2681_v42  ;;  %v2750_v38 = vadd.f32 %v2746_v57, %v2736_v40  ;;  %v4151_v17 = vmul.f32 -1.442695, %v2568_v54  ;;  %v2741_v25 = vld [vmem:[#allocation3 + $0xf] sm:$0xff]  ;;  %v2733_v35 = vmul.f32 %v5568_v20, %v2727_v1  ;;  %v5621_v42 = vld [vmem:[%s4832_s3 + $0xe] ss:$0 sm:$0xff] }
 0xc3c   : > { %v2747_v4 = vmul.f32 %v5572_v39, %v2741_v25  ;;  %v2768_v14 = vld [vmem:[#allocation3 + $0x11] sm:$0xff]  ;;  %v4378_v26 = vld [vmem:[%s4837_s17 + $0x28] sm:$0xff]  ;;  %v2832_v54 = vmul.f32 %v5613_v31, %v2727_v1 }
 0xc3d   : > { %v2709_v37 = vadd.f32 %v2705_v56, %v2695_v52  ;;  %v2764_v45 = vadd.f32 %v2760_v63, %v2750_v38  ;;  %4577 = vpow2.f32 %v4151_v17  ;;  %v2780_v43 = vld [vmem:[#allocation3 + $0x12] sm:$0xff]  ;;  %v2773_v6 = vmul.f32 %v5583_v59, %v2768_v14  ;;  %3010 = vmatpush.bf16.msrb.mxu3 %v4378_v26  ;;  %v4377_v56 = vld [vmem:[%s4837_s17 + $0x20] sm:$0xff]  ;;  %v2548_v14 = vpop.f32.mrf.mxu1 }
 0xc3e   : > { %v2792_v8 = vld [vmem:[#allocation3 + $0x13] sm:$0xff]  ;;  %v2785_v40 = vmul.f32 %v5589_v18, %v2780_v43  ;;  %v2844_v17 = vmul.f32 %v5621_v42, %v2741_v25 }
 0xc3f   : > { %v2723_v33 = vadd.f32 %v2719_v48, %v2709_v37  ;;  %v2776_v2 = vadd.f32 %v2772_v15, %v2764_v45  ;;  %v2804_v52 = vld [vmem:[#allocation3 + $0x14] sm:$0xff]  ;;  %v2797_v34 = vmul.f32 %v5594_v29, %v2792_v8  ;;  %v5630_v48 = vld [vmem:[%s4807_s20 + $0x4] ss:$0 sm:$0xff]  ;;  %v2549_v8 = vadd.f32 %v2548_v14, %v5541_v0 }
 0xc40   : > { %v2569_v62 = vpop.f32.mrf.mxu2  ;;  %v2816_v37 = vld [vmem:[#allocation3 + $0x15] sm:$0xff] }
 0xc41   : > { %v2737_v55 = vadd.f32 %v2733_v35, %v2723_v33  ;;  %v2788_v13 = vadd.f32 %v2784_v19, %v2776_v2  ;;  %v2570_v47 = vadd.f32 %v2569_v62, %v5537_v28  ;;  %v2809_v33 = vmul.f32 %v5599_v23, %v2804_v52  ;;  %v2828_v19 = vld [vmem:[#allocation3 + $0x16] sm:$0xff]  ;;  %3011 = vmatpush.bf16.msrb.mxu3 %v4377_v56 }
 0xc42   : > { %v2821_v25 = vmul.f32 %v5607_v60, %v2816_v37 }
 0xc43   : > { %v2751_v61 = vadd.f32 %v2747_v4, %v2737_v55  ;;  %v2800_v24 = vadd.f32 %v2796_v30, %v2788_v13  ;;  %v4578_v49 = vpop.eup %4577  ;;  %v4152_v36 = vmul.f32 -1.442695, %v2570_v47  ;;  %v4376_v55 = vld [vmem:[%s4837_s17 + $0x18] sm:$0xff] }
 0xc44   : > { %v5615_v51 = vadd.f32 1.0, %v4578_v49  ;;  %v2840_v13 = vld [vmem:[#allocation3 + $0x17] sm:$0xff] }
 0xc45   : > { %v2765_v28 = vadd.f32 %v2761_v21, %v2751_v61  ;;  %v2812_v5 = vadd.f32 %v2808_v27, %v2800_v24  ;;  %4579 = vpow2.f32 %v4152_v36  ;;  %v2833_v61 = vmul.f32 %v5613_v31, %v2828_v19  ;;  %3012 = vmatpush.bf16.msrb.mxu3 %v4376_v55 }
 0xc46   : > { %4581 = vrcp.f32 %v5615_v51  ;;  %v2627_v24 = vand.u32 2147483647, %v5615_v51  ;;  %v2629_v27 = vand.u32 2147483648, %v5615_v51  ;;  %v2845_v49 = vmul.f32 %v5621_v42, %v2840_v13 }
 0xc47   : > { %v2777_v50 = vadd.f32 %v2773_v6, %v2765_v28  ;;  %v2824_v57 = vadd.f32 %v2820_v46, %v2812_v5  ;;  %v4375_v28 = vld [vmem:[%s4837_s17 + $0x10] sm:$0xff]  ;;  %vm2623_vm7 = vweird.f32 %v5615_v51 }
 0xc48   : > { %vm2628_vm9 = vcmp.eq.f32.partialorder %v2627_v24, 8.507059e+37 }
 0xc49   : > { %v2789_v38 = vadd.f32 %v2785_v40, %v2777_v50  ;;  %v2836_v63 = vadd.f32 %v2832_v54, %v2824_v57  ;;  %v2630_v50 = vor.u32 1.1754944e-38, %v2629_v27  ;;  %3013 = vmatpush.bf16.msrb.mxu3 %v4375_v28  ;;  %v4374_v54 = vld [vmem:[%s4837_s17 + $0x8] sm:$0xff] }
 0xc4b   : > { %v4580_v45 = vpop.eup %4579  ;;  %v2801_v15 = vadd.f32 %v2797_v34, %v2789_v38  ;;  %v2848_v35 = vadd.f32 %v2844_v17, %v2836_v63 }
 0xc4c   : > { %v4582_v1 = vpop.eup %4581  ;;  %v5633_v2 = vadd.f32 1.0, %v4580_v45 }
 0xc4d   : > { %v2619_v62 = vmul.f32 %v4582_v1, %v5615_v51  ;;  %v2813_v4 = vadd.f32 %v2809_v33, %v2801_v15  ;;  %v2853_v30 = vmul.f32 %v5630_v48, %v2848_v35  ;;  %vm2624_vm6 = vweird.f32 %v4582_v1  ;;  %3014 = vmatpush.bf16.msrb.mxu3 %v4374_v54  ;;  %v4373_v15 = vld [vmem:[%s4837_s17] sm:$0xff]  ;;  %v2550_v35 = vpop.f32.mrf.mxu1 }
 0xc4e   : > { %4583 = vrcp.f32 %v5633_v2  ;;  %vm2625_vm8 = vmor %vm2623_vm7, %vm2624_vm6  ;;  %v2644_v63 = vand.u32 2147483648, %v5633_v2  ;;  %v2642_v45 = vand.u32 2147483647, %v5633_v2  ;;  %vm2638_vm11 = vweird.f32 %v5633_v2 }
 0xc4f   : > { %v2620_v47 = vsub.f32 1.0, %v2619_v62  ;;  %v2825_v16 = vadd.f32 %v2821_v25, %v2813_v4  ;;  %v5645_v21 = vadd.f32 %v5636_v9, %v2853_v30  ;;  %v2551_v55 = vadd.f32 %v2550_v35, %v5541_v0 }
 0xc50   : > { %v2645_v62 = vor.u32 1.1754944e-38, %v2644_v63  ;;  %vm2643_vm13 = vcmp.eq.f32.partialorder %v2642_v45, 8.507059e+37 }
 0xc51   : > { %v2621_v36 = vmul.f32 %v4582_v1, %v2620_v47  ;;  %v2837_v43 = vadd.f32 %v2833_v61, %v2825_v16  ;;  %v4153_v5 = vmul.f32 -1.442695, %v5645_v21  ;;  %3015 = vmatpush.bf16.msrb.mxu3 %v4373_v15 }
 0xc53   : > { %v2622_v26 = vadd.f32 %v4582_v1, %v2621_v36  ;;  %v2849_v6 = vadd.f32 %v2845_v49, %v2837_v43  ;;  %4585 = vpow2.f32 %v4153_v5 }
 0xc54   : > { %v4584_v46 = vpop.eup %4583 }
 0xc55   : > { %v2626_v40 = vsel %vm2625_vm8, %v4582_v1, %v2622_v26  ;;  %v2634_v57 = vmul.f32 %v4584_v46, %v5633_v2  ;;  %v2854_v52 = vmul.f32 %v5630_v48, %v2849_v6  ;;  %vm2639_vm10 = vweird.f32 %v4584_v46 }
 0xc56   : > { %v2631_v56 = vsel %vm2628_vm9, %v2630_v50, %v2626_v40  ;;  %vm2640_vm12 = vmor %vm2638_vm11, %vm2639_vm10 }
 0xc57   : > { %v2650_v38 = vmul.f32 %v2631_v56, %v2549_v8  ;;  %v2635_v34 = vsub.f32 1.0, %v2634_v57  ;;  %v5658_v51 = vadd.f32 %v5636_v9, %v2854_v52 }
 0xc59   : > { %v4586_v17 = vpop.eup %4585  ;;  %2654 = vst [vmem:[#allocation3 + $0x28] sm:$0xff] %v2650_v38  ;;  %v2636_v37 = vmul.f32 %v4584_v46, %v2635_v34  ;;  %v4154_v33 = vmul.f32 -1.442695, %v5658_v51 }
 0xc5a   : > { %v5664_v1 = vadd.f32 1.0, %v4586_v17 }
 0xc5b   : > { %v2637_v19 = vadd.f32 %v4584_v46, %v2636_v37  ;;  %4587 = vpow2.f32 %v4154_v33  ;;  %v2762_v33 = vmul.f32 %v5578_v10, %v2650_v38 }
 0xc5c   : > { %4589 = vrcp.f32 %v5664_v1  ;;  %vm2883_vm15 = vweird.f32 %v5664_v1 }
 0xc5d   : > { %v2641_v4 = vsel %vm2640_vm12, %v4584_v46, %v2637_v19 }
 0xc5e   : > { %v2646_v25 = vsel %vm2643_vm13, %v2645_v62, %v2641_v4 }
 0xc5f   : > { %v5669_v13 = vmul.f32 %v2646_v25, %v2551_v55 }
 0xc60   : > { %v2658_v30 = vld [vmem:[#allocation3 + $0x21] sm:$0xff] }
 0xc61   : > { %v2672_v47 = vld [vmem:[#allocation3 + $0x22] sm:$0xff]  ;;  %v4588_v61 = vpop.eup %4587  ;;  %2655 = vst [vmem:[#allocation3 + $0x30] sm:$0xff] %v5669_v13  ;;  %v2664_v2 = vmul.f32 %v5546_v3, %v2658_v30 }
 0xc62   : > { %v2686_v16 = vld [vmem:[#allocation3 + $0x23] sm:$0xff]  ;;  %v2678_v14 = vmul.f32 %v5549_v58, %v2672_v47  ;;  %v4590_v24 = vpop.eup %4589  ;;  %v5674_v27 = vadd.f32 1.0, %v4588_v61 }
 0xc63   : > { %v2700_v0 = vld [vmem:[#allocation3 + $0x24] sm:$0xff]  ;;  %v2879_v49 = vmul.f32 %v4590_v24, %v5664_v1  ;;  %v2692_v28 = vmul.f32 %v5554_v7, %v2686_v16  ;;  %vm2884_vm14 = vweird.f32 %v4590_v24 }
 0xc64   : > { %v2682_v36 = vadd.f32 %v2678_v14, %v2664_v2  ;;  %4591 = vrcp.f32 %v5674_v27  ;;  %v2706_v26 = vmul.f32 %v5560_v11, %v2700_v0  ;;  %v2714_v6 = vld [vmem:[#allocation3 + $0x25] sm:$0xff]  ;;  %vm5693_vm0 = vmor %vm2883_vm15, %vm2884_vm14  ;;  %v2904_v2 = vand.u32 2147483648, %v5674_v27 }
 0xc65   : > { %v2880_v43 = vsub.f32 1.0, %v2879_v49  ;;  %v2728_v50 = vld [vmem:[#allocation3 + $0x26] sm:$0xff]  ;;  %v2720_v52 = vmul.f32 %v5564_v22, %v2714_v6  ;;  %vm2898_vm4 = vweird.f32 %v5674_v27 }
 0xc66   : > { %v2696_v5 = vadd.f32 %v2692_v28, %v2682_v36  ;;  %v2742_v63 = vld [vmem:[#allocation3 + $0x27] sm:$0xff]  ;;  %v2734_v15 = vmul.f32 %v5568_v20, %v2728_v50  ;;  %v2905_v50 = vor.u32 1.1754944e-38, %v2904_v2 }
 0xc67   : > { %v2881_v46 = vmul.f32 %v4590_v24, %v2880_v43  ;;  %v2748_v30 = vmul.f32 %v5572_v39, %v2742_v63 }
 0xc68   : > { %v2710_v8 = vadd.f32 %v2706_v26, %v2696_v5  ;;  %v2659_v40 = vld [vmem:[#allocation3 + $0x29] sm:$0xff]  ;;  %v2829_v2 = vld [vmem:[#allocation3 + $0x36] sm:$0xff] }
 0xc69   : > { %v2673_v57 = vld [vmem:[#allocation3 + $0x2a] sm:$0xff]  ;;  %v2665_v56 = vmul.f32 %v5546_v3, %v2659_v40  ;;  %v2882_v35 = vadd.f32 %v4590_v24, %v2881_v46  ;;  %v2887_v3 = vand.u32 2147483647, %v5664_v1  ;;  %v2774_v26 = vmul.f32 %v5583_v59, %v2659_v40 }
 0xc6a   : > { %v2687_v54 = vld [vmem:[#allocation3 + $0x2b] sm:$0xff]  ;;  %v2679_v34 = vmul.f32 %v5549_v58, %v2673_v57  ;;  %v4592_v17 = vpop.eup %4591  ;;  %v2724_v45 = vadd.f32 %v2720_v52, %v2710_v8  ;;  %v2889_v58 = vand.u32 2147483648, %v5664_v1 }
 0xc6b   : > { %v2701_v37 = vld [vmem:[#allocation3 + $0x2c] sm:$0xff]  ;;  %v2894_v19 = vmul.f32 %v4592_v17, %v5674_v27  ;;  %v2693_v55 = vmul.f32 %v5554_v7, %v2687_v54  ;;  %v2902_v7 = vand.u32 2147483647, %v5674_v27  ;;  %v2886_v1 = vsel %vm5693_vm0, %v4590_v24, %v2882_v35 }
 0xc6c   : > { %v2683_v62 = vadd.f32 %v2679_v34, %v2665_v56  ;;  %v2715_v4 = vld [vmem:[#allocation3 + $0x2d] sm:$0xff]  ;;  %v2738_v25 = vadd.f32 %v2734_v15, %v2724_v45  ;;  %v2707_v38 = vmul.f32 %v5560_v11, %v2701_v37  ;;  %vm2899_vm1 = vweird.f32 %v4592_v17 }
 0xc6d   : > { %v2895_v47 = vsub.f32 1.0, %v2894_v19  ;;  %v2721_v14 = vmul.f32 %v5564_v22, %v2715_v4  ;;  %v2729_v0 = vld [vmem:[#allocation3 + $0x2e] sm:$0xff]  ;;  %vm2888_vm3 = vcmp.eq.f32.partialorder %v2887_v3, 8.507059e+37  ;;  %v2890_v11 = vor.u32 1.1754944e-38, %v2889_v58  ;;  %vm2900_vm5 = vmor %vm2898_vm4, %vm2899_vm1 }
 0xc6e   : > { %v2697_v16 = vadd.f32 %v2693_v55, %v2683_v62  ;;  %v2752_v49 = vadd.f32 %v2748_v30, %v2738_v25  ;;  %v2743_v43 = vld [vmem:[#allocation3 + $0x2f] sm:$0xff]  ;;  %v2735_v22 = vmul.f32 %v5568_v20, %v2729_v0  ;;  %v2786_v24 = vmul.f32 %v5589_v18, %v2673_v57 }
 0xc6f   : > { %v2896_v36 = vmul.f32 %v4592_v17, %v2895_v47  ;;  %v2891_v8 = vsel %vm2888_vm3, %v2890_v11, %v2886_v1  ;;  %vm2903_vm6 = vcmp.eq.f32.partialorder %v2902_v7, 8.507059e+37  ;;  %v2749_v63 = vmul.f32 %v5572_v39, %v2743_v43  ;;  %v2769_v15 = vld [vmem:[#allocation3 + $0x31] sm:$0xff] }
 0xc70   : > { %v2711_v28 = vadd.f32 %v2707_v38, %v2697_v16  ;;  %v2766_v5 = vadd.f32 %v2762_v33, %v2752_v49  ;;  %v2798_v33 = vmul.f32 %v5594_v29, %v2687_v54  ;;  %v2938_v27 = vmul.f32 %v2891_v8, %v5645_v21  ;;  %v2781_v62 = vld [vmem:[#allocation3 + $0x32] sm:$0xff] }
 0xc71   : > { %v2897_v6 = vadd.f32 %v4592_v17, %v2896_v36  ;;  %v2763_v19 = vmul.f32 %v5578_v10, %v5669_v13  ;;  %v2775_v39 = vmul.f32 %v5583_v59, %v2769_v15  ;;  %v2793_v58 = vld [vmem:[#allocation3 + $0x33] sm:$0xff]  ;;  %v2822_v54 = vmul.f32 %v5607_v60, %v2715_v4 }
 0xc72   : > { %v2725_v46 = vadd.f32 %v2721_v14, %v2711_v28  ;;  %v2778_v52 = vadd.f32 %v2774_v26, %v2766_v5  ;;  %v2805_v30 = vld [vmem:[#allocation3 + $0x34] sm:$0xff]  ;;  %v2834_v10 = vmul.f32 %v5613_v31, %v2729_v0  ;;  %v2799_v16 = vmul.f32 %v5594_v29, %v2793_v58  ;;  %v3031_v58 = vld [vmem:[%s4807_s20 + $0x6] ss:$0 sm:$0xff] }
 0xc73   : > { %v2901_v56 = vsel %vm2900_vm5, %v4592_v17, %v2897_v6  ;;  %v2810_v17 = vmul.f32 %v5599_v23, %v2701_v37  ;;  %v2817_v37 = vld [vmem:[#allocation3 + $0x35] sm:$0xff]  ;;  %v2846_v61 = vmul.f32 %v5621_v42, %v2743_v43  ;;  %v2811_v7 = vmul.f32 %v5599_v23, %v2805_v30 }
 0xc74   : > { %v2739_v34 = vadd.f32 %v2735_v22, %v2725_v46  ;;  %v2906_v45 = vsel %vm2903_vm6, %v2905_v50, %v2901_v56  ;;  %v2790_v40 = vadd.f32 %v2786_v24, %v2778_v52  ;;  %v2823_v49 = vmul.f32 %v5607_v60, %v2817_v37 }
 0xc75   : > { %v2939_v20 = vmul.f32 %v2906_v45, %v5658_v51  ;;  %v2787_v51 = vmul.f32 %v5589_v18, %v2781_v62  ;;  %v2841_v18 = vld [vmem:[#allocation3 + $0x37] sm:$0xff]  ;;  %v2835_v0 = vmul.f32 %v5613_v31, %v2829_v2 }
 0xc76   : > { %v2753_v35 = vadd.f32 %v2749_v63, %v2739_v34  ;;  %v2802_v57 = vadd.f32 %v2798_v33, %v2790_v40  ;;  %v2847_v11 = vmul.f32 %v5621_v42, %v2841_v18 }
 0xc77   : > { %v2942_v55 = vpack.c.bf16 %v2939_v20, %v2938_v27 }
 0xc78   : > { %v2767_v3 = vadd.f32 %v2763_v19, %v2753_v35  ;;  %v2814_v25 = vadd.f32 %v2810_v17, %v2802_v57 }
 0xc79   : > { %3016 = vmatmul.bf16.vlgmr.msrb.gmra.mxu3 %v2942_v55 }
 0xc7a   : > { %v2779_v21 = vadd.f32 %v2775_v39, %v2767_v3  ;;  %v2826_v47 = vadd.f32 %v2822_v54, %v2814_v25 }
 0xc7c   : > { %v2791_v13 = vadd.f32 %v2787_v51, %v2779_v21  ;;  %v2838_v38 = vadd.f32 %v2834_v10, %v2826_v47 }
 0xc7e   : > { %v2803_v59 = vadd.f32 %v2799_v16, %v2791_v13  ;;  %v2850_v4 = vadd.f32 %v2846_v61, %v2838_v38 }
 0xc80   : > { %v2815_v14 = vadd.f32 %v2811_v7, %v2803_v59  ;;  %v2855_v1 = vmul.f32 %v5630_v48, %v2850_v4 }
 0xc82   : > { %v2827_v36 = vadd.f32 %v2823_v49, %v2815_v14  ;;  %v2860_v29 = vadd.f32 %v5636_v9, %v2855_v1 }
 0xc84   : > { %v2839_v28 = vadd.f32 %v2835_v0, %v2827_v36  ;;  %v4155_v43 = vmul.f32 -1.442695, %v2860_v29 }
 0xc86   : > { %v2851_v5 = vadd.f32 %v2847_v11, %v2839_v28  ;;  %4593 = vpow2.f32 %v4155_v43 }
 0xc88   : > { %v2856_v23 = vmul.f32 %v5630_v48, %v2851_v5 }
 0xc8a   : > { %v2861_v26 = vadd.f32 %v5636_v9, %v2856_v23 }
 0xc8c   : > { %v4156_v6 = vmul.f32 -1.442695, %v2861_v26  ;;  %v4594_v60 = vpop.eup %4593 }
 0xc8d   : > { %v2876_v46 = vadd.f32 1.0, %v4594_v60 }
 0xc8e   : > { %4595 = vpow2.f32 %v4156_v6 }
 0xc8f   : > { %4597 = vrcp.f32 %v2876_v46  ;;  %v2919_v63 = vand.u32 2147483648, %v2876_v46  ;;  %vm2913_vm8 = vweird.f32 %v2876_v46  ;;  %v2917_v48 = vand.u32 2147483647, %v2876_v46 }
 0xc91   : > { %v2920_v27 = vor.u32 1.1754944e-38, %v2919_v63  ;;  %vm2918_vm11 = vcmp.eq.f32.partialorder %v2917_v48, 8.507059e+37  ;;  %v4210_v63 = vld [vmem:[%s4842_s0 + $0x28] sm:$0xf0] }
 0xc94   : > { %v4596_v22 = vpop.eup %4595 }
 0xc95   : > { %v2877_v8 = vadd.f32 1.0, %v4596_v22  ;;  %v4598_v31 = vpop.eup %4597  ;;  %v4388_v22 = vld [vmem:[%s4842_s0 + $0x34] sm:$0xf0] }
 0xc96   : > { %v2909_v50 = vmul.f32 %v4598_v31, %v2876_v46  ;;  %vm2914_vm7 = vweird.f32 %v4598_v31  ;;  %v4216_v46 = vld [vmem:[%s4842_s0 + $0x30] sm:$0xf] }
 0xc97   : > { %4599 = vrcp.f32 %v2877_v8  ;;  %vm2915_vm9 = vmor %vm2913_vm8, %vm2914_vm7  ;;  %v2934_v45 = vand.u32 2147483648, %v2877_v8  ;;  %v2932_v33 = vand.u32 2147483647, %v2877_v8  ;;  %vm2928_vm12 = vweird.f32 %v2877_v8 }
 0xc98   : > { %v2910_v52 = vsub.f32 1.0, %v2909_v50  ;;  %v4218_v50 = vld [vmem:[%s4842_s0 + $0x38] sm:$0xf0] }
 0xc99   : > { %v2935_v19 = vor.u32 1.1754944e-38, %v2934_v45  ;;  %vm2933_vm14 = vcmp.eq.f32.partialorder %v2932_v33, 8.507059e+37  ;;  %v4383_v33 = vld [vmem:[%s4842_s0 + $0x14] sm:$0xf] }
 0xc9a   : > { %v2911_v24 = vmul.f32 %v4598_v31, %v2910_v52 }
 0xc9c   : > { %v2912_v56 = vadd.f32 %v4598_v31, %v2911_v24  ;;  %v4208_v24 = vld [vmem:[%s4842_s0 + $0x20] sm:$0xf] }
 0xc9d   : > { %v4600_v42 = vpop.eup %4599 }
 0xc9e   : > { %v2924_v34 = vmul.f32 %v4600_v42, %v2877_v8  ;;  %v2916_v15 = vsel %vm2915_vm9, %v4598_v31, %v2912_v56  ;;  %vm2929_vm10 = vweird.f32 %v4600_v42  ;;  %v4387_v8 = vld [vmem:[%s4842_s0 + $0x34] sm:$0xf]  ;;  %v4217_v31 = vor.u32 %v4388_v22, %v4216_v46  ;;  %v4385_v56 = vld [vmem:[%s4842_s0 + $0x24] sm:$0xf] }
 0xc9f   : > { %v2921_v35 = vsel %vm2918_vm11, %v2920_v27, %v2916_v15  ;;  %vm2930_vm13 = vmor %vm2928_vm12, %vm2929_vm10  ;;  %v4221_v52 = vor.u32 %v4387_v8, %v4218_v50  ;;  %v4213_v48 = vor.u32 %v4385_v56, %v4210_v63  ;;  %v4200_v15 = vld [vmem:[%s4842_s0 + $0x10] sm:$0xf] }
 0xca0   : > { %v2925_v9 = vsub.f32 1.0, %v2924_v34  ;;  %v2940_v17 = vmul.f32 %v2921_v35, %v2860_v29  ;;  %3192 = vmatpush.bf16.msra.mxu0 %v4217_v31  ;;  %v4192_v35 = vld [vmem:[%s4842_s0] sm:$0xf] }
 0xca1   : > { %3211 = vmatpush.bf16.msra.mxu1 %v4221_v52 }
 0xca2   : > { %v2926_v40 = vmul.f32 %v4600_v42, %v2925_v9 }
 0xca4   : > { %v2927_v20 = vadd.f32 %v4600_v42, %v2926_v40  ;;  %v4384_v40 = vld [vmem:[%s4842_s0 + $0x14] sm:$0xf0] }
 0xca5   : > { %3212 = vmatpush.bf16.msra.mxu1 %v4213_v48  ;;  %v4201_v27 = vor.u32 %v4384_v40, %v4200_v15  ;;  %v4404_v15 = vld [vmem:[%s4847_s24 + $0x78] sm:$0xff]  ;;  %v4395_v40 = vld [vmem:[%s4847_s24 + $0x30] sm:$0xff] }
 0xca6   : > { %v2931_v62 = vsel %vm2930_vm13, %v4600_v42, %v2927_v20  ;;  %v4386_v42 = vld [vmem:[%s4842_s0 + $0x24] sm:$0xf0]  ;;  %v4202_v20 = vld [vmem:[%s4842_s0 + $0x18] sm:$0xf0]  ;;  %3537 = vmatpush.bf16.msra.mxu3 %v4404_v15 }
 0xca7   : > { %v2936_v57 = vsel %vm2933_vm14, %v2935_v19, %v2931_v62  ;;  %v4209_v34 = vor.u32 %v4386_v42, %v4208_v24  ;;  %v4382_v19 = vld [vmem:[%s4842_s0 + $0x4] sm:$0xf0] }
 0xca8   : > { %v2941_v55 = vmul.f32 %v2936_v57, %v2861_v26  ;;  %v4205_v57 = vor.u32 %v4383_v33, %v4202_v20  ;;  %v4403_v33 = vld [vmem:[%s4847_s24 + $0x70] sm:$0xff] }
 0xca9   : > { %3193 = vmatpush.bf16.msra.mxu0 %v4209_v34 }
 0xcaa   : > { %v2943_v3 = vpack.c.bf16 %v2941_v55, %v2940_v17  ;;  %v4381_v17 = vld [vmem:[%s4842_s0 + $0x4] sm:$0xf]  ;;  %v4194_v55 = vld [vmem:[%s4842_s0 + $0x8] sm:$0xf0]  ;;  %3213 = vmatpush.bf16.msra.mxu1 %v4205_v57  ;;  %3538 = vmatpush.bf16.msra.mxu3 %v4403_v33 }
 0xcac   : > { %3021 = vmatmul.bf16.gmra.mxu3 %v2943_v3  ;;  %v4193_v3 = vor.u32 %v4382_v19, %v4192_v35  ;;  %v4393_v19 = vld [vmem:[%s4847_s24 + $0x20] sm:$0xff] }
 0xcad   : > { %3194 = vmatpush.bf16.msra.mxu0 %v4201_v27  ;;  %v4189_v27 = vld [vmem:[%s4807_s20 + $0x7] ss:$8 sm:$0x3] }
 0xcae   : > { %v5811_v20 = vperm.slane %v4189_v27, 0  ;;  %v5813_v35 = vperm.slane %v4189_v27, 1 }
 0xcb1   : > { %3195 = vmatpush.bf16.msra.mxu0 %v4193_v3 }
 0xcfc   : > { %v3017_v39 = vpop.f32.mrf.mxu3 }
 0xcfd   : > { %v3027_v25 = vadd.f32 %v3017_v39, %v5458_v12  ;;  %v4197_v39 = vor.u32 %v4381_v17, %v4194_v55 }
 0xcff   : > { %v5729_v54 = vadd.f32 %v3031_v58, %v3027_v25  ;;  %3214 = vmatpush.bf16.msra.mxu1 %v4197_v39  ;;  %v4392_v39 = vld [vmem:[%s4847_s24 + $0x18] sm:$0xff] }
 0xd01   : > { %v3039_v21 = vsel %vm791_vm2, %v5729_v54, 0.0 }
 0xd02   : > { %3040 = vadd.xlane.f32.xlu2 %v3039_v21 }
 0xd04   : > { %v3019_v51 = vpop.f32.mrf.mxu3 }
 0xd05   : > { %v3028_v30 = vadd.f32 %v3019_v51, %v5464_v41 }
 0xd07   : > { %v5734_v47 = vadd.f32 %v3031_v58, %v3028_v30 }
 0xd09   : > { %v3042_v10 = vsel %vm791_vm2, %v5734_v47, 0.0 }
 0xd0a   : > { %3043 = vadd.xlane.f32.xlu1 %v3042_v10 }
 0xd2f   : > { %v3022_v13 = vpop.f32.mrf.mxu3 }
 0xd30   : > { %v3029_v16 = vadd.f32 %v3022_v13, %v5470_v53 }
 0xd32   : > { %v5739_v37 = vadd.f32 %v3031_v58, %v3029_v16 }
 0xd34   : > { %v3045_v12 = vsel %vm791_vm2, %v5739_v37, 0.0 }
 0xd35   : > { %3046 = vadd.xlane.f32.xlu0 %v3045_v12 }
 0xd37   : > { %v3024_v38 = vpop.f32.mrf.mxu3 }
 0xd38   : > { %v3030_v61 = vadd.f32 %v3024_v38, %v5476_v44 }
 0xd3a   : > { %v5744_v59 = vadd.f32 %v3031_v58, %v3030_v61 }
 0xd3c   : > { %v3048_v41 = vsel %vm791_vm2, %v5744_v59, 0.0 }
 0xd3d   : > { %3049 = vadd.xlane.f32.xlu2 %v3048_v41 }
 0xd75   : > { %v3041_v7 = vpop.xlane.xlu2 %3040 }
 0xd76   : > { %v3051_v2 = vmul.f32 %v3041_v7, %v4887_v32 }
 0xd78   : > { %v5750_v53 = vsub.f32 %v5729_v54, %v3051_v2 }
 0xd7a   : > { %v3059_v4 = vmul.f32 %v5750_v53, %v5750_v53 }
 0xd7c   : > { %v3063_v14 = vsel %vm791_vm2, %v3059_v4, 0.0 }
 0xd7d   : > { %3064 = vadd.xlane.f32.xlu1 %v3063_v14  ;;  %v3044_v49 = vpop.xlane.xlu1 %3043 }
 0xd7e   : > { %v3052_v44 = vmul.f32 %v3044_v49, %v4887_v32 }
 0xd80   : > { %v5757_v18 = vsub.f32 %v5734_v47, %v3052_v44 }
 0xd82   : > { %v3060_v1 = vmul.f32 %v5757_v18, %v5757_v18 }
 0xd84   : > { %v3066_v36 = vsel %vm791_vm2, %v3060_v1, 0.0 }
 0xd85   : > { %3067 = vadd.xlane.f32.xlu0 %v3066_v36 }
 0xda8   : > { %v3047_v0 = vpop.xlane.xlu0 %3046 }
 0xda9   : > { %v3053_v29 = vmul.f32 %v3047_v0, %v4887_v32 }
 0xdab   : > { %v5764_v28 = vsub.f32 %v5739_v37, %v3053_v29 }
 0xdad   : > { %v3061_v11 = vmul.f32 %v5764_v28, %v5764_v28 }
 0xdaf   : > { %v3069_v43 = vsel %vm791_vm2, %v3061_v11, 0.0 }
 0xdb0   : > { %3070 = vadd.xlane.f32.xlu2 %v3069_v43  ;;  %v3050_v5 = vpop.xlane.xlu2 %3049 }
 0xdb1   : > { %v3054_v23 = vmul.f32 %v3050_v5, %v4887_v32 }
 0xdb3   : > { %v5771_v26 = vsub.f32 %v5744_v59, %v3054_v23 }
 0xdb5   : > { %v3062_v6 = vmul.f32 %v5771_v26, %v5771_v26 }
 0xdb7   : > { %v3072_v60 = vsel %vm791_vm2, %v3062_v6, 0.0 }
 0xdb8   : > { %3073 = vadd.xlane.f32.xlu1 %v3072_v60 }
 0xdf0   : > { %v3065_v9 = vpop.xlane.xlu1 %3064 }
 0xdf1   : > { %v3075_v45 = vmul.f32 %v3065_v9, %v4887_v32 }
 0xdf3   : > { %v3079_v62 = vadd.f32 1e-05, %v3075_v45  ;;  %v4396_v45 = vld [vmem:[%s4847_s24 + $0x38] sm:$0xff] }
 0xdf4   : > { %3518 = vmatpush.bf16.msra.mxu2 %v4396_v45 }
 0xdf5   : > { %4601 = vrsqrt.f32 %v3079_v62  ;;  %vm3089_vm0 = vweird.f32 %v3079_v62 }
 0xdf8   : > { %v3068_v58 = vpop.xlane.xlu0 %3067  ;;  %3519 = vmatpush.bf16.msra.mxu2 %v4395_v40 }
 0xdf9   : > { %v3076_v25 = vmul.f32 %v3068_v58, %v4887_v32  ;;  %v4400_v58 = vld [vmem:[%s4847_s24 + $0x58] sm:$0xff] }
 0xdfb   : > { %v4602_v21 = vpop.eup %4601  ;;  %v3080_v51 = vadd.f32 1e-05, %v3076_v25 }
 0xdfc   : > { %v3084_v30 = vmul.f32 %v4602_v21, %v3079_v62  ;;  %vm3090_vm15 = vweird.f32 %v4602_v21  ;;  %v4401_v62 = vld [vmem:[%s4847_s24 + $0x60] sm:$0xff] }
 0xdfd   : > { %4603 = vrsqrt.f32 %v3080_v51  ;;  %vm3091_vm3 = vmor %vm3089_vm0, %vm3090_vm15  ;;  %vm3099_vm4 = vweird.f32 %v3080_v51 }
 0xdfe   : > { %v3085_v10 = vmul.f32 %v4602_v21, %v3084_v30  ;;  %v4399_v30 = vld [vmem:[%s4847_s24 + $0x50] sm:$0xff] }
 0xe00   : > { %v3086_v13 = vmul.f32 0.5, %v3085_v10 }
 0xe02   : > { %v3087_v12 = vsub.f32 1.5, %v3086_v13 }
 0xe03   : > { %v4604_v16 = vpop.eup %4603 }
 0xe04   : > { %v3094_v38 = vmul.f32 %v4604_v16, %v3080_v51  ;;  %v3088_v41 = vmul.f32 %v4602_v21, %v3087_v12  ;;  %vm3100_vm1 = vweird.f32 %v4604_v16  ;;  %v4391_v51 = vld [vmem:[%s4847_s24 + $0x10] sm:$0xff] }
 0xe05   : > { %vm3101_vm5 = vmor %vm3099_vm4, %vm3100_vm1 }
 0xe06   : > { %v3095_v61 = vmul.f32 %v4604_v16, %v3094_v38  ;;  %v3092_v4 = vsel %vm3091_vm3, %v4602_v21, %v3088_v41  ;;  %v4390_v38 = vld [vmem:[%s4847_s24 + $0x8] sm:$0xff] }
 0xe07   : > { %v3123_v44 = vmul.f32 %v3092_v4, %v5750_v53 }
 0xe08   : > { %v3096_v7 = vmul.f32 0.5, %v3095_v61  ;;  %v4398_v61 = vld [vmem:[%s4847_s24 + $0x48] sm:$0xff] }
 0xe0a   : > { %v3097_v2 = vsub.f32 1.5, %v3096_v7 }
 0xe0c   : > { %v3098_v14 = vmul.f32 %v4604_v16, %v3097_v2 }
 0xe0e   : > { %v3102_v49 = vsel %vm3101_vm5, %v4604_v16, %v3098_v14 }
 0xe0f   : > { %v3124_v1 = vmul.f32 %v3102_v49, %v5757_v18  ;;  %v4389_v49 = vld [vmem:[%s4847_s24] sm:$0xff] }
 0xe11   : > { %v3127_v36 = vpack.c.bf16 %v3124_v1, %v3123_v44  ;;  %v4397_v44 = vld [vmem:[%s4847_s24 + $0x40] sm:$0xff] }
 0xe13   : > { %4222 = vmatmul.msk.bf16.vlgmr.msra.gmra.mxu0 %vm791_vm2, %v3127_v36  ;;  %4224 = vmatmul.msk.bf16.vlgmr.msra.gmra.mxu1 %vm791_vm2, %v3127_v36 }
 0xe23   : > { %v3071_v0 = vpop.xlane.xlu2 %3070 }
 0xe24   : > { %v3077_v29 = vmul.f32 %v3071_v0, %v4887_v32 }
 0xe26   : > { %v3081_v11 = vadd.f32 1e-05, %v3077_v29 }
 0xe28   : > { %4605 = vrsqrt.f32 %v3081_v11  ;;  %vm3109_vm7 = vweird.f32 %v3081_v11 }
 0xe2b   : > { %v3074_v43 = vpop.xlane.xlu1 %3073 }
 0xe2c   : > { %v3078_v5 = vmul.f32 %v3074_v43, %v4887_v32 }
 0xe2e   : > { %v4606_v23 = vpop.eup %4605  ;;  %v3082_v6 = vadd.f32 1e-05, %v3078_v5 }
 0xe2f   : > { %v3104_v60 = vmul.f32 %v4606_v23, %v3081_v11  ;;  %vm3110_vm6 = vweird.f32 %v4606_v23 }
 0xe30   : > { %4607 = vrsqrt.f32 %v3082_v6  ;;  %vm3111_vm9 = vmor %vm3109_vm7, %vm3110_vm6  ;;  %vm3119_vm10 = vweird.f32 %v3082_v6 }
 0xe31   : > { %v3105_v53 = vmul.f32 %v4606_v23, %v3104_v60 }
 0xe33   : > { %v3106_v46 = vmul.f32 0.5, %v3105_v53 }
 0xe35   : > { %v3107_v22 = vsub.f32 1.5, %v3106_v46 }
 0xe36   : > { %v4608_v18 = vpop.eup %4607 }
 0xe37   : > { %v3114_v8 = vmul.f32 %v4608_v18, %v3082_v6  ;;  %v3108_v50 = vmul.f32 %v4606_v23, %v3107_v22  ;;  %vm3120_vm8 = vweird.f32 %v4608_v18 }
 0xe38   : > { %vm3121_vm11 = vmor %vm3119_vm10, %vm3120_vm8 }
 0xe39   : > { %v3115_v31 = vmul.f32 %v4608_v18, %v3114_v8  ;;  %v3112_v42 = vsel %vm3111_vm9, %v4606_v23, %v3108_v50 }
 0xe3a   : > { %v3125_v63 = vmul.f32 %v3112_v42, %v5764_v28  ;;  %v4394_v28 = vld [vmem:[%s4847_s24 + $0x28] sm:$0xff] }
 0xe3b   : > { %v3116_v52 = vmul.f32 0.5, %v3115_v31  ;;  %3520 = vmatpush.bf16.msra.mxu2 %v4394_v28 }
 0xe3d   : > { %v3117_v24 = vsub.f32 1.5, %v3116_v52 }
 0xe3f   : > { %v3118_v56 = vmul.f32 %v4608_v18, %v3117_v24  ;;  %3521 = vmatpush.bf16.msra.mxu2 %v4393_v19 }
 0xe41   : > { %v3122_v34 = vsel %vm3121_vm11, %v4608_v18, %v3118_v56 }
 0xe42   : > { %v3126_v48 = vmul.f32 %v3122_v34, %v5771_v26  ;;  %v4402_v26 = vld [vmem:[%s4847_s24 + $0x68] sm:$0xff] }
 0xe43   : > { %3539 = vmatpush.bf16.msra.mxu3 %v4402_v26  ;;  %3522 = vmatpush.bf16.msra.mxu2 %v4392_v39 }
 0xe44   : > { %v3128_v9 = vpack.c.bf16 %v3126_v48, %v3125_v63 }
 0xe46   : > { %4223 = vmatmul.msk.bf16.gmra.mxu0 %vm791_vm2, %v3128_v9  ;;  %4225 = vmatmul.msk.bf16.gmra.mxu1 %vm791_vm2, %v3128_v9 }
 0xe47   : > { %3540 = vmatpush.bf16.msra.mxu3 %v4401_v62  ;;  %3523 = vmatpush.bf16.msra.mxu2 %v4391_v51 }
 0xe4b   : > { %3541 = vmatpush.bf16.msra.mxu3 %v4400_v58  ;;  %3524 = vmatpush.bf16.msra.mxu2 %v4390_v38 }
 0xe4f   : > { %3542 = vmatpush.bf16.msra.mxu3 %v4399_v30  ;;  %3525 = vmatpush.bf16.msra.mxu2 %v4389_v49 }
 0xe53   : > { %3543 = vmatpush.bf16.msra.mxu3 %v4398_v61 }
 0xe57   : > { %3544 = vmatpush.bf16.msra.mxu3 %v4397_v44 }
 0xe90   : > { %v3197_v57 = vpop.f32.mrf.mxu0  ;;  %v3216_v17 = vpop.f32.mrf.mxu1 }
 0xe91   : > { %v5818_v55 = vadd.f32 %v3197_v57, %v5811_v20  ;;  %v5821_v3 = vadd.f32 %v3216_v17, %v5813_v35 }
 0xe93   : > { %v4226_v25 = vmul.f32 -1.442695, %v5818_v55  ;;  %v4227_v21 = vmul.f32 -1.442695, %v5821_v3 }
 0xe95   : > { %4609 = vpow2.f32 %v4226_v25 }
 0xe96   : > { %4611 = vpow2.f32 %v4227_v21 }
 0xe98   : > { %v3199_v10 = vpop.f32.mrf.mxu0  ;;  %v3218_v13 = vpop.f32.mrf.mxu1 }
 0xe99   : > { %v5830_v16 = vadd.f32 %v3199_v10, %v5811_v20  ;;  %v5833_v12 = vadd.f32 %v3218_v13, %v5813_v35 }
 0xe9b   : > { %v4610_v41 = vpop.eup %4609  ;;  %v4228_v7 = vmul.f32 -1.442695, %v5830_v16  ;;  %v4229_v14 = vmul.f32 -1.442695, %v5833_v12 }
 0xe9c   : > { %v4612_v2 = vpop.eup %4611  ;;  %v3250_v4 = vadd.f32 1.0, %v4610_v41 }
 0xe9d   : > { %v3251_v1 = vadd.f32 1.0, %v4612_v2  ;;  %4613 = vpow2.f32 %v4228_v7 }
 0xe9e   : > { %4615 = vrcp.f32 %v3250_v4  ;;  %vm3263_vm13 = vweird.f32 %v3250_v4  ;;  %v3267_v50 = vand.u32 2147483647, %v3250_v4  ;;  %v3269_v52 = vand.u32 2147483648, %v3250_v4 }
 0xe9f   : > { %4617 = vrcp.f32 %v3251_v1  ;;  %vm3278_vm14 = vweird.f32 %v3251_v1  ;;  %v3282_v42 = vand.u32 2147483647, %v3251_v1  ;;  %v3284_v9 = vand.u32 2147483648, %v3251_v1 }
 0xea0   : > { %4619 = vpow2.f32 %v4229_v14  ;;  %vm3268_vm3 = vcmp.eq.f32.partialorder %v3267_v50, 8.507059e+37  ;;  %v3270_v27 = vor.u32 1.1754944e-38, %v3269_v52 }
 0xea1   : > { %v3285_v21 = vor.u32 1.1754944e-38, %v3284_v9  ;;  %vm3283_vm9 = vcmp.eq.f32.partialorder %v3282_v42, 8.507059e+37 }
 0xea3   : > { %v4614_v36 = vpop.eup %4613 }
 0xea4   : > { %v4616_v0 = vpop.eup %4615  ;;  %v3252_v29 = vadd.f32 1.0, %v4614_v36 }
 0xea5   : > { %v4618_v11 = vpop.eup %4617  ;;  %v3259_v43 = vmul.f32 %v4616_v0, %v3250_v4  ;;  %vm3264_vm12 = vweird.f32 %v4616_v0 }
 0xea6   : > { %v4620_v5 = vpop.eup %4619  ;;  %v3274_v23 = vmul.f32 %v4618_v11, %v3251_v1  ;;  %4621 = vrcp.f32 %v3252_v29  ;;  %v3299_v34 = vand.u32 2147483648, %v3252_v29  ;;  %vm5841_vm15 = vmor %vm3263_vm13, %vm3264_vm12  ;;  %vm3279_vm0 = vweird.f32 %v4618_v11 }
 0xea7   : > { %v3260_v6 = vsub.f32 1.0, %v3259_v43  ;;  %v3253_v60 = vadd.f32 1.0, %v4620_v5  ;;  %v3297_v33 = vand.u32 2147483647, %v3252_v29  ;;  %vm3293_vm4 = vweird.f32 %v3252_v29  ;;  %vm5848_vm5 = vmor %vm3278_vm14, %vm3279_vm0 }
 0xea8   : > { %v3275_v53 = vsub.f32 1.0, %v3274_v23  ;;  %v3300_v62 = vor.u32 1.1754944e-38, %v3299_v34 }
 0xea9   : > { %v3261_v46 = vmul.f32 %v4616_v0, %v3260_v6  ;;  %4623 = vrcp.f32 %v3253_v60  ;;  %v3312_v57 = vand.u32 2147483647, %v3253_v60  ;;  %v3314_v17 = vand.u32 2147483648, %v3253_v60 }
 0xeaa   : > { %v3276_v22 = vmul.f32 %v4618_v11, %v3275_v53  ;;  %vm3298_vm8 = vcmp.eq.f32.partialorder %v3297_v33, 8.507059e+37  ;;  %vm3308_vm10 = vweird.f32 %v3253_v60 }
 0xeab   : > { %v3262_v8 = vadd.f32 %v4616_v0, %v3261_v46  ;;  %v3315_v41 = vor.u32 1.1754944e-38, %v3314_v17  ;;  %vm3313_vm12 = vcmp.eq.f32.partialorder %v3312_v57, 8.507059e+37 }
 0xeac   : > { %v4622_v18 = vpop.eup %4621  ;;  %v3277_v48 = vadd.f32 %v4618_v11, %v3276_v22 }
 0xead   : > { %v3289_v31 = vmul.f32 %v4622_v18, %v3252_v29  ;;  %v3266_v15 = vsel %vm5841_vm15, %v4616_v0, %v3262_v8  ;;  %vm3294_vm1 = vweird.f32 %v4622_v18 }
 0xeae   : > { %v3271_v39 = vsel %vm3268_vm3, %v3270_v27, %v3266_v15  ;;  %v3281_v58 = vsel %vm5848_vm5, %v4618_v11, %v3277_v48  ;;  %vm3295_vm6 = vmor %vm3293_vm4, %vm3294_vm1 }
 0xeaf   : > { %v4624_v24 = vpop.eup %4623  ;;  %v3290_v56 = vsub.f32 1.0, %v3289_v31  ;;  %v3378_v13 = vmul.f32 %v3271_v39, %v5818_v55  ;;  %v3286_v38 = vsel %vm3283_vm9, %v3285_v21, %v3281_v58 }
 0xeb0   : > { %v3304_v45 = vmul.f32 %v4624_v24, %v3253_v60  ;;  %vm3309_vm7 = vweird.f32 %v4624_v24  ;;  %v3379_v14 = vmul.f32 %v3286_v38, %v5821_v3 }
 0xeb1   : > { %v3291_v40 = vmul.f32 %v4622_v18, %v3290_v56  ;;  %vm3310_vm11 = vmor %vm3308_vm10, %vm3309_vm7 }
 0xeb2   : > { %v3305_v28 = vsub.f32 1.0, %v3304_v45 }
 0xeb3   : > { %v3292_v19 = vadd.f32 %v4622_v18, %v3291_v40 }
 0xeb4   : > { %v3306_v25 = vmul.f32 %v4624_v24, %v3305_v28 }
 0xeb5   : > { %v3296_v51 = vsel %vm3295_vm6, %v4622_v18, %v3292_v19 }
 0xeb6   : > { %v3301_v30 = vsel %vm3298_vm8, %v3300_v62, %v3296_v51  ;;  %v3307_v10 = vadd.f32 %v4624_v24, %v3306_v25 }
 0xeb7   : > { %v3380_v61 = vmul.f32 %v3301_v30, %v5830_v16 }
 0xeb8   : > { %v3311_v7 = vsel %vm3310_vm11, %v4624_v24, %v3307_v10 }
 0xeb9   : > { %v3386_v2 = vpack.c.bf16 %v3380_v61, %v3378_v13  ;;  %v3316_v4 = vsel %vm3313_vm12, %v3315_v41, %v3311_v7 }
 0xeba   : > { %v3381_v49 = vmul.f32 %v3316_v4, %v5833_v12 }
 0xebb   : > { %3526 = vmatmul.bf16.vlgmr.msra.gmra.mxu2 %v3386_v2 }
 0xebc   : > { %v3387_v44 = vpack.c.bf16 %v3381_v49, %v3379_v14 }
 0xebe   : > { %3545 = vmatmul.bf16.vlgmr.msra.gmra.mxu3 %v3387_v44 }
 0xec3   : > { %v3202_v1 = vpop.f32.mrf.mxu0  ;;  %v3221_v36 = vpop.f32.mrf.mxu1 }
 0xec4   : > { %v5859_v55 = vadd.f32 %v3202_v1, %v5811_v20  ;;  %v5862_v16 = vadd.f32 %v3221_v36, %v5813_v35 }
 0xec6   : > { %v4230_v0 = vmul.f32 -1.442695, %v5859_v55  ;;  %v4231_v29 = vmul.f32 -1.442695, %v5862_v16 }
 0xec8   : > { %4625 = vpow2.f32 %v4230_v0 }
 0xec9   : > { %4627 = vpow2.f32 %v4231_v29 }
 0xecb   : > { %v3204_v3 = vpop.f32.mrf.mxu0  ;;  %v3223_v11 = vpop.f32.mrf.mxu1 }
 0xecc   : > { %v5867_v12 = vadd.f32 %v3204_v3, %v5811_v20  ;;  %v5870_v43 = vadd.f32 %v3223_v11, %v5813_v35 }
 0xece   : > { %v4626_v5 = vpop.eup %4625  ;;  %v4232_v23 = vmul.f32 -1.442695, %v5867_v12  ;;  %v4233_v53 = vmul.f32 -1.442695, %v5870_v43 }
 0xecf   : > { %v4628_v6 = vpop.eup %4627  ;;  %v3254_v60 = vadd.f32 1.0, %v4626_v5 }
 0xed0   : > { %v3255_v46 = vadd.f32 1.0, %v4628_v6  ;;  %4629 = vpow2.f32 %v4232_v23 }
 0xed1   : > { %4631 = vrcp.f32 %v3254_v60  ;;  %vm3323_vm14 = vweird.f32 %v3254_v60  ;;  %v3327_v45 = vand.u32 2147483647, %v3254_v60  ;;  %v3329_v15 = vand.u32 2147483648, %v3254_v60 }
 0xed2   : > { %4633 = vrcp.f32 %v3255_v46  ;;  %vm3338_vm15 = vweird.f32 %v3255_v46  ;;  %v3342_v33 = vand.u32 2147483647, %v3255_v46  ;;  %v3344_v62 = vand.u32 2147483648, %v3255_v46 }
 0xed3   : > { %4635 = vpow2.f32 %v4233_v53  ;;  %vm3328_vm4 = vcmp.eq.f32.partialorder %v3327_v45, 8.507059e+37  ;;  %v3330_v25 = vor.u32 1.1754944e-38, %v3329_v15 }
 0xed4   : > { %v3345_v2 = vor.u32 1.1754944e-38, %v3344_v62  ;;  %vm3343_vm10 = vcmp.eq.f32.partialorder %v3342_v33, 8.507059e+37 }
 0xed6   : > { %v4630_v18 = vpop.eup %4629 }
 0xed7   : > { %v4632_v22 = vpop.eup %4631  ;;  %v3256_v8 = vadd.f32 1.0, %v4630_v18 }
 0xed8   : > { %v4634_v20 = vpop.eup %4633  ;;  %v3319_v31 = vmul.f32 %v4632_v22, %v3254_v60  ;;  %vm3324_vm13 = vweird.f32 %v4632_v22  ;;  %v3038_v60 = vld [vmem:[%s4807_s20 + $0x18] ss:$0 sm:$0xff] }
 0xed9   : > { %v4636_v50 = vpop.eup %4635  ;;  %v3334_v35 = vmul.f32 %v4634_v20, %v3255_v46  ;;  %4637 = vrcp.f32 %v3256_v8  ;;  %v3359_v28 = vand.u32 2147483648, %v3256_v8  ;;  %vm5874_vm0 = vmor %vm3323_vm14, %vm3324_vm13  ;;  %vm3339_vm1 = vweird.f32 %v4634_v20 }
 0xeda   : > { %v3320_v52 = vsub.f32 1.0, %v3319_v31  ;;  %v3257_v24 = vadd.f32 1.0, %v4636_v50  ;;  %v3357_v58 = vand.u32 2147483647, %v3256_v8  ;;  %vm3353_vm5 = vweird.f32 %v3256_v8  ;;  %vm5881_vm6 = vmor %vm3338_vm15, %vm3339_vm1 }
 0xedb   : > { %v3335_v42 = vsub.f32 1.0, %v3334_v35  ;;  %v3360_v10 = vor.u32 1.1754944e-38, %v3359_v28 }
 0xedc   : > { %v3321_v56 = vmul.f32 %v4632_v22, %v3320_v52  ;;  %4639 = vrcp.f32 %v3257_v24  ;;  %v3372_v13 = vand.u32 2147483647, %v3257_v24  ;;  %v3374_v38 = vand.u32 2147483648, %v3257_v24 }
 0xedd   : > { %v3336_v63 = vmul.f32 %v4634_v20, %v3335_v42  ;;  %vm3358_vm9 = vcmp.eq.f32.partialorder %v3357_v58, 8.507059e+37  ;;  %vm3368_vm11 = vweird.f32 %v3257_v24 }
 0xede   : > { %v3322_v48 = vadd.f32 %v4632_v22, %v3321_v56  ;;  %v3375_v0 = vor.u32 1.1754944e-38, %v3374_v38  ;;  %vm3373_vm13 = vcmp.eq.f32.partialorder %v3372_v13, 8.507059e+37 }
 0xedf   : > { %v4638_v34 = vpop.eup %4637  ;;  %v3337_v19 = vadd.f32 %v4634_v20, %v3336_v63 }
 0xee0   : > { %v3349_v9 = vmul.f32 %v4638_v34, %v3256_v8  ;;  %v3326_v17 = vsel %vm5874_vm0, %v4632_v22, %v3322_v48  ;;  %vm3354_vm3 = vweird.f32 %v4638_v34 }
 0xee1   : > { %v3331_v61 = vsel %vm3328_vm4, %v3330_v25, %v3326_v17  ;;  %v3341_v41 = vsel %vm5881_vm6, %v4634_v20, %v3337_v19  ;;  %vm3355_vm7 = vmor %vm3353_vm5, %vm3354_vm3 }
 0xee2   : > { %v4640_v40 = vpop.eup %4639  ;;  %v3350_v27 = vsub.f32 1.0, %v3349_v9  ;;  %v3382_v44 = vmul.f32 %v3331_v61, %v5859_v55  ;;  %v3346_v1 = vsel %vm3343_vm10, %v3345_v2, %v3341_v41 }
 0xee3   : > { %v3364_v57 = vmul.f32 %v4640_v40, %v3257_v24  ;;  %vm3369_vm8 = vweird.f32 %v4640_v40  ;;  %v3383_v5 = vmul.f32 %v3346_v1, %v5862_v16 }
 0xee4   : > { %v3351_v39 = vmul.f32 %v4638_v34, %v3350_v27  ;;  %vm3370_vm12 = vmor %vm3368_vm11, %vm3369_vm8 }
 0xee5   : > { %v3365_v21 = vsub.f32 1.0, %v3364_v57 }
 0xee6   : > { %v3352_v30 = vadd.f32 %v4638_v34, %v3351_v39 }
 0xee7   : > { %v3366_v7 = vmul.f32 %v4640_v40, %v3365_v21 }
 0xee8   : > { %v3356_v4 = vsel %vm3355_vm7, %v4638_v34, %v3352_v30 }
 0xee9   : > { %v3361_v14 = vsel %vm3358_vm9, %v3360_v10, %v3356_v4  ;;  %v3367_v49 = vadd.f32 %v4640_v40, %v3366_v7 }
 0xeea   : > { %v3384_v36 = vmul.f32 %v3361_v14, %v5867_v12 }
 0xeeb   : > { %v3371_v29 = vsel %vm3370_vm12, %v4640_v40, %v3367_v49 }
 0xeec   : > { %v3376_v3 = vsel %vm3373_vm13, %v3375_v0, %v3371_v29  ;;  %v3388_v11 = vpack.c.bf16 %v3384_v36, %v3382_v44 }
 0xeed   : > { %v3385_v23 = vmul.f32 %v3376_v3, %v5870_v43 }
 0xeee   : > { %3531 = vmatmul.bf16.gmra.mxu2 %v3388_v11  ;;  %v3648_v11 = vld [vmem:[%s4807_s20 + $0x19] ss:$0 sm:$0xff] }
 0xeef   : > { %v3389_v6 = vpack.c.bf16 %v3385_v23, %v3383_v5 }
 0xef1   : > { %3550 = vmatmul.bf16.gmra.mxu3 %v3389_v6 }
 0xf3e   : > { %v3527_v53 = vpop.f32.mrf.mxu2 }
 0xf3f   : > { %v3528_v46 = vadd.f32 %v3527_v53, %v3038_v60 }
 0xf41   : > { %v3546_v55 = vpop.f32.mrf.mxu3 }
 0xf42   : > { %v3547_v18 = vadd.f32 %v3546_v55, %v3528_v46 }
 0xf44   : > { %v3556_v12 = vadd.f32 %v3547_v18, %v5729_v54 }
 0xf46   : > { %v3529_v22 = vpop.f32.mrf.mxu2  ;;  %v3560_v8 = vsel %vm791_vm2, %v3556_v12, 0.0 }
 0xf47   : > { %v3530_v20 = vadd.f32 %v3529_v22, %v3038_v60  ;;  %3561 = vadd.xlane.f32.xlu0 %v3560_v8 }
 0xf49   : > { %v3548_v31 = vpop.f32.mrf.mxu3 }
 0xf4a   : > { %v3549_v50 = vadd.f32 %v3548_v31, %v3530_v20 }
 0xf4c   : > { %v3557_v16 = vadd.f32 %v3549_v50, %v5734_v47 }
 0xf4e   : > { %v3563_v43 = vsel %vm791_vm2, %v3557_v16, 0.0 }
 0xf4f   : > { %3564 = vadd.xlane.f32.xlu2 %v3563_v43 }
 0xf71   : > { %v3532_v35 = vpop.f32.mrf.mxu2 }
 0xf72   : > { %v3533_v52 = vadd.f32 %v3532_v35, %v3038_v60 }
 0xf74   : > { %v3551_v24 = vpop.f32.mrf.mxu3 }
 0xf75   : > { %v3552_v42 = vadd.f32 %v3551_v24, %v3533_v52 }
 0xf77   : > { %v3558_v56 = vadd.f32 %v3552_v42, %v5739_v37 }
 0xf79   : > { %v3534_v34 = vpop.f32.mrf.mxu2  ;;  %v3566_v54 = vsel %vm791_vm2, %v3558_v56, 0.0 }
 0xf7a   : > { %v3535_v63 = vadd.f32 %v3534_v34, %v3038_v60  ;;  %3567 = vadd.xlane.f32.xlu1 %v3566_v54  ;;  %v3653_v60 = vld [vmem:[%s4807_s20 + $0x1a] ss:$0 sm:$0xff] }
 0xf7c   : > { %v3553_v48 = vpop.f32.mrf.mxu3 }
 0xf7d   : > { %v3554_v9 = vadd.f32 %v3553_v48, %v3535_v63 }
 0xf7f   : > { %v3559_v45 = vadd.f32 %v3554_v9, %v5744_v59 }
 0xf81   : > { %v3569_v47 = vsel %vm791_vm2, %v3559_v45, 0.0 }
 0xf82   : > { %3570 = vadd.xlane.f32.xlu0 %v3569_v47 }
 0xfba   : > { %v3562_v15 = vpop.xlane.xlu0 %3561 }
 0xfbb   : > { %v3572_v40 = vmul.f32 %v3562_v15, %v4887_v32 }
 0xfbd   : > { %v3576_v33 = vsub.f32 %v3556_v12, %v3572_v40 }
 0xfbf   : > { %v3580_v27 = vmul.f32 %v3576_v33, %v3576_v33 }
 0xfc1   : > { %v3584_v28 = vsel %vm791_vm2, %v3580_v27, 0.0 }
 0xfc2   : > { %v3565_v37 = vpop.xlane.xlu2 %3564  ;;  %3585 = vadd.xlane.f32.xlu2 %v3584_v28 }
 0xfc3   : > { %v3573_v26 = vmul.f32 %v3565_v37, %v4887_v32 }
 0xfc5   : > { %v3577_v19 = vsub.f32 %v3557_v16, %v3573_v26 }
 0xfc7   : > { %v3581_v62 = vmul.f32 %v3577_v19, %v3577_v19 }
 0xfc9   : > { %v3587_v57 = vsel %vm791_vm2, %v3581_v62, 0.0 }
 0xfca   : > { %3588 = vadd.xlane.f32.xlu1 %v3587_v57 }
 0xfed   : > { %v3568_v59 = vpop.xlane.xlu1 %3567 }
 0xfee   : > { %v3574_v17 = vmul.f32 %v3568_v59, %v4887_v32 }
 0xff0   : > { %v5905_v39 = vsub.f32 %v3558_v56, %v3574_v17 }
 0xff2   : > { %v3582_v58 = vmul.f32 %v5905_v39, %v5905_v39 }
 0xff4   : > { %v3590_v25 = vsel %vm791_vm2, %v3582_v58, 0.0 }
 0xff5   : > { %v3571_v21 = vpop.xlane.xlu0 %3570  ;;  %3591 = vadd.xlane.f32.xlu0 %v3590_v25 }
 0xff6   : > { %v3575_v51 = vmul.f32 %v3571_v21, %v4887_v32 }
 0xff8   : > { %v5911_v30 = vsub.f32 %v3559_v45, %v3575_v51 }
 0xffa   : > { %v3583_v10 = vmul.f32 %v5911_v30, %v5911_v30 }
 0xffc   : > { %v3593_v13 = vsel %vm791_vm2, %v3583_v10, 0.0 }
 0xffd   : > { %3594 = vadd.xlane.f32.xlu2 %v3593_v13 }
0x1035   : > { %v3586_v38 = vpop.xlane.xlu2 %3585 }
0x1036   : > { %v3596_v61 = vmul.f32 %v3586_v38, %v4887_v32 }
0x1038   : > { %v3600_v41 = vadd.f32 1e-05, %v3596_v61 }
0x103a   : > { %4641 = vrsqrt.f32 %v3600_v41  ;;  %vm3610_vm15 = vweird.f32 %v3600_v41 }
0x103d   : > { %v3589_v7 = vpop.xlane.xlu1 %3588 }
0x103e   : > { %v3597_v2 = vmul.f32 %v3589_v7, %v4887_v32 }
0x1040   : > { %v4642_v4 = vpop.eup %4641  ;;  %v3601_v14 = vadd.f32 1e-05, %v3597_v2 }
0x1041   : > { %v3605_v49 = vmul.f32 %v4642_v4, %v3600_v41  ;;  %vm3611_vm14 = vweird.f32 %v4642_v4 }
0x1042   : > { %4643 = vrsqrt.f32 %v3601_v14  ;;  %vm3612_vm0 = vmor %vm3610_vm15, %vm3611_vm14  ;;  %vm3620_vm3 = vweird.f32 %v3601_v14 }
0x1043   : > { %v3606_v44 = vmul.f32 %v4642_v4, %v3605_v49 }
0x1045   : > { %v3607_v1 = vmul.f32 0.5, %v3606_v44 }
0x1047   : > { %v3608_v36 = vsub.f32 1.5, %v3607_v1 }
0x1048   : > { %v4644_v0 = vpop.eup %4643 }
0x1049   : > { %v3609_v29 = vmul.f32 %v4642_v4, %v3608_v36  ;;  %v3615_v3 = vmul.f32 %v4644_v0, %v3601_v14  ;;  %vm3621_vm1 = vweird.f32 %v4644_v0 }
0x104a   : > { %vm3622_vm4 = vmor %vm3620_vm3, %vm3621_vm1 }
0x104b   : > { %v3613_v5 = vsel %vm3612_vm0, %v4642_v4, %v3609_v29  ;;  %v3616_v23 = vmul.f32 %v4644_v0, %v3615_v3 }
0x104c   : > { %v3644_v6 = vmul.f32 %v3613_v5, %v3576_v33 }
0x104d   : > { %v3617_v53 = vmul.f32 0.5, %v3616_v23 }
0x104e   : > { %v3649_v46 = vmul.f32 %v3648_v11, %v3644_v6 }
0x104f   : > { %v3618_v55 = vsub.f32 1.5, %v3617_v53 }
0x1050   : > { %v3654_v18 = vadd.f32 %v3653_v60, %v3649_v46 }
0x1051   : > { %v3619_v12 = vmul.f32 %v4644_v0, %v3618_v55 }
0x1052   : > { %3658 = vst.msk [vmem:[#allocation2] sm:$0xff] %vm791_vm2, %v3654_v18 }
0x1053   : > { %v3623_v22 = vsel %vm3622_vm4, %v4644_v0, %v3619_v12 }
0x1054   : > { %v3645_v8 = vmul.f32 %v3623_v22, %v3577_v19 }
0x1056   : > { %v3650_v20 = vmul.f32 %v3648_v11, %v3645_v8 }
0x1058   : > { %v3655_v31 = vadd.f32 %v3653_v60, %v3650_v20 }
0x105a   : > { %3659 = vst.msk [vmem:[#allocation2 + $0x8] sm:$0xff] %vm791_vm2, %v3655_v31 }
0x1068   : > { %v3592_v50 = vpop.xlane.xlu0 %3591 }
0x1069   : > { %v3598_v16 = vmul.f32 %v3592_v50, %v4887_v32 }
0x106b   : > { %v3602_v43 = vadd.f32 1e-05, %v3598_v16 }
0x106d   : > { %4645 = vrsqrt.f32 %v3602_v43  ;;  %vm3630_vm6 = vweird.f32 %v3602_v43 }
0x1070   : > { %v3595_v35 = vpop.xlane.xlu2 %3594 }
0x1071   : > { %v3599_v52 = vmul.f32 %v3595_v35, %v4887_v32 }
0x1073   : > { %v4646_v24 = vpop.eup %4645  ;;  %v3603_v42 = vadd.f32 1e-05, %v3599_v52 }
0x1074   : > { %v3625_v56 = vmul.f32 %v4646_v24, %v3602_v43  ;;  %vm3631_vm5 = vweird.f32 %v4646_v24 }
0x1075   : > { %4647 = vrsqrt.f32 %v3603_v42  ;;  %vm3632_vm7 = vmor %vm3630_vm6, %vm3631_vm5  ;;  %vm3640_vm9 = vweird.f32 %v3603_v42 }
0x1076   : > { %v3626_v34 = vmul.f32 %v4646_v24, %v3625_v56 }
0x1078   : > { %v3627_v54 = vmul.f32 0.5, %v3626_v34 }
0x107a   : > { %v3628_v63 = vsub.f32 1.5, %v3627_v54 }
0x107b   : > { %v4648_v48 = vpop.eup %4647 }
0x107c   : > { %v3629_v9 = vmul.f32 %v4646_v24, %v3628_v63  ;;  %v3635_v45 = vmul.f32 %v4648_v48, %v3603_v42  ;;  %vm3641_vm8 = vweird.f32 %v4648_v48 }
0x107d   : > { %vm3642_vm10 = vmor %vm3640_vm9, %vm3641_vm8 }
0x107e   : > { %v3633_v47 = vsel %vm3632_vm7, %v4646_v24, %v3629_v9  ;;  %v3636_v15 = vmul.f32 %v4648_v48, %v3635_v45 }
0x107f   : > { %v3646_v40 = vmul.f32 %v3633_v47, %v5905_v39 }
0x1080   : > { %v3637_v33 = vmul.f32 0.5, %v3636_v15 }
0x1081   : > { %v3651_v27 = vmul.f32 %v3648_v11, %v3646_v40 }
0x1082   : > { %v3638_v32 = vsub.f32 1.5, %v3637_v33 }
0x1083   : > { %v3656_v28 = vadd.f32 %v3653_v60, %v3651_v27 }
0x1084   : > { %v3639_v37 = vmul.f32 %v4648_v48, %v3638_v32 }
0x1085   : > { %3660 = vst.msk [vmem:[#allocation2 + $0x10] sm:$0xff] %vm791_vm2, %v3656_v28 }
0x1086   : > { %v3643_v26 = vsel %vm3642_vm10, %v4648_v48, %v3639_v37 }
0x1087   : > { %v3647_v19 = vmul.f32 %v3643_v26, %v5911_v30 }
0x1089   : > { %v3652_v62 = vmul.f32 %v3648_v11, %v3647_v19  ;;  %3665 = sbr.rel (%p4298_p5) target bundleno = 4242 (0x1092), region = 96 }
0x108b   : > { %v3657_v57 = vadd.f32 %v3653_v60, %v3652_v62 }
0x108d   : > { %3661 = vst.msk [vmem:[#allocation2 + $0x18] sm:$0xff] %vm791_vm2, %v3657_v57 }
0x108e   : > { %3666 = vst.msk [vmem:[#allocation4] sm:$0xff] %vm791_vm2, %v3654_v18 }
0x108f   : > { %3667 = vst.msk [vmem:[#allocation4 + $0x8] sm:$0xff] %vm791_vm2, %v3655_v31 }
0x1090   : > { %3668 = vst.msk [vmem:[#allocation4 + $0x10] sm:$0xff] %vm791_vm2, %v3656_v28 }
0x1091   : > { %3669 = vst.msk [vmem:[#allocation4 + $0x18] sm:$0xff] %vm791_vm2, %v3657_v57 }
0x1092 PF: > { %p4413_p6 = scmp.eq.s32.totalorder %s4793_s25, 1  ;;  %s4694_s3 = smov [#allocation4]  }
0x1093   : > { %s3675_s4 = sshll.u32 %s4694_s3, 4  ;;  %s6010_s17 = sld [smem:[#allocation18_spill]]  ;;  %s3676_s4 = int_to_ptr.vmem [resolvable:$true] %s3675_s4 }
0x1094   : > { %s4695_s24 = smov 128   ;;  %s4696_s16 = smov 8  }
0x1099   : > { %s3677_s0 = sshll.u32 %s6010_s17, 4  ;;  %s3678_s0 = int_to_ptr.hbm [resolvable:$true] %s3677_s0 }
0x109a   : > { %4410 = dma.vmem_to_hbm [thread:$0]  (%p4413_p6), %s3676_s4, 512, %s3678_s0, [#allocation5], %s4695_s24, %s4695_s24, %s4696_s16  }
0x109b   : > { %4682 = dma.done.wait (%p4413_p6), [#allocation5], 512  }
0x109c   : > { %4684 = vsyncadd (%p4413_p6), [#allocation5], 4294966784 }
0x109d PF: > { %s6011_s29 = sld [smem:[#allocation7_spill]] }
0x10a3   : > { %s28_s24 = sadd.s32 1, %s6011_s29  }
0x10a4   : > { %p25_p7 = scmp.ge.s32.totalorder %s28_s24, 4  }
0x10a6   :  { %27 = sbr.rel (!%p25_p7) target bundleno = 13 (0xd), region = 153 }
0x10ab   :  { %3694 = vsyncpa [#allocation5], 1 }
0x10ac   :  { %3696 = vsyncpa [#allocation5 + $0x1], 1 }

</bundles_post_ra>
